<compile_context>
chip_gen: v7x
topology: tpu7x:2x2x1
jax: 0.10.0
libtpu: 0.0.40
codegen_flags: <defaults>
</compile_context>

<pallas_src>
import jax
import jax.numpy as jnp
from jax.experimental import pallas as pl
from jax.experimental.pallas import tpu as pltpu

# ----------------------------- config (small) -----------------------------
BATCH = 2
CHANNELS = 3
IMG = 32
PATCH = 16
N_PATCHES = (IMG // PATCH) ** 2          # 4
SEQ = N_PATCHES + 1                      # 5 real tokens (frame cls + patches)
SEQ_PAD = 8                              # padded to a full (8,128) sublane tile
DIM = 128                                # hidden dim (stands in for 768)
HEADS = 4
HEAD_DIM = DIM // HEADS                  # 32
MLP_DIM = 4 * DIM                        # 512
LAYERS = 2                               # stands in for 12
NUM_CLASSES = 16                         # nn.Linear(in_features, 16)
OUT_PAD = 128                            # lane-dense head output width
LN_EPS_VIT = 1e-6                        # torchvision ViT LayerNorm eps
LN_EPS_FRAME = 1e-5                      # nn.LayerNorm default eps
SQRT_HALF = 0.7071067811865476
NEG_INF = -1e30


# ----------------------------- kernel helpers -----------------------------
def _gelu_exact(x):
    # PyTorch nn.GELU default (erf formulation).
    return 0.5 * x * (1.0 + jax.lax.erf(x * SQRT_HALF))


def _layernorm(x, g, b, eps):
    mu = jnp.mean(x, axis=-1, keepdims=True)
    xc = x - mu
    var = jnp.mean(xc * xc, axis=-1, keepdims=True)
    return xc * jax.lax.rsqrt(var + eps) * g + b


# ------------------------------- fused kernel ------------------------------
def fused_vit_kernel(
    # inputs
    patches_ref, frames_ref,
    patch_w_ref, patch_b_ref,
    fe_w_ref, fe_b_ref, fe_g_ref, fe_beta_ref,
    pos_ref,
    ln1_g_ref, ln1_b_ref, wqkv_ref, bqkv_ref, wo_ref, bo_ref,
    ln2_g_ref, ln2_b_ref, w1_ref, b1_ref, w2_ref, b2_ref,
    enc_ln_g_ref, enc_ln_b_ref, head_w_ref, head_b_ref,
    # outputs
    out_ref,
    # scratch
    tok_ref,
):
    f32 = jnp.float32
    B = frames_ref.shape[0]
    BS = B * SEQ_PAD

    # --- 1) patch embedding: Conv2d(k=s=PATCH) as an im2col matmul ---
    pe = jnp.dot(patches_ref[...], patch_w_ref[...],
                 preferred_element_type=f32) + patch_b_ref[...]      # (B*N, D)

    # --- 2) frame encoder -> class token: Linear(1,D) + GELU + LayerNorm ---
    cls = frames_ref[...] * fe_w_ref[...] + fe_b_ref[...]            # (B, D)
    cls = _gelu_exact(cls)
    cls = _layernorm(cls, fe_g_ref[...], fe_beta_ref[...], LN_EPS_FRAME)

    # --- 3) assemble padded token buffer (pos pre-padded to SEQ_PAD rows) ---
    tok_ref[...] = jnp.broadcast_to(pos_ref[...], (B, SEQ_PAD, DIM))
    for b in range(B):                                  # static, B=2
        tok_ref[b, 0:1, :] = tok_ref[b, 0:1, :] + cls[b:b + 1, :]
        tok_ref[b, 1:1 + N_PATCHES, :] = (
            tok_ref[b, 1:1 + N_PATCHES, :]
            + pe[b * N_PATCHES:(b + 1) * N_PATCHES, :])
    x = tok_ref[...].reshape(BS, DIM)                   # (B*SEQ_PAD, D), tile-aligned

    # key-padding mask bias (columns >= SEQ masked), shared by all layers/heads
    key_idx = jax.lax.broadcasted_iota(jnp.int32, (B, SEQ_PAD, SEQ_PAD), 2)
    mask_bias = NEG_INF * (key_idx >= SEQ).astype(f32)  # (B, Sp, Sp)

    # --- 4) encoder layers (weights VMEM-resident, statically unrolled) ---
    for l in range(LAYERS):
        # -- multi-head self-attention (pre-LN) --
        h = _layernorm(x, ln1_g_ref[l], ln1_b_ref[l], LN_EPS_VIT)
        qkv = (jnp.dot(h, wqkv_ref[l], preferred_element_type=f32)
               + bqkv_ref[l])                           # (BS, 3D); Q pre-scaled
        wo_l = wo_ref[l]                                # (D, D)

        attn = jnp.zeros((BS, DIM), f32)
        for hh in range(HEADS):                         # static head loop
            q0 = hh * HEAD_DIM
            qh = qkv[:, 0 * DIM + q0:0 * DIM + q0 + HEAD_DIM].reshape(
                B, SEQ_PAD, HEAD_DIM)
            kh = qkv[:, 1 * DIM + q0:1 * DIM + q0 + HEAD_DIM].reshape(
                B, SEQ_PAD, HEAD_DIM)
            vh = qkv[:, 2 * DIM + q0:2 * DIM + q0 + HEAD_DIM].reshape(
                B, SEQ_PAD, HEAD_DIM)
            # 1/sqrt(HEAD_DIM) already folded into Q columns of wqkv/bqkv.
            s = jnp.einsum('bqd,bkd->bqk', qh, kh,
                           preferred_element_type=f32) + mask_bias   # (B,Sp,Sp)
            s = s - jnp.max(s, axis=-1, keepdims=True)
            p = jnp.exp(s)
            p = p / jnp.sum(p, axis=-1, keepdims=True)
            ctx = jnp.einsum('bqk,bkd->bqd', p, vh,
                             preferred_element_type=f32)             # (B,Sp,dh)
            # accumulate through the matching slice of the output projection
            attn = attn + jnp.dot(ctx.reshape(BS, HEAD_DIM),
                                  wo_l[q0:q0 + HEAD_DIM, :],
                                  preferred_element_type=f32)
        x = x + attn + bo_ref[l]                        # residual 1

        # -- MLP (pre-LN) --
        h2 = _layernorm(x, ln2_g_ref[l], ln2_b_ref[l], LN_EPS_VIT)
        m = jnp.dot(h2, w1_ref[l], preferred_element_type=f32) + b1_ref[l]
        m = _gelu_exact(m)
        m = jnp.dot(m, w2_ref[l], preferred_element_type=f32) + b2_ref[l]
        x = x + m                                       # residual 2

    # --- 5) final encoder LN + classification head, lane-dense output ---
    # (LN + head applied to all rows; wrapper keeps only the class-token row.)
    hf = _layernorm(x, enc_ln_g_ref[...], enc_ln_b_ref[...], LN_EPS_VIT)
    logits = (jnp.dot(hf, head_w_ref[...], preferred_element_type=f32)
              + head_b_ref[...])                        # (BS, OUT_PAD)
    out_ref[...] = logits.reshape(B, SEQ_PAD, OUT_PAD)


# ------------------------------ wrapper -------------------------------------
@jax.jit
def forward(kp, images, frame_inputs):
    B = images.shape[0]
    nh = IMG // PATCH
    # im2col glue: NCHW -> (B*N, C*P*P), patch flattened in (c, ph, pw) order
    # -- exactly matching the flattened Conv2d weight layout.
    patches = images.reshape(B, CHANNELS, nh, PATCH, nh, PATCH)
    patches = patches.transpose(0, 2, 4, 1, 3, 5).reshape(
        B * N_PATCHES, CHANNELS * PATCH * PATCH)

    out_pad = pl.pallas_call(
        fused_vit_kernel,
        out_shape=jax.ShapeDtypeStruct((B, SEQ_PAD, OUT_PAD), jnp.float32),
        scratch_shapes=[pltpu.VMEM((B, SEQ_PAD, DIM), jnp.float32)],
    )(patches, frame_inputs,
      kp["patch_w"], kp["patch_b"],
      kp["fe_w"], kp["fe_b"], kp["fe_g"], kp["fe_beta"],
      kp["pos"],
      kp["ln1_g"], kp["ln1_b"], kp["wqkv"], kp["bqkv"], kp["wo"], kp["bo"],
      kp["ln2_g"], kp["ln2_b"], kp["w1"], kp["b1"], kp["w2"], kp["b2"],
      kp["enc_ln_g"], kp["enc_ln_b"], kp["head_w"], kp["head_b"])

    # class-token row, real classes only
    return out_pad[:, 0, :NUM_CLASSES]


# ------------------------- deterministic params ----------------------------
def init_params(key):
    keys = iter(jax.random.split(key, 64))
    n = lambda shape, std: std * jax.random.normal(next(keys), shape, jnp.float32)
    zeros = lambda shape: jnp.zeros(shape, jnp.float32)
    ones = lambda shape: jnp.ones(shape, jnp.float32)

    params = {
        # patch projection (Conv2d 3->D, k=s=16, flattened)
        "patch_w": n((CHANNELS * PATCH * PATCH, DIM), 0.02),
        "patch_b": zeros((1, DIM)),
        # positional embedding (SEQ real rows)
        "pos": n((1, SEQ, DIM), 0.02),
        # frame_encoder: Linear(1, D) N(0, 0.02), zero bias; LayerNorm default init
        "fe_w": n((1, DIM), 0.02),
        "fe_b": zeros((1, DIM)),
        "fe_g": ones((1, DIM)),
        "fe_beta": zeros((1, DIM)),
        # final encoder LayerNorm
        "enc_ln_g": ones((1, DIM)),
        "enc_ln_b": zeros((1, DIM)),
    }

    layers = []
    for _ in range(LAYERS):
        layers.append({
            "ln1_g": ones((1, DIM)), "ln1_b": zeros((1, DIM)),
            "wqkv": n((DIM, 3 * DIM), 0.02), "bqkv": zeros((1, 3 * DIM)),
            "wo": n((DIM, DIM), 0.02), "bo": zeros((1, DIM)),
            "ln2_g": ones((1, DIM)), "ln2_b": zeros((1, DIM)),
            "w1": n((DIM, MLP_DIM), 0.02), "b1": zeros((1, MLP_DIM)),
            "w2": n((MLP_DIM, DIM), 0.02), "b2": zeros((1, DIM)),
        })
    params["layers"] = layers

    # heads.head: rows [:15] trunc_normal(std=0.02), last row N(0, 0.01), bias 0
    w_top = 0.02 * jax.random.truncated_normal(next(keys), -2.0, 2.0,
                                               (NUM_CLASSES - 1, DIM), jnp.float32)
    w_last = n((1, DIM), 0.01)
    params["head_w"] = jnp.concatenate([w_top, w_last], axis=0).T   # (D, 16)
    params["head_b"] = zeros((1, NUM_CLASSES))
    return params


def pack_params(params):
    """One-time re-layout for the fused kernel:
    - stack per-layer weights along a leading LAYERS axis,
    - fold 1/sqrt(HEAD_DIM) into the Q columns of wqkv AND bqkv,
    - zero-pad pos to SEQ_PAD rows and the head to OUT_PAD (lane-dense) cols."""
    scale = 1.0 / (HEAD_DIM ** 0.5)
    q_scale = jnp.concatenate([jnp.full((DIM,), scale, jnp.float32),
                               jnp.ones((2 * DIM,), jnp.float32)])   # (3D,)
    stack = lambda name: jnp.stack([lp[name] for lp in params["layers"]], axis=0)

    return {
        "patch_w": params["patch_w"], "patch_b": params["patch_b"],
        "fe_w": params["fe_w"], "fe_b": params["fe_b"],
        "fe_g": params["fe_g"], "fe_beta": params["fe_beta"],
        "pos": jnp.pad(params["pos"], ((0, 0), (0, SEQ_PAD - SEQ), (0, 0))),
        "ln1_g": stack("ln1_g"), "ln1_b": stack("ln1_b"),
        "wqkv": stack("wqkv") * q_scale[None, None, :],
        "bqkv": stack("bqkv") * q_scale[None, None, :],
        "wo": stack("wo"), "bo": stack("bo"),
        "ln2_g": stack("ln2_g"), "ln2_b": stack("ln2_b"),
        "w1": stack("w1"), "b1": stack("b1"),
        "w2": stack("w2"), "b2": stack("b2"),
        "enc_ln_g": params["enc_ln_g"], "enc_ln_b": params["enc_ln_b"],
        "head_w": jnp.pad(params["head_w"],
                          ((0, 0), (0, OUT_PAD - NUM_CLASSES))),
        "head_b": jnp.pad(params["head_b"],
                          ((0, 0), (0, OUT_PAD - NUM_CLASSES))),
    }


# --------------------------------- main -------------------------------------
if __name__ == "__main__":
    key = jax.random.PRNGKey(0)
    k_params, k_img, k_frame = jax.random.split(key, 3)

    params = init_params(k_params)
    kp = pack_params(params)           # one-time kernel-ready re-layout
    images = jax.random.normal(k_img, (BATCH, CHANNELS, IMG, IMG), jnp.float32)
    frame_inputs = jax.random.normal(k_frame, (BATCH, 1), jnp.float32)

    out = forward(kp, images, frame_inputs)
    out = jax.block_until_ready(out)
    assert out.shape == (BATCH, NUM_CLASSES), out.shape
    assert jnp.all(jnp.isfinite(out))
    print("KERNEL_OK")
</pallas_src>

<mosaic_0001>
module attributes {stable_mosaic.version = 11 : i64} {
  func.func @fused_vit_kernel(%arg0: memref<8x768xf32, #tpu.memory_space<vmem>>, %arg1: memref<2x1xf32, #tpu.memory_space<vmem>>, %arg2: memref<768x128xf32, #tpu.memory_space<vmem>>, %arg3: memref<1x128xf32, #tpu.memory_space<vmem>>, %arg4: memref<1x128xf32, #tpu.memory_space<vmem>>, %arg5: memref<1x128xf32, #tpu.memory_space<vmem>>, %arg6: memref<1x128xf32, #tpu.memory_space<vmem>>, %arg7: memref<1x128xf32, #tpu.memory_space<vmem>>, %arg8: memref<1x8x128xf32, #tpu.memory_space<vmem>>, %arg9: memref<2x1x128xf32, #tpu.memory_space<vmem>>, %arg10: memref<2x1x128xf32, #tpu.memory_space<vmem>>, %arg11: memref<2x128x384xf32, #tpu.memory_space<vmem>>, %arg12: memref<2x1x384xf32, #tpu.memory_space<vmem>>, %arg13: memref<2x128x128xf32, #tpu.memory_space<vmem>>, %arg14: memref<2x1x128xf32, #tpu.memory_space<vmem>>, %arg15: memref<2x1x128xf32, #tpu.memory_space<vmem>>, %arg16: memref<2x1x128xf32, #tpu.memory_space<vmem>>, %arg17: memref<2x128x512xf32, #tpu.memory_space<vmem>>, %arg18: memref<2x1x512xf32, #tpu.memory_space<vmem>>, %arg19: memref<2x512x128xf32, #tpu.memory_space<vmem>>, %arg20: memref<2x1x128xf32, #tpu.memory_space<vmem>>, %arg21: memref<1x128xf32, #tpu.memory_space<vmem>>, %arg22: memref<1x128xf32, #tpu.memory_space<vmem>>, %arg23: memref<128x128xf32, #tpu.memory_space<vmem>>, %arg24: memref<1x128xf32, #tpu.memory_space<vmem>>, %arg25: memref<2x8x128xf32, #tpu.memory_space<vmem>>, %arg26: memref<2x8x128xf32, #tpu.memory_space<vmem>>) attributes {dimension_semantics = [], scalar_prefetch = 0 : i64, scratch_operands = 1 : i64, tpu.core_type = #tpu.core_type<tc>} {
    %c0 = arith.constant 0 : index
    %c0_0 = arith.constant 0 : index
    %0 = vector.load %arg0[%c0, %c0_0] : memref<8x768xf32, #tpu.memory_space<vmem>>, vector<8x768xf32>
    %c0_1 = arith.constant 0 : index
    %c0_2 = arith.constant 0 : index
    %1 = vector.load %arg2[%c0_1, %c0_2] : memref<768x128xf32, #tpu.memory_space<vmem>>, vector<768x128xf32>
    %cst = arith.constant dense<0.000000e+00> : vector<8x128xf32>
    %2 = tpu.matmul %0, %1, %cst {dimension_numbers = #tpu.dot_dimension_numbers<[1], [0], [0], [1], [0, 0, 1, 1], [], []>} : vector<8x768xf32>, vector<768x128xf32>, vector<8x128xf32> -> vector<8x128xf32>
    %c0_3 = arith.constant 0 : index
    %c0_4 = arith.constant 0 : index
    %3 = vector.load %arg3[%c0_3, %c0_4] : memref<1x128xf32, #tpu.memory_space<vmem>>, vector<1x128xf32>
    %4 = vector.broadcast %3 : vector<1x128xf32> to vector<8x128xf32>
    %5 = arith.addf %2, %4 : vector<8x128xf32>
    %c0_5 = arith.constant 0 : index
    %c0_6 = arith.constant 0 : index
    %6 = vector.load %arg1[%c0_5, %c0_6] : memref<2x1xf32, #tpu.memory_space<vmem>>, vector<2x1xf32>
    %c0_7 = arith.constant 0 : index
    %c0_8 = arith.constant 0 : index
    %7 = vector.load %arg4[%c0_7, %c0_8] : memref<1x128xf32, #tpu.memory_space<vmem>>, vector<1x128xf32>
    %8 = vector.broadcast %6 : vector<2x1xf32> to vector<2x128xf32>
    %9 = vector.broadcast %7 : vector<1x128xf32> to vector<2x128xf32>
    %10 = arith.mulf %8, %9 : vector<2x128xf32>
    %c0_9 = arith.constant 0 : index
    %c0_10 = arith.constant 0 : index
    %11 = vector.load %arg5[%c0_9, %c0_10] : memref<1x128xf32, #tpu.memory_space<vmem>>, vector<1x128xf32>
    %12 = vector.broadcast %11 : vector<1x128xf32> to vector<2x128xf32>
    %13 = arith.addf %10, %12 : vector<2x128xf32>
    %cst_11 = arith.constant 5.000000e-01 : f32
    %14 = vector.broadcast %cst_11 : f32 to vector<2x128xf32>
    %15 = arith.mulf %14, %13 : vector<2x128xf32>
    %cst_12 = arith.constant 0.707106769 : f32
    %16 = vector.broadcast %cst_12 : f32 to vector<2x128xf32>
    %17 = arith.mulf %13, %16 : vector<2x128xf32>
    %18 = math.erf %17 : vector<2x128xf32>
    %cst_13 = arith.constant 1.000000e+00 : f32
    %19 = vector.broadcast %cst_13 : f32 to vector<2x128xf32>
    %20 = arith.addf %19, %18 : vector<2x128xf32>
    %21 = arith.mulf %15, %20 : vector<2x128xf32>
    %c0_14 = arith.constant 0 : index
    %c0_15 = arith.constant 0 : index
    %22 = vector.load %arg6[%c0_14, %c0_15] : memref<1x128xf32, #tpu.memory_space<vmem>>, vector<1x128xf32>
    %c0_16 = arith.constant 0 : index
    %c0_17 = arith.constant 0 : index
    %23 = vector.load %arg7[%c0_16, %c0_17] : memref<1x128xf32, #tpu.memory_space<vmem>>, vector<1x128xf32>
    %cst_18 = arith.constant dense<0.000000e+00> : vector<2xf32>
    %24 = vector.multi_reduction <add>, %21, %cst_18 [1] : vector<2x128xf32> to vector<2xf32>
    %25 = vector.shape_cast %24 : vector<2xf32> to vector<2x1xf32>
    %cst_19 = arith.constant 1.280000e+02 : f32
    %26 = vector.broadcast %cst_19 : f32 to vector<2x1xf32>
    %27 = arith.divf %25, %26 : vector<2x1xf32>
    %28 = vector.broadcast %27 : vector<2x1xf32> to vector<2x128xf32>
    %29 = arith.subf %21, %28 : vector<2x128xf32>
    %30 = arith.mulf %29, %29 : vector<2x128xf32>
    %cst_20 = arith.constant dense<0.000000e+00> : vector<2xf32>
    %31 = vector.multi_reduction <add>, %30, %cst_20 [1] : vector<2x128xf32> to vector<2xf32>
    %32 = vector.shape_cast %31 : vector<2xf32> to vector<2x1xf32>
    %cst_21 = arith.constant 1.280000e+02 : f32
    %33 = vector.broadcast %cst_21 : f32 to vector<2x1xf32>
    %34 = arith.divf %32, %33 : vector<2x1xf32>
    %cst_22 = arith.constant 9.99999974E-6 : f32
    %35 = vector.broadcast %cst_22 : f32 to vector<2x1xf32>
    %36 = arith.addf %34, %35 : vector<2x1xf32>
    %37 = math.rsqrt %36 : vector<2x1xf32>
    %38 = vector.broadcast %37 : vector<2x1xf32> to vector<2x128xf32>
    %39 = arith.mulf %29, %38 : vector<2x128xf32>
    %40 = vector.broadcast %22 : vector<1x128xf32> to vector<2x128xf32>
    %41 = arith.mulf %39, %40 : vector<2x128xf32>
    %42 = vector.broadcast %23 : vector<1x128xf32> to vector<2x128xf32>
    %43 = arith.addf %41, %42 : vector<2x128xf32>
    %c0_23 = arith.constant 0 : index
    %c0_24 = arith.constant 0 : index
    %c0_25 = arith.constant 0 : index
    %44 = vector.load %arg8[%c0_23, %c0_24, %c0_25] : memref<1x8x128xf32, #tpu.memory_space<vmem>>, vector<1x8x128xf32>
    %45 = vector.shape_cast %44 : vector<1x8x128xf32> to vector<1x8x128xf32>
    %46 = vector.broadcast %45 : vector<1x8x128xf32> to vector<2x8x128xf32>
    %c0_26 = arith.constant 0 : index
    %c0_27 = arith.constant 0 : index
    %c0_28 = arith.constant 0 : index
    %47 = vector.load %arg26[%c0_26, %c0_27, %c0_28] : memref<2x8x128xf32, #tpu.memory_space<vmem>>, vector<2x8x128xf32>
    tpu.vector_store %arg26[%c0_26, %c0_27, %c0_28], %46 {strides = array<i32>} : memref<2x8x128xf32, #tpu.memory_space<vmem>>, vector<2x8x128xf32>,
    %c0_29 = arith.constant 0 : index
    %c0_30 = arith.constant 0 : index
    %c0_31 = arith.constant 0 : index
    %48 = vector.load %arg26[%c0_29, %c0_30, %c0_31] : memref<2x8x128xf32, #tpu.memory_space<vmem>>, vector<1x1x128xf32>
    %49 = vector.shape_cast %48 : vector<1x1x128xf32> to vector<1x128xf32>
    %50 = vector.extract_strided_slice %43 {offsets = [0, 0], sizes = [1, 128], strides = [1, 1]} : vector<2x128xf32> to vector<1x128xf32>
    %51 = arith.addf %49, %50 : vector<1x128xf32>
    %c0_32 = arith.constant 0 : index
    %c0_33 = arith.constant 0 : index
    %c0_34 = arith.constant 0 : index
    %52 = vector.load %arg26[%c0_32, %c0_33, %c0_34] : memref<2x8x128xf32, #tpu.memory_space<vmem>>, vector<1x1x128xf32>
    %53 = vector.shape_cast %52 : vector<1x1x128xf32> to vector<1x128xf32>
    %54 = vector.shape_cast %51 : vector<1x128xf32> to vector<1x1x128xf32>
    tpu.vector_store %arg26[%c0_32, %c0_33, %c0_34], %54 {strides = array<i32>} : memref<2x8x128xf32, #tpu.memory_space<vmem>>, vector<1x1x128xf32>,
    %c0_35 = arith.constant 0 : index
    %c1 = arith.constant 1 : index
    %c0_36 = arith.constant 0 : index
    %55 = vector.load %arg26[%c0_35, %c1, %c0_36] : memref<2x8x128xf32, #tpu.memory_space<vmem>>, vector<1x4x128xf32>
    %56 = vector.shape_cast %55 : vector<1x4x128xf32> to vector<4x128xf32>
    %57 = vector.extract_strided_slice %5 {offsets = [0, 0], sizes = [4, 128], strides = [1, 1]} : vector<8x128xf32> to vector<4x128xf32>
    %58 = arith.addf %56, %57 : vector<4x128xf32>
    %c0_37 = arith.constant 0 : index
    %c1_38 = arith.constant 1 : index
    %c0_39 = arith.constant 0 : index
    %59 = vector.load %arg26[%c0_37, %c1_38, %c0_39] : memref<2x8x128xf32, #tpu.memory_space<vmem>>, vector<1x4x128xf32>
    %60 = vector.shape_cast %59 : vector<1x4x128xf32> to vector<4x128xf32>
    %61 = vector.shape_cast %58 : vector<4x128xf32> to vector<1x4x128xf32>
    tpu.vector_store %arg26[%c0_37, %c1_38, %c0_39], %61 {strides = array<i32>} : memref<2x8x128xf32, #tpu.memory_space<vmem>>, vector<1x4x128xf32>,
    %c1_40 = arith.constant 1 : index
    %c0_41 = arith.constant 0 : index
    %c0_42 = arith.constant 0 : index
    %62 = vector.load %arg26[%c1_40, %c0_41, %c0_42] : memref<2x8x128xf32, #tpu.memory_space<vmem>>, vector<1x1x128xf32>
    %63 = vector.shape_cast %62 : vector<1x1x128xf32> to vector<1x128xf32>
    %64 = vector.extract_strided_slice %43 {offsets = [1, 0], sizes = [1, 128], strides = [1, 1]} : vector<2x128xf32> to vector<1x128xf32>
    %65 = arith.addf %63, %64 : vector<1x128xf32>
    %c1_43 = arith.constant 1 : index
    %c0_44 = arith.constant 0 : index
    %c0_45 = arith.constant 0 : index
    %66 = vector.load %arg26[%c1_43, %c0_44, %c0_45] : memref<2x8x128xf32, #tpu.memory_space<vmem>>, vector<1x1x128xf32>
    %67 = vector.shape_cast %66 : vector<1x1x128xf32> to vector<1x128xf32>
    %68 = vector.shape_cast %65 : vector<1x128xf32> to vector<1x1x128xf32>
    tpu.vector_store %arg26[%c1_43, %c0_44, %c0_45], %68 {strides = array<i32>} : memref<2x8x128xf32, #tpu.memory_space<vmem>>, vector<1x1x128xf32>,
    %c1_46 = arith.constant 1 : index
    %c1_47 = arith.constant 1 : index
    %c0_48 = arith.constant 0 : index
    %69 = vector.load %arg26[%c1_46, %c1_47, %c0_48] : memref<2x8x128xf32, #tpu.memory_space<vmem>>, vector<1x4x128xf32>
    %70 = vector.shape_cast %69 : vector<1x4x128xf32> to vector<4x128xf32>
    %71 = vector.extract_strided_slice %5 {offsets = [4, 0], sizes = [4, 128], strides = [1, 1]} : vector<8x128xf32> to vector<4x128xf32>
    %72 = arith.addf %70, %71 : vector<4x128xf32>
    %c1_49 = arith.constant 1 : index
    %c1_50 = arith.constant 1 : index
    %c0_51 = arith.constant 0 : index
    %73 = vector.load %arg26[%c1_49, %c1_50, %c0_51] : memref<2x8x128xf32, #tpu.memory_space<vmem>>, vector<1x4x128xf32>
    %74 = vector.shape_cast %73 : vector<1x4x128xf32> to vector<4x128xf32>
    %75 = vector.shape_cast %72 : vector<4x128xf32> to vector<1x4x128xf32>
    tpu.vector_store %arg26[%c1_49, %c1_50, %c0_51], %75 {strides = array<i32>} : memref<2x8x128xf32, #tpu.memory_space<vmem>>, vector<1x4x128xf32>,
    %c0_52 = arith.constant 0 : index
    %c0_53 = arith.constant 0 : index
    %c0_54 = arith.constant 0 : index
    %76 = vector.load %arg26[%c0_52, %c0_53, %c0_54] : memref<2x8x128xf32, #tpu.memory_space<vmem>>, vector<2x8x128xf32>
    %77 = vector.shape_cast %76 : vector<2x8x128xf32> to vector<16x128xf32>
    %78 = tpu.iota {dimensions = array<i32: 2>} : vector<2x8x8xi32>
    %c5_i32 = arith.constant 5 : i32
    %79 = vector.broadcast %c5_i32 : i32 to vector<2x8x8xi32>
    %80 = arith.cmpi sge, %78, %79 : vector<2x8x8xi32>
    %81 = arith.extui %80 : vector<2x8x8xi1> to vector<2x8x8xi32>
    %82 = arith.sitofp %81 : vector<2x8x8xi32> to vector<2x8x8xf32>
    %cst_55 = arith.constant -1.000000e+30 : f32
    %83 = vector.broadcast %cst_55 : f32 to vector<2x8x8xf32>
    %84 = arith.mulf %83, %82 : vector<2x8x8xf32>
    %c0_56 = arith.constant 0 : index
    %c0_57 = arith.constant 0 : index
    %c0_58 = arith.constant 0 : index
    %85 = vector.load %arg9[%c0_56, %c0_57, %c0_58] : memref<2x1x128xf32, #tpu.memory_space<vmem>>, vector<1x1x128xf32>
    %86 = vector.shape_cast %85 : vector<1x1x128xf32> to vector<1x128xf32>
    %c0_59 = arith.constant 0 : index
    %c0_60 = arith.constant 0 : index
    %c0_61 = arith.constant 0 : index
    %87 = vector.load %arg10[%c0_59, %c0_60, %c0_61] : memref<2x1x128xf32, #tpu.memory_space<vmem>>, vector<1x1x128xf32>
    %88 = vector.shape_cast %87 : vector<1x1x128xf32> to vector<1x128xf32>
    %cst_62 = arith.constant dense<0.000000e+00> : vector<16xf32>
    %89 = vector.multi_reduction <add>, %77, %cst_62 [1] : vector<16x128xf32> to vector<16xf32>
    %90 = vector.shape_cast %89 : vector<16xf32> to vector<16x1xf32>
    %cst_63 = arith.constant 1.280000e+02 : f32
    %91 = vector.broadcast %cst_63 : f32 to vector<16x1xf32>
    %92 = arith.divf %90, %91 : vector<16x1xf32>
    %93 = vector.broadcast %92 : vector<16x1xf32> to vector<16x128xf32>
    %94 = arith.subf %77, %93 : vector<16x128xf32>
    %95 = arith.mulf %94, %94 : vector<16x128xf32>
    %cst_64 = arith.constant dense<0.000000e+00> : vector<16xf32>
    %96 = vector.multi_reduction <add>, %95, %cst_64 [1] : vector<16x128xf32> to vector<16xf32>
    %97 = vector.shape_cast %96 : vector<16xf32> to vector<16x1xf32>
    %cst_65 = arith.constant 1.280000e+02 : f32
    %98 = vector.broadcast %cst_65 : f32 to vector<16x1xf32>
    %99 = arith.divf %97, %98 : vector<16x1xf32>
    %cst_66 = arith.constant 9.99999997E-7 : f32
    %100 = vector.broadcast %cst_66 : f32 to vector<16x1xf32>
    %101 = arith.addf %99, %100 : vector<16x1xf32>
    %102 = math.rsqrt %101 : vector<16x1xf32>
    %103 = vector.broadcast %102 : vector<16x1xf32> to vector<16x128xf32>
    %104 = arith.mulf %94, %103 : vector<16x128xf32>
    %105 = vector.broadcast %86 : vector<1x128xf32> to vector<16x128xf32>
    %106 = arith.mulf %104, %105 : vector<16x128xf32>
    %107 = vector.broadcast %88 : vector<1x128xf32> to vector<16x128xf32>
    %108 = arith.addf %106, %107 : vector<16x128xf32>
    %c0_67 = arith.constant 0 : index
    %c0_68 = arith.constant 0 : index
    %c0_69 = arith.constant 0 : index
    %109 = vector.load %arg11[%c0_67, %c0_68, %c0_69] : memref<2x128x384xf32, #tpu.memory_space<vmem>>, vector<1x128x384xf32>
    %110 = vector.shape_cast %109 : vector<1x128x384xf32> to vector<128x384xf32>
    %cst_70 = arith.constant dense<0.000000e+00> : vector<16x384xf32>
    %111 = tpu.matmul %108, %110, %cst_70 {dimension_numbers = #tpu.dot_dimension_numbers<[1], [0], [0], [1], [0, 0, 1, 1], [], []>} : vector<16x128xf32>, vector<128x384xf32>, vector<16x384xf32> -> vector<16x384xf32>
    %c0_71 = arith.constant 0 : index
    %c0_72 = arith.constant 0 : index
    %c0_73 = arith.constant 0 : index
    %112 = vector.load %arg12[%c0_71, %c0_72, %c0_73] : memref<2x1x384xf32, #tpu.memory_space<vmem>>, vector<1x1x384xf32>
    %113 = vector.shape_cast %112 : vector<1x1x384xf32> to vector<1x384xf32>
    %114 = vector.broadcast %113 : vector<1x384xf32> to vector<16x384xf32>
    %115 = arith.addf %111, %114 : vector<16x384xf32>
    %c0_74 = arith.constant 0 : index
    %c0_75 = arith.constant 0 : index
    %c0_76 = arith.constant 0 : index
    %116 = vector.load %arg13[%c0_74, %c0_75, %c0_76] : memref<2x128x128xf32, #tpu.memory_space<vmem>>, vector<1x128x128xf32>
    %117 = vector.shape_cast %116 : vector<1x128x128xf32> to vector<128x128xf32>
    %cst_77 = arith.constant 0.000000e+00 : f32
    %118 = vector.broadcast %cst_77 : f32 to vector<16x128xf32>
    %119 = vector.extract_strided_slice %115 {offsets = [0, 0], sizes = [16, 32], strides = [1, 1]} : vector<16x384xf32> to vector<16x32xf32>
    %120 = vector.shape_cast %119 : vector<16x32xf32> to vector<2x8x32xf32>
    %121 = vector.extract_strided_slice %115 {offsets = [0, 128], sizes = [16, 32], strides = [1, 1]} : vector<16x384xf32> to vector<16x32xf32>
    %122 = vector.shape_cast %121 : vector<16x32xf32> to vector<2x8x32xf32>
    %123 = vector.extract_strided_slice %115 {offsets = [0, 256], sizes = [16, 32], strides = [1, 1]} : vector<16x384xf32> to vector<16x32xf32>
    %124 = vector.shape_cast %123 : vector<16x32xf32> to vector<2x8x32xf32>
    "tpu.trace_start"() <{level = 10 : i32, message = "bqd,bkd->bqk"}> : () -> ()
    %cst_78 = arith.constant dense<0.000000e+00> : vector<2x8x8xf32>
    %125 = tpu.matmul %120, %122, %cst_78 {dimension_numbers = #tpu.dot_dimension_numbers<[2], [2], [1], [1], [0, 0, 0, 1, 1, 1], [0], [0]>} : vector<2x8x32xf32>, vector<2x8x32xf32>, vector<2x8x8xf32> -> vector<2x8x8xf32>
    "tpu.trace_stop"() : () -> ()
    %126 = arith.addf %125, %84 : vector<2x8x8xf32>
    %cst_79 = arith.constant dense<0xFF800000> : vector<2x8xf32>
    %127 = vector.multi_reduction <maximumf>, %126, %cst_79 [2] : vector<2x8x8xf32> to vector<2x8xf32>
    %128 = vector.shape_cast %127 : vector<2x8xf32> to vector<2x8x1xf32>
    %129 = vector.broadcast %128 : vector<2x8x1xf32> to vector<2x8x8xf32>
    %130 = arith.subf %126, %129 : vector<2x8x8xf32>
    %131 = math.exp %130 : vector<2x8x8xf32>
    %cst_80 = arith.constant dense<0.000000e+00> : vector<2x8xf32>
    %132 = vector.multi_reduction <add>, %131, %cst_80 [2] : vector<2x8x8xf32> to vector<2x8xf32>
    %133 = vector.shape_cast %132 : vector<2x8xf32> to vector<2x8x1xf32>
    %134 = vector.broadcast %133 : vector<2x8x1xf32> to vector<2x8x8xf32>
    %135 = arith.divf %131, %134 : vector<2x8x8xf32>
    "tpu.trace_start"() <{level = 10 : i32, message = "bqk,bkd->bqd"}> : () -> ()
    %cst_81 = arith.constant dense<0.000000e+00> : vector<2x8x32xf32>
    %136 = tpu.matmul %135, %124, %cst_81 {dimension_numbers = #tpu.dot_dimension_numbers<[2], [1], [1], [2], [0, 0, 0, 1, 1, 2], [0], [0]>} : vector<2x8x8xf32>, vector<2x8x32xf32>, vector<2x8x32xf32> -> vector<2x8x32xf32>
    "tpu.trace_stop"() : () -> ()
    %137 = vector.shape_cast %136 : vector<2x8x32xf32> to vector<16x32xf32>
    %138 = vector.extract_strided_slice %117 {offsets = [0, 0], sizes = [32, 128], strides = [1, 1]} : vector<128x128xf32> to vector<32x128xf32>
    %cst_82 = arith.constant dense<0.000000e+00> : vector<16x128xf32>
    %139 = tpu.matmul %137, %138, %cst_82 {dimension_numbers = #tpu.dot_dimension_numbers<[1], [0], [0], [1], [0, 0, 1, 1], [], []>} : vector<16x32xf32>, vector<32x128xf32>, vector<16x128xf32> -> vector<16x128xf32>
    %140 = arith.addf %118, %139 : vector<16x128xf32>
    %141 = vector.extract_strided_slice %115 {offsets = [0, 32], sizes = [16, 32], strides = [1, 1]} : vector<16x384xf32> to vector<16x32xf32>
    %142 = vector.shape_cast %141 : vector<16x32xf32> to vector<2x8x32xf32>
    %143 = vector.extract_strided_slice %115 {offsets = [0, 160], sizes = [16, 32], strides = [1, 1]} : vector<16x384xf32> to vector<16x32xf32>
    %144 = vector.shape_cast %143 : vector<16x32xf32> to vector<2x8x32xf32>
    %145 = vector.extract_strided_slice %115 {offsets = [0, 288], sizes = [16, 32], strides = [1, 1]} : vector<16x384xf32> to vector<16x32xf32>
    %146 = vector.shape_cast %145 : vector<16x32xf32> to vector<2x8x32xf32>
    "tpu.trace_start"() <{level = 10 : i32, message = "bqd,bkd->bqk"}> : () -> ()
    %cst_83 = arith.constant dense<0.000000e+00> : vector<2x8x8xf32>
    %147 = tpu.matmul %142, %144, %cst_83 {dimension_numbers = #tpu.dot_dimension_numbers<[2], [2], [1], [1], [0, 0, 0, 1, 1, 1], [0], [0]>} : vector<2x8x32xf32>, vector<2x8x32xf32>, vector<2x8x8xf32> -> vector<2x8x8xf32>
    "tpu.trace_stop"() : () -> ()
    %148 = arith.addf %147, %84 : vector<2x8x8xf32>
    %cst_84 = arith.constant dense<0xFF800000> : vector<2x8xf32>
    %149 = vector.multi_reduction <maximumf>, %148, %cst_84 [2] : vector<2x8x8xf32> to vector<2x8xf32>
    %150 = vector.shape_cast %149 : vector<2x8xf32> to vector<2x8x1xf32>
    %151 = vector.broadcast %150 : vector<2x8x1xf32> to vector<2x8x8xf32>
    %152 = arith.subf %148, %151 : vector<2x8x8xf32>
    %153 = math.exp %152 : vector<2x8x8xf32>
    %cst_85 = arith.constant dense<0.000000e+00> : vector<2x8xf32>
    %154 = vector.multi_reduction <add>, %153, %cst_85 [2] : vector<2x8x8xf32> to vector<2x8xf32>
    %155 = vector.shape_cast %154 : vector<2x8xf32> to vector<2x8x1xf32>
    %156 = vector.broadcast %155 : vector<2x8x1xf32> to vector<2x8x8xf32>
    %157 = arith.divf %153, %156 : vector<2x8x8xf32>
    "tpu.trace_start"() <{level = 10 : i32, message = "bqk,bkd->bqd"}> : () -> ()
    %cst_86 = arith.constant dense<0.000000e+00> : vector<2x8x32xf32>
    %158 = tpu.matmul %157, %146, %cst_86 {dimension_numbers = #tpu.dot_dimension_numbers<[2], [1], [1], [2], [0, 0, 0, 1, 1, 2], [0], [0]>} : vector<2x8x8xf32>, vector<2x8x32xf32>, vector<2x8x32xf32> -> vector<2x8x32xf32>
    "tpu.trace_stop"() : () -> ()
    %159 = vector.shape_cast %158 : vector<2x8x32xf32> to vector<16x32xf32>
    %160 = vector.extract_strided_slice %117 {offsets = [32, 0], sizes = [32, 128], strides = [1, 1]} : vector<128x128xf32> to vector<32x128xf32>
    %cst_87 = arith.constant dense<0.000000e+00> : vector<16x128xf32>
    %161 = tpu.matmul %159, %160, %cst_87 {dimension_numbers = #tpu.dot_dimension_numbers<[1], [0], [0], [1], [0, 0, 1, 1], [], []>} : vector<16x32xf32>, vector<32x128xf32>, vector<16x128xf32> -> vector<16x128xf32>
    %162 = arith.addf %140, %161 : vector<16x128xf32>
    %163 = vector.extract_strided_slice %115 {offsets = [0, 64], sizes = [16, 32], strides = [1, 1]} : vector<16x384xf32> to vector<16x32xf32>
    %164 = vector.shape_cast %163 : vector<16x32xf32> to vector<2x8x32xf32>
    %165 = vector.extract_strided_slice %115 {offsets = [0, 192], sizes = [16, 32], strides = [1, 1]} : vector<16x384xf32> to vector<16x32xf32>
    %166 = vector.shape_cast %165 : vector<16x32xf32> to vector<2x8x32xf32>
    %167 = vector.extract_strided_slice %115 {offsets = [0, 320], sizes = [16, 32], strides = [1, 1]} : vector<16x384xf32> to vector<16x32xf32>
    %168 = vector.shape_cast %167 : vector<16x32xf32> to vector<2x8x32xf32>
    "tpu.trace_start"() <{level = 10 : i32, message = "bqd,bkd->bqk"}> : () -> ()
    %cst_88 = arith.constant dense<0.000000e+00> : vector<2x8x8xf32>
    %169 = tpu.matmul %164, %166, %cst_88 {dimension_numbers = #tpu.dot_dimension_numbers<[2], [2], [1], [1], [0, 0, 0, 1, 1, 1], [0], [0]>} : vector<2x8x32xf32>, vector<2x8x32xf32>, vector<2x8x8xf32> -> vector<2x8x8xf32>
    "tpu.trace_stop"() : () -> ()
    %170 = arith.addf %169, %84 : vector<2x8x8xf32>
    %cst_89 = arith.constant dense<0xFF800000> : vector<2x8xf32>
    %171 = vector.multi_reduction <maximumf>, %170, %cst_89 [2] : vector<2x8x8xf32> to vector<2x8xf32>
    %172 = vector.shape_cast %171 : vector<2x8xf32> to vector<2x8x1xf32>
    %173 = vector.broadcast %172 : vector<2x8x1xf32> to vector<2x8x8xf32>
    %174 = arith.subf %170, %173 : vector<2x8x8xf32>
    %175 = math.exp %174 : vector<2x8x8xf32>
    %cst_90 = arith.constant dense<0.000000e+00> : vector<2x8xf32>
    %176 = vector.multi_reduction <add>, %175, %cst_90 [2] : vector<2x8x8xf32> to vector<2x8xf32>
    %177 = vector.shape_cast %176 : vector<2x8xf32> to vector<2x8x1xf32>
    %178 = vector.broadcast %177 : vector<2x8x1xf32> to vector<2x8x8xf32>
    %179 = arith.divf %175, %178 : vector<2x8x8xf32>
    "tpu.trace_start"() <{level = 10 : i32, message = "bqk,bkd->bqd"}> : () -> ()
    %cst_91 = arith.constant dense<0.000000e+00> : vector<2x8x32xf32>
    %180 = tpu.matmul %179, %168, %cst_91 {dimension_numbers = #tpu.dot_dimension_numbers<[2], [1], [1], [2], [0, 0, 0, 1, 1, 2], [0], [0]>} : vector<2x8x8xf32>, vector<2x8x32xf32>, vector<2x8x32xf32> -> vector<2x8x32xf32>
    "tpu.trace_stop"() : () -> ()
    %181 = vector.shape_cast %180 : vector<2x8x32xf32> to vector<16x32xf32>
    %182 = vector.extract_strided_slice %117 {offsets = [64, 0], sizes = [32, 128], strides = [1, 1]} : vector<128x128xf32> to vector<32x128xf32>
    %cst_92 = arith.constant dense<0.000000e+00> : vector<16x128xf32>
    %183 = tpu.matmul %181, %182, %cst_92 {dimension_numbers = #tpu.dot_dimension_numbers<[1], [0], [0], [1], [0, 0, 1, 1], [], []>} : vector<16x32xf32>, vector<32x128xf32>, vector<16x128xf32> -> vector<16x128xf32>
    %184 = arith.addf %162, %183 : vector<16x128xf32>
    %185 = vector.extract_strided_slice %115 {offsets = [0, 96], sizes = [16, 32], strides = [1, 1]} : vector<16x384xf32> to vector<16x32xf32>
    %186 = vector.shape_cast %185 : vector<16x32xf32> to vector<2x8x32xf32>
    %187 = vector.extract_strided_slice %115 {offsets = [0, 224], sizes = [16, 32], strides = [1, 1]} : vector<16x384xf32> to vector<16x32xf32>
    %188 = vector.shape_cast %187 : vector<16x32xf32> to vector<2x8x32xf32>
    %189 = vector.extract_strided_slice %115 {offsets = [0, 352], sizes = [16, 32], strides = [1, 1]} : vector<16x384xf32> to vector<16x32xf32>
    %190 = vector.shape_cast %189 : vector<16x32xf32> to vector<2x8x32xf32>
    "tpu.trace_start"() <{level = 10 : i32, message = "bqd,bkd->bqk"}> : () -> ()
    %cst_93 = arith.constant dense<0.000000e+00> : vector<2x8x8xf32>
    %191 = tpu.matmul %186, %188, %cst_93 {dimension_numbers = #tpu.dot_dimension_numbers<[2], [2], [1], [1], [0, 0, 0, 1, 1, 1], [0], [0]>} : vector<2x8x32xf32>, vector<2x8x32xf32>, vector<2x8x8xf32> -> vector<2x8x8xf32>
    "tpu.trace_stop"() : () -> ()
    %192 = arith.addf %191, %84 : vector<2x8x8xf32>
    %cst_94 = arith.constant dense<0xFF800000> : vector<2x8xf32>
    %193 = vector.multi_reduction <maximumf>, %192, %cst_94 [2] : vector<2x8x8xf32> to vector<2x8xf32>
    %194 = vector.shape_cast %193 : vector<2x8xf32> to vector<2x8x1xf32>
    %195 = vector.broadcast %194 : vector<2x8x1xf32> to vector<2x8x8xf32>
    %196 = arith.subf %192, %195 : vector<2x8x8xf32>
    %197 = math.exp %196 : vector<2x8x8xf32>
    %cst_95 = arith.constant dense<0.000000e+00> : vector<2x8xf32>
    %198 = vector.multi_reduction <add>, %197, %cst_95 [2] : vector<2x8x8xf32> to vector<2x8xf32>
    %199 = vector.shape_cast %198 : vector<2x8xf32> to vector<2x8x1xf32>
    %200 = vector.broadcast %199 : vector<2x8x1xf32> to vector<2x8x8xf32>
    %201 = arith.divf %197, %200 : vector<2x8x8xf32>
    "tpu.trace_start"() <{level = 10 : i32, message = "bqk,bkd->bqd"}> : () -> ()
    %cst_96 = arith.constant dense<0.000000e+00> : vector<2x8x32xf32>
    %202 = tpu.matmul %201, %190, %cst_96 {dimension_numbers = #tpu.dot_dimension_numbers<[2], [1], [1], [2], [0, 0, 0, 1, 1, 2], [0], [0]>} : vector<2x8x8xf32>, vector<2x8x32xf32>, vector<2x8x32xf32> -> vector<2x8x32xf32>
    "tpu.trace_stop"() : () -> ()
    %203 = vector.shape_cast %202 : vector<2x8x32xf32> to vector<16x32xf32>
    %204 = vector.extract_strided_slice %117 {offsets = [96, 0], sizes = [32, 128], strides = [1, 1]} : vector<128x128xf32> to vector<32x128xf32>
    %cst_97 = arith.constant dense<0.000000e+00> : vector<16x128xf32>
    %205 = tpu.matmul %203, %204, %cst_97 {dimension_numbers = #tpu.dot_dimension_numbers<[1], [0], [0], [1], [0, 0, 1, 1], [], []>} : vector<16x32xf32>, vector<32x128xf32>, vector<16x128xf32> -> vector<16x128xf32>
    %206 = arith.addf %184, %205 : vector<16x128xf32>
    %207 = arith.addf %77, %206 : vector<16x128xf32>
    %c0_98 = arith.constant 0 : index
    %c0_99 = arith.constant 0 : index
    %c0_100 = arith.constant 0 : index
    %208 = vector.load %arg14[%c0_98, %c0_99, %c0_100] : memref<2x1x128xf32, #tpu.memory_space<vmem>>, vector<1x1x128xf32>
    %209 = vector.shape_cast %208 : vector<1x1x128xf32> to vector<1x128xf32>
    %210 = vector.broadcast %209 : vector<1x128xf32> to vector<16x128xf32>
    %211 = arith.addf %207, %210 : vector<16x128xf32>
    %c0_101 = arith.constant 0 : index
    %c0_102 = arith.constant 0 : index
    %c0_103 = arith.constant 0 : index
    %212 = vector.load %arg15[%c0_101, %c0_102, %c0_103] : memref<2x1x128xf32, #tpu.memory_space<vmem>>, vector<1x1x128xf32>
    %213 = vector.shape_cast %212 : vector<1x1x128xf32> to vector<1x128xf32>
    %c0_104 = arith.constant 0 : index
    %c0_105 = arith.constant 0 : index
    %c0_106 = arith.constant 0 : index
    %214 = vector.load %arg16[%c0_104, %c0_105, %c0_106] : memref<2x1x128xf32, #tpu.memory_space<vmem>>, vector<1x1x128xf32>
    %215 = vector.shape_cast %214 : vector<1x1x128xf32> to vector<1x128xf32>
    %cst_107 = arith.constant dense<0.000000e+00> : vector<16xf32>
    %216 = vector.multi_reduction <add>, %211, %cst_107 [1] : vector<16x128xf32> to vector<16xf32>
    %217 = vector.shape_cast %216 : vector<16xf32> to vector<16x1xf32>
    %cst_108 = arith.constant 1.280000e+02 : f32
    %218 = vector.broadcast %cst_108 : f32 to vector<16x1xf32>
    %219 = arith.divf %217, %218 : vector<16x1xf32>
    %220 = vector.broadcast %219 : vector<16x1xf32> to vector<16x128xf32>
    %221 = arith.subf %211, %220 : vector<16x128xf32>
    %222 = arith.mulf %221, %221 : vector<16x128xf32>
    %cst_109 = arith.constant dense<0.000000e+00> : vector<16xf32>
    %223 = vector.multi_reduction <add>, %222, %cst_109 [1] : vector<16x128xf32> to vector<16xf32>
    %224 = vector.shape_cast %223 : vector<16xf32> to vector<16x1xf32>
    %cst_110 = arith.constant 1.280000e+02 : f32
    %225 = vector.broadcast %cst_110 : f32 to vector<16x1xf32>
    %226 = arith.divf %224, %225 : vector<16x1xf32>
    %cst_111 = arith.constant 9.99999997E-7 : f32
    %227 = vector.broadcast %cst_111 : f32 to vector<16x1xf32>
    %228 = arith.addf %226, %227 : vector<16x1xf32>
    %229 = math.rsqrt %228 : vector<16x1xf32>
    %230 = vector.broadcast %229 : vector<16x1xf32> to vector<16x128xf32>
    %231 = arith.mulf %221, %230 : vector<16x128xf32>
    %232 = vector.broadcast %213 : vector<1x128xf32> to vector<16x128xf32>
    %233 = arith.mulf %231, %232 : vector<16x128xf32>
    %234 = vector.broadcast %215 : vector<1x128xf32> to vector<16x128xf32>
    %235 = arith.addf %233, %234 : vector<16x128xf32>
    %c0_112 = arith.constant 0 : index
    %c0_113 = arith.constant 0 : index
    %c0_114 = arith.constant 0 : index
    %236 = vector.load %arg17[%c0_112, %c0_113, %c0_114] : memref<2x128x512xf32, #tpu.memory_space<vmem>>, vector<1x128x512xf32>
    %237 = vector.shape_cast %236 : vector<1x128x512xf32> to vector<128x512xf32>
    %cst_115 = arith.constant dense<0.000000e+00> : vector<16x512xf32>
    %238 = tpu.matmul %235, %237, %cst_115 {dimension_numbers = #tpu.dot_dimension_numbers<[1], [0], [0], [1], [0, 0, 1, 1], [], []>} : vector<16x128xf32>, vector<128x512xf32>, vector<16x512xf32> -> vector<16x512xf32>
    %c0_116 = arith.constant 0 : index
    %c0_117 = arith.constant 0 : index
    %c0_118 = arith.constant 0 : index
    %239 = vector.load %arg18[%c0_116, %c0_117, %c0_118] : memref<2x1x512xf32, #tpu.memory_space<vmem>>, vector<1x1x512xf32>
    %240 = vector.shape_cast %239 : vector<1x1x512xf32> to vector<1x512xf32>
    %241 = vector.broadcast %240 : vector<1x512xf32> to vector<16x512xf32>
    %242 = arith.addf %238, %241 : vector<16x512xf32>
    %cst_119 = arith.constant 5.000000e-01 : f32
    %243 = vector.broadcast %cst_119 : f32 to vector<16x512xf32>
    %244 = arith.mulf %243, %242 : vector<16x512xf32>
    %cst_120 = arith.constant 0.707106769 : f32
    %245 = vector.broadcast %cst_120 : f32 to vector<16x512xf32>
    %246 = arith.mulf %242, %245 : vector<16x512xf32>
    %247 = math.erf %246 : vector<16x512xf32>
    %cst_121 = arith.constant 1.000000e+00 : f32
    %248 = vector.broadcast %cst_121 : f32 to vector<16x512xf32>
    %249 = arith.addf %248, %247 : vector<16x512xf32>
    %250 = arith.mulf %244, %249 : vector<16x512xf32>
    %c0_122 = arith.constant 0 : index
    %c0_123 = arith.constant 0 : index
    %c0_124 = arith.constant 0 : index
    %251 = vector.load %arg19[%c0_122, %c0_123, %c0_124] : memref<2x512x128xf32, #tpu.memory_space<vmem>>, vector<1x512x128xf32>
    %252 = vector.shape_cast %251 : vector<1x512x128xf32> to vector<512x128xf32>
    %cst_125 = arith.constant dense<0.000000e+00> : vector<16x128xf32>
    %253 = tpu.matmul %250, %252, %cst_125 {dimension_numbers = #tpu.dot_dimension_numbers<[1], [0], [0], [1], [0, 0, 1, 1], [], []>} : vector<16x512xf32>, vector<512x128xf32>, vector<16x128xf32> -> vector<16x128xf32>
    %c0_126 = arith.constant 0 : index
    %c0_127 = arith.constant 0 : index
    %c0_128 = arith.constant 0 : index
    %254 = vector.load %arg20[%c0_126, %c0_127, %c0_128] : memref<2x1x128xf32, #tpu.memory_space<vmem>>, vector<1x1x128xf32>
    %255 = vector.shape_cast %254 : vector<1x1x128xf32> to vector<1x128xf32>
    %256 = vector.broadcast %255 : vector<1x128xf32> to vector<16x128xf32>
    %257 = arith.addf %253, %256 : vector<16x128xf32>
    %258 = arith.addf %211, %257 : vector<16x128xf32>
    %c1_129 = arith.constant 1 : index
    %c0_130 = arith.constant 0 : index
    %c0_131 = arith.constant 0 : index
    %259 = vector.load %arg9[%c1_129, %c0_130, %c0_131] : memref<2x1x128xf32, #tpu.memory_space<vmem>>, vector<1x1x128xf32>
    %260 = vector.shape_cast %259 : vector<1x1x128xf32> to vector<1x128xf32>
    %c1_132 = arith.constant 1 : index
    %c0_133 = arith.constant 0 : index
    %c0_134 = arith.constant 0 : index
    %261 = vector.load %arg10[%c1_132, %c0_133, %c0_134] : memref<2x1x128xf32, #tpu.memory_space<vmem>>, vector<1x1x128xf32>
    %262 = vector.shape_cast %261 : vector<1x1x128xf32> to vector<1x128xf32>
    %cst_135 = arith.constant dense<0.000000e+00> : vector<16xf32>
    %263 = vector.multi_reduction <add>, %258, %cst_135 [1] : vector<16x128xf32> to vector<16xf32>
    %264 = vector.shape_cast %263 : vector<16xf32> to vector<16x1xf32>
    %cst_136 = arith.constant 1.280000e+02 : f32
    %265 = vector.broadcast %cst_136 : f32 to vector<16x1xf32>
    %266 = arith.divf %264, %265 : vector<16x1xf32>
    %267 = vector.broadcast %266 : vector<16x1xf32> to vector<16x128xf32>
    %268 = arith.subf %258, %267 : vector<16x128xf32>
    %269 = arith.mulf %268, %268 : vector<16x128xf32>
    %cst_137 = arith.constant dense<0.000000e+00> : vector<16xf32>
    %270 = vector.multi_reduction <add>, %269, %cst_137 [1] : vector<16x128xf32> to vector<16xf32>
    %271 = vector.shape_cast %270 : vector<16xf32> to vector<16x1xf32>
    %cst_138 = arith.constant 1.280000e+02 : f32
    %272 = vector.broadcast %cst_138 : f32 to vector<16x1xf32>
    %273 = arith.divf %271, %272 : vector<16x1xf32>
    %cst_139 = arith.constant 9.99999997E-7 : f32
    %274 = vector.broadcast %cst_139 : f32 to vector<16x1xf32>
    %275 = arith.addf %273, %274 : vector<16x1xf32>
    %276 = math.rsqrt %275 : vector<16x1xf32>
    %277 = vector.broadcast %276 : vector<16x1xf32> to vector<16x128xf32>
    %278 = arith.mulf %268, %277 : vector<16x128xf32>
    %279 = vector.broadcast %260 : vector<1x128xf32> to vector<16x128xf32>
    %280 = arith.mulf %278, %279 : vector<16x128xf32>
    %281 = vector.broadcast %262 : vector<1x128xf32> to vector<16x128xf32>
    %282 = arith.addf %280, %281 : vector<16x128xf32>
    %c1_140 = arith.constant 1 : index
    %c0_141 = arith.constant 0 : index
    %c0_142 = arith.constant 0 : index
    %283 = vector.load %arg11[%c1_140, %c0_141, %c0_142] : memref<2x128x384xf32, #tpu.memory_space<vmem>>, vector<1x128x384xf32>
    %284 = vector.shape_cast %283 : vector<1x128x384xf32> to vector<128x384xf32>
    %cst_143 = arith.constant dense<0.000000e+00> : vector<16x384xf32>
    %285 = tpu.matmul %282, %284, %cst_143 {dimension_numbers = #tpu.dot_dimension_numbers<[1], [0], [0], [1], [0, 0, 1, 1], [], []>} : vector<16x128xf32>, vector<128x384xf32>, vector<16x384xf32> -> vector<16x384xf32>
    %c1_144 = arith.constant 1 : index
    %c0_145 = arith.constant 0 : index
    %c0_146 = arith.constant 0 : index
    %286 = vector.load %arg12[%c1_144, %c0_145, %c0_146] : memref<2x1x384xf32, #tpu.memory_space<vmem>>, vector<1x1x384xf32>
    %287 = vector.shape_cast %286 : vector<1x1x384xf32> to vector<1x384xf32>
    %288 = vector.broadcast %287 : vector<1x384xf32> to vector<16x384xf32>
    %289 = arith.addf %285, %288 : vector<16x384xf32>
    %c1_147 = arith.constant 1 : index
    %c0_148 = arith.constant 0 : index
    %c0_149 = arith.constant 0 : index
    %290 = vector.load %arg13[%c1_147, %c0_148, %c0_149] : memref<2x128x128xf32, #tpu.memory_space<vmem>>, vector<1x128x128xf32>
    %291 = vector.shape_cast %290 : vector<1x128x128xf32> to vector<128x128xf32>
    %cst_150 = arith.constant 0.000000e+00 : f32
    %292 = vector.broadcast %cst_150 : f32 to vector<16x128xf32>
    %293 = vector.extract_strided_slice %289 {offsets = [0, 0], sizes = [16, 32], strides = [1, 1]} : vector<16x384xf32> to vector<16x32xf32>
    %294 = vector.shape_cast %293 : vector<16x32xf32> to vector<2x8x32xf32>
    %295 = vector.extract_strided_slice %289 {offsets = [0, 128], sizes = [16, 32], strides = [1, 1]} : vector<16x384xf32> to vector<16x32xf32>
    %296 = vector.shape_cast %295 : vector<16x32xf32> to vector<2x8x32xf32>
    %297 = vector.extract_strided_slice %289 {offsets = [0, 256], sizes = [16, 32], strides = [1, 1]} : vector<16x384xf32> to vector<16x32xf32>
    %298 = vector.shape_cast %297 : vector<16x32xf32> to vector<2x8x32xf32>
    "tpu.trace_start"() <{level = 10 : i32, message = "bqd,bkd->bqk"}> : () -> ()
    %cst_151 = arith.constant dense<0.000000e+00> : vector<2x8x8xf32>
    %299 = tpu.matmul %294, %296, %cst_151 {dimension_numbers = #tpu.dot_dimension_numbers<[2], [2], [1], [1], [0, 0, 0, 1, 1, 1], [0], [0]>} : vector<2x8x32xf32>, vector<2x8x32xf32>, vector<2x8x8xf32> -> vector<2x8x8xf32>
    "tpu.trace_stop"() : () -> ()
    %300 = arith.addf %299, %84 : vector<2x8x8xf32>
    %cst_152 = arith.constant dense<0xFF800000> : vector<2x8xf32>
    %301 = vector.multi_reduction <maximumf>, %300, %cst_152 [2] : vector<2x8x8xf32> to vector<2x8xf32>
    %302 = vector.shape_cast %301 : vector<2x8xf32> to vector<2x8x1xf32>
    %303 = vector.broadcast %302 : vector<2x8x1xf32> to vector<2x8x8xf32>
    %304 = arith.subf %300, %303 : vector<2x8x8xf32>
    %305 = math.exp %304 : vector<2x8x8xf32>
    %cst_153 = arith.constant dense<0.000000e+00> : vector<2x8xf32>
    %306 = vector.multi_reduction <add>, %305, %cst_153 [2] : vector<2x8x8xf32> to vector<2x8xf32>
    %307 = vector.shape_cast %306 : vector<2x8xf32> to vector<2x8x1xf32>
    %308 = vector.broadcast %307 : vector<2x8x1xf32> to vector<2x8x8xf32>
    %309 = arith.divf %305, %308 : vector<2x8x8xf32>
    "tpu.trace_start"() <{level = 10 : i32, message = "bqk,bkd->bqd"}> : () -> ()
    %cst_154 = arith.constant dense<0.000000e+00> : vector<2x8x32xf32>
    %310 = tpu.matmul %309, %298, %cst_154 {dimension_numbers = #tpu.dot_dimension_numbers<[2], [1], [1], [2], [0, 0, 0, 1, 1, 2], [0], [0]>} : vector<2x8x8xf32>, vector<2x8x32xf32>, vector<2x8x32xf32> -> vector<2x8x32xf32>
    "tpu.trace_stop"() : () -> ()
    %311 = vector.shape_cast %310 : vector<2x8x32xf32> to vector<16x32xf32>
    %312 = vector.extract_strided_slice %291 {offsets = [0, 0], sizes = [32, 128], strides = [1, 1]} : vector<128x128xf32> to vector<32x128xf32>
    %cst_155 = arith.constant dense<0.000000e+00> : vector<16x128xf32>
    %313 = tpu.matmul %311, %312, %cst_155 {dimension_numbers = #tpu.dot_dimension_numbers<[1], [0], [0], [1], [0, 0, 1, 1], [], []>} : vector<16x32xf32>, vector<32x128xf32>, vector<16x128xf32> -> vector<16x128xf32>
    %314 = arith.addf %292, %313 : vector<16x128xf32>
    %315 = vector.extract_strided_slice %289 {offsets = [0, 32], sizes = [16, 32], strides = [1, 1]} : vector<16x384xf32> to vector<16x32xf32>
    %316 = vector.shape_cast %315 : vector<16x32xf32> to vector<2x8x32xf32>
    %317 = vector.extract_strided_slice %289 {offsets = [0, 160], sizes = [16, 32], strides = [1, 1]} : vector<16x384xf32> to vector<16x32xf32>
    %318 = vector.shape_cast %317 : vector<16x32xf32> to vector<2x8x32xf32>
    %319 = vector.extract_strided_slice %289 {offsets = [0, 288], sizes = [16, 32], strides = [1, 1]} : vector<16x384xf32> to vector<16x32xf32>
    %320 = vector.shape_cast %319 : vector<16x32xf32> to vector<2x8x32xf32>
    "tpu.trace_start"() <{level = 10 : i32, message = "bqd,bkd->bqk"}> : () -> ()
    %cst_156 = arith.constant dense<0.000000e+00> : vector<2x8x8xf32>
    %321 = tpu.matmul %316, %318, %cst_156 {dimension_numbers = #tpu.dot_dimension_numbers<[2], [2], [1], [1], [0, 0, 0, 1, 1, 1], [0], [0]>} : vector<2x8x32xf32>, vector<2x8x32xf32>, vector<2x8x8xf32> -> vector<2x8x8xf32>
    "tpu.trace_stop"() : () -> ()
    %322 = arith.addf %321, %84 : vector<2x8x8xf32>
    %cst_157 = arith.constant dense<0xFF800000> : vector<2x8xf32>
    %323 = vector.multi_reduction <maximumf>, %322, %cst_157 [2] : vector<2x8x8xf32> to vector<2x8xf32>
    %324 = vector.shape_cast %323 : vector<2x8xf32> to vector<2x8x1xf32>
    %325 = vector.broadcast %324 : vector<2x8x1xf32> to vector<2x8x8xf32>
    %326 = arith.subf %322, %325 : vector<2x8x8xf32>
    %327 = math.exp %326 : vector<2x8x8xf32>
    %cst_158 = arith.constant dense<0.000000e+00> : vector<2x8xf32>
    %328 = vector.multi_reduction <add>, %327, %cst_158 [2] : vector<2x8x8xf32> to vector<2x8xf32>
    %329 = vector.shape_cast %328 : vector<2x8xf32> to vector<2x8x1xf32>
    %330 = vector.broadcast %329 : vector<2x8x1xf32> to vector<2x8x8xf32>
    %331 = arith.divf %327, %330 : vector<2x8x8xf32>
    "tpu.trace_start"() <{level = 10 : i32, message = "bqk,bkd->bqd"}> : () -> ()
    %cst_159 = arith.constant dense<0.000000e+00> : vector<2x8x32xf32>
    %332 = tpu.matmul %331, %320, %cst_159 {dimension_numbers = #tpu.dot_dimension_numbers<[2], [1], [1], [2], [0, 0, 0, 1, 1, 2], [0], [0]>} : vector<2x8x8xf32>, vector<2x8x32xf32>, vector<2x8x32xf32> -> vector<2x8x32xf32>
    "tpu.trace_stop"() : () -> ()
    %333 = vector.shape_cast %332 : vector<2x8x32xf32> to vector<16x32xf32>
    %334 = vector.extract_strided_slice %291 {offsets = [32, 0], sizes = [32, 128], strides = [1, 1]} : vector<128x128xf32> to vector<32x128xf32>
    %cst_160 = arith.constant dense<0.000000e+00> : vector<16x128xf32>
    %335 = tpu.matmul %333, %334, %cst_160 {dimension_numbers = #tpu.dot_dimension_numbers<[1], [0], [0], [1], [0, 0, 1, 1], [], []>} : vector<16x32xf32>, vector<32x128xf32>, vector<16x128xf32> -> vector<16x128xf32>
    %336 = arith.addf %314, %335 : vector<16x128xf32>
    %337 = vector.extract_strided_slice %289 {offsets = [0, 64], sizes = [16, 32], strides = [1, 1]} : vector<16x384xf32> to vector<16x32xf32>
    %338 = vector.shape_cast %337 : vector<16x32xf32> to vector<2x8x32xf32>
    %339 = vector.extract_strided_slice %289 {offsets = [0, 192], sizes = [16, 32], strides = [1, 1]} : vector<16x384xf32> to vector<16x32xf32>
    %340 = vector.shape_cast %339 : vector<16x32xf32> to vector<2x8x32xf32>
    %341 = vector.extract_strided_slice %289 {offsets = [0, 320], sizes = [16, 32], strides = [1, 1]} : vector<16x384xf32> to vector<16x32xf32>
    %342 = vector.shape_cast %341 : vector<16x32xf32> to vector<2x8x32xf32>
    "tpu.trace_start"() <{level = 10 : i32, message = "bqd,bkd->bqk"}> : () -> ()
    %cst_161 = arith.constant dense<0.000000e+00> : vector<2x8x8xf32>
    %343 = tpu.matmul %338, %340, %cst_161 {dimension_numbers = #tpu.dot_dimension_numbers<[2], [2], [1], [1], [0, 0, 0, 1, 1, 1], [0], [0]>} : vector<2x8x32xf32>, vector<2x8x32xf32>, vector<2x8x8xf32> -> vector<2x8x8xf32>
    "tpu.trace_stop"() : () -> ()
    %344 = arith.addf %343, %84 : vector<2x8x8xf32>
    %cst_162 = arith.constant dense<0xFF800000> : vector<2x8xf32>
    %345 = vector.multi_reduction <maximumf>, %344, %cst_162 [2] : vector<2x8x8xf32> to vector<2x8xf32>
    %346 = vector.shape_cast %345 : vector<2x8xf32> to vector<2x8x1xf32>
    %347 = vector.broadcast %346 : vector<2x8x1xf32> to vector<2x8x8xf32>
    %348 = arith.subf %344, %347 : vector<2x8x8xf32>
    %349 = math.exp %348 : vector<2x8x8xf32>
    %cst_163 = arith.constant dense<0.000000e+00> : vector<2x8xf32>
    %350 = vector.multi_reduction <add>, %349, %cst_163 [2] : vector<2x8x8xf32> to vector<2x8xf32>
    %351 = vector.shape_cast %350 : vector<2x8xf32> to vector<2x8x1xf32>
    %352 = vector.broadcast %351 : vector<2x8x1xf32> to vector<2x8x8xf32>
    %353 = arith.divf %349, %352 : vector<2x8x8xf32>
    "tpu.trace_start"() <{level = 10 : i32, message = "bqk,bkd->bqd"}> : () -> ()
    %cst_164 = arith.constant dense<0.000000e+00> : vector<2x8x32xf32>
    %354 = tpu.matmul %353, %342, %cst_164 {dimension_numbers = #tpu.dot_dimension_numbers<[2], [1], [1], [2], [0, 0, 0, 1, 1, 2], [0], [0]>} : vector<2x8x8xf32>, vector<2x8x32xf32>, vector<2x8x32xf32> -> vector<2x8x32xf32>
    "tpu.trace_stop"() : () -> ()
    %355 = vector.shape_cast %354 : vector<2x8x32xf32> to vector<16x32xf32>
    %356 = vector.extract_strided_slice %291 {offsets = [64, 0], sizes = [32, 128], strides = [1, 1]} : vector<128x128xf32> to vector<32x128xf32>
    %cst_165 = arith.constant dense<0.000000e+00> : vector<16x128xf32>
    %357 = tpu.matmul %355, %356, %cst_165 {dimension_numbers = #tpu.dot_dimension_numbers<[1], [0], [0], [1], [0, 0, 1, 1], [], []>} : vector<16x32xf32>, vector<32x128xf32>, vector<16x128xf32> -> vector<16x128xf32>
    %358 = arith.addf %336, %357 : vector<16x128xf32>
    %359 = vector.extract_strided_slice %289 {offsets = [0, 96], sizes = [16, 32], strides = [1, 1]} : vector<16x384xf32> to vector<16x32xf32>
    %360 = vector.shape_cast %359 : vector<16x32xf32> to vector<2x8x32xf32>
    %361 = vector.extract_strided_slice %289 {offsets = [0, 224], sizes = [16, 32], strides = [1, 1]} : vector<16x384xf32> to vector<16x32xf32>
    %362 = vector.shape_cast %361 : vector<16x32xf32> to vector<2x8x32xf32>
    %363 = vector.extract_strided_slice %289 {offsets = [0, 352], sizes = [16, 32], strides = [1, 1]} : vector<16x384xf32> to vector<16x32xf32>
    %364 = vector.shape_cast %363 : vector<16x32xf32> to vector<2x8x32xf32>
    "tpu.trace_start"() <{level = 10 : i32, message = "bqd,bkd->bqk"}> : () -> ()
    %cst_166 = arith.constant dense<0.000000e+00> : vector<2x8x8xf32>
    %365 = tpu.matmul %360, %362, %cst_166 {dimension_numbers = #tpu.dot_dimension_numbers<[2], [2], [1], [1], [0, 0, 0, 1, 1, 1], [0], [0]>} : vector<2x8x32xf32>, vector<2x8x32xf32>, vector<2x8x8xf32> -> vector<2x8x8xf32>
    "tpu.trace_stop"() : () -> ()
    %366 = arith.addf %365, %84 : vector<2x8x8xf32>
    %cst_167 = arith.constant dense<0xFF800000> : vector<2x8xf32>
    %367 = vector.multi_reduction <maximumf>, %366, %cst_167 [2] : vector<2x8x8xf32> to vector<2x8xf32>
    %368 = vector.shape_cast %367 : vector<2x8xf32> to vector<2x8x1xf32>
    %369 = vector.broadcast %368 : vector<2x8x1xf32> to vector<2x8x8xf32>
    %370 = arith.subf %366, %369 : vector<2x8x8xf32>
    %371 = math.exp %370 : vector<2x8x8xf32>
    %cst_168 = arith.constant dense<0.000000e+00> : vector<2x8xf32>
    %372 = vector.multi_reduction <add>, %371, %cst_168 [2] : vector<2x8x8xf32> to vector<2x8xf32>
    %373 = vector.shape_cast %372 : vector<2x8xf32> to vector<2x8x1xf32>
    %374 = vector.broadcast %373 : vector<2x8x1xf32> to vector<2x8x8xf32>
    %375 = arith.divf %371, %374 : vector<2x8x8xf32>
    "tpu.trace_start"() <{level = 10 : i32, message = "bqk,bkd->bqd"}> : () -> ()
    %cst_169 = arith.constant dense<0.000000e+00> : vector<2x8x32xf32>
    %376 = tpu.matmul %375, %364, %cst_169 {dimension_numbers = #tpu.dot_dimension_numbers<[2], [1], [1], [2], [0, 0, 0, 1, 1, 2], [0], [0]>} : vector<2x8x8xf32>, vector<2x8x32xf32>, vector<2x8x32xf32> -> vector<2x8x32xf32>
    "tpu.trace_stop"() : () -> ()
    %377 = vector.shape_cast %376 : vector<2x8x32xf32> to vector<16x32xf32>
    %378 = vector.extract_strided_slice %291 {offsets = [96, 0], sizes = [32, 128], strides = [1, 1]} : vector<128x128xf32> to vector<32x128xf32>
    %cst_170 = arith.constant dense<0.000000e+00> : vector<16x128xf32>
    %379 = tpu.matmul %377, %378, %cst_170 {dimension_numbers = #tpu.dot_dimension_numbers<[1], [0], [0], [1], [0, 0, 1, 1], [], []>} : vector<16x32xf32>, vector<32x128xf32>, vector<16x128xf32> -> vector<16x128xf32>
    %380 = arith.addf %358, %379 : vector<16x128xf32>
    %381 = arith.addf %258, %380 : vector<16x128xf32>
    %c1_171 = arith.constant 1 : index
    %c0_172 = arith.constant 0 : index
    %c0_173 = arith.constant 0 : index
    %382 = vector.load %arg14[%c1_171, %c0_172, %c0_173] : memref<2x1x128xf32, #tpu.memory_space<vmem>>, vector<1x1x128xf32>
    %383 = vector.shape_cast %382 : vector<1x1x128xf32> to vector<1x128xf32>
    %384 = vector.broadcast %383 : vector<1x128xf32> to vector<16x128xf32>
    %385 = arith.addf %381, %384 : vector<16x128xf32>
    %c1_174 = arith.constant 1 : index
    %c0_175 = arith.constant 0 : index
    %c0_176 = arith.constant 0 : index
    %386 = vector.load %arg15[%c1_174, %c0_175, %c0_176] : memref<2x1x128xf32, #tpu.memory_space<vmem>>, vector<1x1x128xf32>
    %387 = vector.shape_cast %386 : vector<1x1x128xf32> to vector<1x128xf32>
    %c1_177 = arith.constant 1 : index
    %c0_178 = arith.constant 0 : index
    %c0_179 = arith.constant 0 : index
    %388 = vector.load %arg16[%c1_177, %c0_178, %c0_179] : memref<2x1x128xf32, #tpu.memory_space<vmem>>, vector<1x1x128xf32>
    %389 = vector.shape_cast %388 : vector<1x1x128xf32> to vector<1x128xf32>
    %cst_180 = arith.constant dense<0.000000e+00> : vector<16xf32>
    %390 = vector.multi_reduction <add>, %385, %cst_180 [1] : vector<16x128xf32> to vector<16xf32>
    %391 = vector.shape_cast %390 : vector<16xf32> to vector<16x1xf32>
    %cst_181 = arith.constant 1.280000e+02 : f32
    %392 = vector.broadcast %cst_181 : f32 to vector<16x1xf32>
    %393 = arith.divf %391, %392 : vector<16x1xf32>
    %394 = vector.broadcast %393 : vector<16x1xf32> to vector<16x128xf32>
    %395 = arith.subf %385, %394 : vector<16x128xf32>
    %396 = arith.mulf %395, %395 : vector<16x128xf32>
    %cst_182 = arith.constant dense<0.000000e+00> : vector<16xf32>
    %397 = vector.multi_reduction <add>, %396, %cst_182 [1] : vector<16x128xf32> to vector<16xf32>
    %398 = vector.shape_cast %397 : vector<16xf32> to vector<16x1xf32>
    %cst_183 = arith.constant 1.280000e+02 : f32
    %399 = vector.broadcast %cst_183 : f32 to vector<16x1xf32>
    %400 = arith.divf %398, %399 : vector<16x1xf32>
    %cst_184 = arith.constant 9.99999997E-7 : f32
    %401 = vector.broadcast %cst_184 : f32 to vector<16x1xf32>
    %402 = arith.addf %400, %401 : vector<16x1xf32>
    %403 = math.rsqrt %402 : vector<16x1xf32>
    %404 = vector.broadcast %403 : vector<16x1xf32> to vector<16x128xf32>
    %405 = arith.mulf %395, %404 : vector<16x128xf32>
    %406 = vector.broadcast %387 : vector<1x128xf32> to vector<16x128xf32>
    %407 = arith.mulf %405, %406 : vector<16x128xf32>
    %408 = vector.broadcast %389 : vector<1x128xf32> to vector<16x128xf32>
    %409 = arith.addf %407, %408 : vector<16x128xf32>
    %c1_185 = arith.constant 1 : index
    %c0_186 = arith.constant 0 : index
    %c0_187 = arith.constant 0 : index
    %410 = vector.load %arg17[%c1_185, %c0_186, %c0_187] : memref<2x128x512xf32, #tpu.memory_space<vmem>>, vector<1x128x512xf32>
    %411 = vector.shape_cast %410 : vector<1x128x512xf32> to vector<128x512xf32>
    %cst_188 = arith.constant dense<0.000000e+00> : vector<16x512xf32>
    %412 = tpu.matmul %409, %411, %cst_188 {dimension_numbers = #tpu.dot_dimension_numbers<[1], [0], [0], [1], [0, 0, 1, 1], [], []>} : vector<16x128xf32>, vector<128x512xf32>, vector<16x512xf32> -> vector<16x512xf32>
    %c1_189 = arith.constant 1 : index
    %c0_190 = arith.constant 0 : index
    %c0_191 = arith.constant 0 : index
    %413 = vector.load %arg18[%c1_189, %c0_190, %c0_191] : memref<2x1x512xf32, #tpu.memory_space<vmem>>, vector<1x1x512xf32>
    %414 = vector.shape_cast %413 : vector<1x1x512xf32> to vector<1x512xf32>
    %415 = vector.broadcast %414 : vector<1x512xf32> to vector<16x512xf32>
    %416 = arith.addf %412, %415 : vector<16x512xf32>
    %cst_192 = arith.constant 5.000000e-01 : f32
    %417 = vector.broadcast %cst_192 : f32 to vector<16x512xf32>
    %418 = arith.mulf %417, %416 : vector<16x512xf32>
    %cst_193 = arith.constant 0.707106769 : f32
    %419 = vector.broadcast %cst_193 : f32 to vector<16x512xf32>
    %420 = arith.mulf %416, %419 : vector<16x512xf32>
    %421 = math.erf %420 : vector<16x512xf32>
    %cst_194 = arith.constant 1.000000e+00 : f32
    %422 = vector.broadcast %cst_194 : f32 to vector<16x512xf32>
    %423 = arith.addf %422, %421 : vector<16x512xf32>
    %424 = arith.mulf %418, %423 : vector<16x512xf32>
    %c1_195 = arith.constant 1 : index
    %c0_196 = arith.constant 0 : index
    %c0_197 = arith.constant 0 : index
    %425 = vector.load %arg19[%c1_195, %c0_196, %c0_197] : memref<2x512x128xf32, #tpu.memory_space<vmem>>, vector<1x512x128xf32>
    %426 = vector.shape_cast %425 : vector<1x512x128xf32> to vector<512x128xf32>
    %cst_198 = arith.constant dense<0.000000e+00> : vector<16x128xf32>
    %427 = tpu.matmul %424, %426, %cst_198 {dimension_numbers = #tpu.dot_dimension_numbers<[1], [0], [0], [1], [0, 0, 1, 1], [], []>} : vector<16x512xf32>, vector<512x128xf32>, vector<16x128xf32> -> vector<16x128xf32>
    %c1_199 = arith.constant 1 : index
    %c0_200 = arith.constant 0 : index
    %c0_201 = arith.constant 0 : index
    %428 = vector.load %arg20[%c1_199, %c0_200, %c0_201] : memref<2x1x128xf32, #tpu.memory_space<vmem>>, vector<1x1x128xf32>
    %429 = vector.shape_cast %428 : vector<1x1x128xf32> to vector<1x128xf32>
    %430 = vector.broadcast %429 : vector<1x128xf32> to vector<16x128xf32>
    %431 = arith.addf %427, %430 : vector<16x128xf32>
    %432 = arith.addf %385, %431 : vector<16x128xf32>
    %c0_202 = arith.constant 0 : index
    %c0_203 = arith.constant 0 : index
    %433 = vector.load %arg21[%c0_202, %c0_203] : memref<1x128xf32, #tpu.memory_space<vmem>>, vector<1x128xf32>
    %c0_204 = arith.constant 0 : index
    %c0_205 = arith.constant 0 : index
    %434 = vector.load %arg22[%c0_204, %c0_205] : memref<1x128xf32, #tpu.memory_space<vmem>>, vector<1x128xf32>
    %cst_206 = arith.constant dense<0.000000e+00> : vector<16xf32>
    %435 = vector.multi_reduction <add>, %432, %cst_206 [1] : vector<16x128xf32> to vector<16xf32>
    %436 = vector.shape_cast %435 : vector<16xf32> to vector<16x1xf32>
    %cst_207 = arith.constant 1.280000e+02 : f32
    %437 = vector.broadcast %cst_207 : f32 to vector<16x1xf32>
    %438 = arith.divf %436, %437 : vector<16x1xf32>
    %439 = vector.broadcast %438 : vector<16x1xf32> to vector<16x128xf32>
    %440 = arith.subf %432, %439 : vector<16x128xf32>
    %441 = arith.mulf %440, %440 : vector<16x128xf32>
    %cst_208 = arith.constant dense<0.000000e+00> : vector<16xf32>
    %442 = vector.multi_reduction <add>, %441, %cst_208 [1] : vector<16x128xf32> to vector<16xf32>
    %443 = vector.shape_cast %442 : vector<16xf32> to vector<16x1xf32>
    %cst_209 = arith.constant 1.280000e+02 : f32
    %444 = vector.broadcast %cst_209 : f32 to vector<16x1xf32>
    %445 = arith.divf %443, %444 : vector<16x1xf32>
    %cst_210 = arith.constant 9.99999997E-7 : f32
    %446 = vector.broadcast %cst_210 : f32 to vector<16x1xf32>
    %447 = arith.addf %445, %446 : vector<16x1xf32>
    %448 = math.rsqrt %447 : vector<16x1xf32>
    %449 = vector.broadcast %448 : vector<16x1xf32> to vector<16x128xf32>
    %450 = arith.mulf %440, %449 : vector<16x128xf32>
    %451 = vector.broadcast %433 : vector<1x128xf32> to vector<16x128xf32>
    %452 = arith.mulf %450, %451 : vector<16x128xf32>
    %453 = vector.broadcast %434 : vector<1x128xf32> to vector<16x128xf32>
    %454 = arith.addf %452, %453 : vector<16x128xf32>
    %c0_211 = arith.constant 0 : index
    %c0_212 = arith.constant 0 : index
    %455 = vector.load %arg23[%c0_211, %c0_212] : memref<128x128xf32, #tpu.memory_space<vmem>>, vector<128x128xf32>
    %cst_213 = arith.constant dense<0.000000e+00> : vector<16x128xf32>
    %456 = tpu.matmul %454, %455, %cst_213 {dimension_numbers = #tpu.dot_dimension_numbers<[1], [0], [0], [1], [0, 0, 1, 1], [], []>} : vector<16x128xf32>, vector<128x128xf32>, vector<16x128xf32> -> vector<16x128xf32>
    %c0_214 = arith.constant 0 : index
    %c0_215 = arith.constant 0 : index
    %457 = vector.load %arg24[%c0_214, %c0_215] : memref<1x128xf32, #tpu.memory_space<vmem>>, vector<1x128xf32>
    %458 = vector.broadcast %457 : vector<1x128xf32> to vector<16x128xf32>
    %459 = arith.addf %456, %458 : vector<16x128xf32>
    %460 = vector.shape_cast %459 : vector<16x128xf32> to vector<2x8x128xf32>
    %c0_216 = arith.constant 0 : index
    %c0_217 = arith.constant 0 : index
    %c0_218 = arith.constant 0 : index
    %461 = vector.load %arg25[%c0_216, %c0_217, %c0_218] : memref<2x8x128xf32, #tpu.memory_space<vmem>>, vector<2x8x128xf32>
    tpu.vector_store %arg25[%c0_216, %c0_217, %c0_218], %460 {strides = array<i32>} : memref<2x8x128xf32, #tpu.memory_space<vmem>>, vector<2x8x128xf32>,
    return
  }
}

</mosaic_0001>

<bundles_post_ra>
// kernel: forward.1
= control target key start
LH: loop header
LB: loop body
LE: loop exit
PB: predicated region body
PF: predicated region fallthrough
CT: control target
= control target key end

     0   :  { %s8637_s0 = inlined_call_operand.vmem [shape: f32[8,768], index: 0, kind: input, shape index: {}]   ;;  %s8638_s1 = inlined_call_operand.vmem [shape: f32[2,1], index: 1, kind: input, shape index: {}]   ;;  %s8639_s2 = inlined_call_operand.hbm [shape: f32[768,128], index: 2, kind: input, shape index: {}]   ;;  %s8640_s3 = inlined_call_operand.vmem [shape: f32[1,128], index: 3, kind: input, shape index: {}]   ;;  %s8641_s4 = inlined_call_operand.vmem [shape: f32[1,128], index: 4, kind: input, shape index: {}]   ;;  %s8642_s5 = inlined_call_operand.vmem [shape: f32[1,128], index: 5, kind: input, shape index: {}]   ;;  %s8643_s6 = inlined_call_operand.vmem [shape: f32[1,128], index: 6, kind: input, shape index: {}]   ;;  %s8644_s7 = inlined_call_operand.vmem [shape: f32[1,128], index: 7, kind: input, shape index: {}]   ;;  %s8645_s8 = inlined_call_operand.vmem [shape: f32[1,8,128], index: 8, kind: input, shape index: {}]   ;;  %s8646_s9 = inlined_call_operand.vmem [shape: f32[2,1,128], index: 9, kind: input, shape index: {}]   ;;  %s8647_s10 = inlined_call_operand.vmem [shape: f32[2,1,128], index: 10, kind: input, shape index: {}]   ;;  %s8648_s11 = inlined_call_operand.hbm [shape: f32[2,128,384], index: 11, kind: input, shape index: {}]   ;;  %s8649_s12 = inlined_call_operand.vmem [shape: f32[2,1,384], index: 12, kind: input, shape index: {}]   ;;  %s8650_s13 = inlined_call_operand.vmem [shape: f32[2,128,128], index: 13, kind: input, shape index: {}]   ;;  %s8651_s14 = inlined_call_operand.vmem [shape: f32[2,1,128], index: 14, kind: input, shape index: {}]   ;;  %s8652_s15 = inlined_call_operand.vmem [shape: f32[2,1,128], index: 15, kind: input, shape index: {}]   ;;  %s8653_s16 = inlined_call_operand.vmem [shape: f32[2,1,128], index: 16, kind: input, shape index: {}]   ;;  %s8654_s17 = inlined_call_operand.vmem [shape: f32[2,128,512], index: 17, kind: input, shape index: {}]   ;;  %s8655_s18 = inlined_call_operand.vmem [shape: f32[2,1,512], index: 18, kind: input, shape index: {}]   ;;  %s8656_s19 = inlined_call_operand.hbm [shape: f32[2,512,128], index: 19, kind: input, shape index: {}]   ;;  %s8657_s20 = inlined_call_operand.vmem [shape: f32[2,1,128], index: 20, kind: input, shape index: {}]   ;;  %s8658_s21 = inlined_call_operand.vmem [shape: f32[1,128], index: 21, kind: input, shape index: {}]   ;;  %s8659_s22 = inlined_call_operand.vmem [shape: f32[1,128], index: 22, kind: input, shape index: {}]   ;;  %s8660_s23 = inlined_call_operand.vmem [shape: f32[128,128], index: 23, kind: input, shape index: {}]   ;;  %s8661_s24 = inlined_call_operand.vmem [shape: f32[1,128], index: 24, kind: input, shape index: {}]   ;;  %s8662_s25 = inlined_call_operand.vmem [shape: f32[2,8,128], index: 25, kind: output, shape index: {}]  }
   0x1   :  { %8667 = sst [smem:[#allocation10_spill]] %s8637_s0 }
   0x2   :  { %8668 = sst [smem:[#allocation11_spill]] %s8638_s1 }
   0x3   :  { %8669 = sst [smem:[#allocation12_spill]] %s8639_s2 }
   0x4   :  { %8670 = sst [smem:[#allocation13_spill]] %s8640_s3 }
   0x5   :  { %8671 = sst [smem:[#allocation14_spill]] %s8641_s4 }
   0x6   :  { %8672 = sst [smem:[#allocation15_spill]] %s8642_s5 }
   0x7   :  { %8673 = sst [smem:[#allocation16_spill]] %s8643_s6 }
   0x8   :  { %8674 = sst [smem:[#allocation17_spill]] %s8644_s7 }
   0x9   :  { %8675 = sst [smem:[#allocation18_spill]] %s8645_s8 }
   0xa   :  { %8676 = sst [smem:[#allocation19_spill]] %s8646_s9 }
   0xb   :  { %8677 = sst [smem:[#allocation20_spill]] %s8662_s25 }
   0xc   :  { %30 = vsyncpa [#allocation4], 0 }
   0xd   :  { %31 = vsyncpa [#allocation6], 0  ;;  %s7363_s29 = smov [#allocation5]   ;;  %s7293_s7 = scalar_lea.hbm %s8648_s11, 12288 }
   0xe   :  { %s69_s2 = sshll.u32 %s7363_s29, 4  ;;  %p7294_p0 = scmp.ne.s32.totalorder %s8648_s11, %s7293_s7  ;;  %s70_s2 = int_to_ptr.vmem [resolvable:$true] %s69_s2 }
   0xf   :  { %p7297_p1 = scmp.lt.u32.totalorder %s7293_s7, %s8648_s11 }
  0x11   :  { %p7299_p2 = pnand %p7297_p1, %p7294_p0 }
  0x13   :  { %7302 = shalt.err (!%p7299_p2)
}
  0x14   :  { %s7303_s27 = scalar_lea.vmem %s70_s2, 12288  ;;  %p7308_p4 = scmp.lt.s32.totalorder %s70_s2, %s70_s2 }
  0x15   :  { %p7304_p3 = scmp.ne.s32.totalorder %s70_s2, %s7303_s27  ;;  %p7309_p5 = scmp.lt.s32.totalorder %s7303_s27, %s7303_s27 }
  0x17   :  { %p7310_p6 = por %p7309_p5, %p7308_p4 }
  0x19   :  { %p7311_p7 = pnand %p7310_p6, %p7304_p3 }
  0x1b   :  { %7314 = shalt.err (!%p7311_p7)
}
  0x1c   :  { %s7364_s4 = smov 384   ;;  %s7365_s28 = smov 24  }
  0x1d   :  { %75 = dma.hbm_to_vmem [thread:$0]  %s8648_s11, 12288, %s70_s2, [#allocation6], %s7364_s4, %s7364_s4, %s7365_s28  }
  0x1e   :  { %s7366_s0 = smov [#allocation3]   ;;  %s8678_s7 = sld [smem:[#allocation12_spill]] }
  0x1f   :  { %s41_s29 = sshll.u32 %s7366_s0, 4  ;;  %s42_s29 = int_to_ptr.vmem [resolvable:$true] %s41_s29 }
  0x24   :  { %s7315_s3 = scalar_lea.hbm %s8678_s7, 12288 }
  0x25   :  { %p7316_p8 = scmp.ne.s32.totalorder %s8678_s7, %s7315_s3  ;;  %p7319_p9 = scmp.lt.u32.totalorder %s7315_s3, %s8678_s7 }
  0x27   :  { %p7321_p10 = pnand %p7319_p9, %p7316_p8 }
  0x29   :  { %7324 = shalt.err (!%p7321_p10)
}
  0x2a   :  { %s7325_s25 = scalar_lea.vmem %s42_s29, 12288  ;;  %p7330_p12 = scmp.lt.s32.totalorder %s42_s29, %s42_s29 }
  0x2b   :  { %p7326_p11 = scmp.ne.s32.totalorder %s42_s29, %s7325_s25  ;;  %p7331_p13 = scmp.lt.s32.totalorder %s7325_s25, %s7325_s25 }
  0x2d   :  { %p7332_p0 = por %p7331_p13, %p7330_p12 }
  0x2f   :  { %p7333_p1 = pnand %p7332_p0, %p7326_p11 }
  0x31   :  { %7336 = shalt.err (!%p7333_p1)
}
  0x32   :  { %s7367_s11 = smov 128   ;;  %s7368_s2 = smov 8  }
  0x33   :  { %47 = dma.hbm_to_vmem [thread:$0]  %s8678_s7, 12288, %s42_s29, [#allocation4], %s7367_s11, %s7367_s11, %s7368_s2  }
  0x34   :  { %s7369_s9 = smov [#allocation7]   ;;  %s7337_s30 = scalar_lea.hbm %s8656_s19, 16384 }
  0x35   :  { %s95_s5 = sshll.u32 %s7369_s9, 4  ;;  %p7338_p2 = scmp.ne.s32.totalorder %s8656_s19, %s7337_s30  ;;  %s96_s5 = int_to_ptr.vmem [resolvable:$true] %s95_s5 }
  0x36   :  { %p7341_p3 = scmp.lt.u32.totalorder %s7337_s30, %s8656_s19 }
  0x38   :  { %p7343_p4 = pnand %p7341_p3, %p7338_p2 }
  0x3a   :  { %7346 = shalt.err (!%p7343_p4)
}
  0x3b   :  { %s7347_s8 = scalar_lea.vmem %s96_s5, 16384  ;;  %p7352_p6 = scmp.lt.s32.totalorder %s96_s5, %s96_s5 }
  0x3c   :  { %p7348_p5 = scmp.ne.s32.totalorder %s96_s5, %s7347_s8  ;;  %p7353_p7 = scmp.lt.s32.totalorder %s7347_s8, %s7347_s8 }
  0x3e   :  { %p7354_p8 = por %p7353_p7, %p7352_p6 }
  0x40   :  { %p7355_p9 = pnand %p7354_p8, %p7348_p5 }
  0x42   :  { %7358 = shalt.err (!%p7355_p9)
}
  0x43   :  { %101 = dma.hbm_to_vmem [thread:$0]  %s8656_s19, 16384, %s96_s5, [#allocation6], %s7367_s11, %s7367_s11, %s7368_s2  }
  0x44   :  { %7359 = dma.done.wait [#allocation4], 12288  }
  0x45   :  { %7360 = vsyncadd [#allocation4], 4294955008 }
  0x46   :  { %7361 = dma.done.wait [#allocation6], 28672  }
  0x47   :  { %7362 = vsyncadd [#allocation6], 4294938624  ;;  %v7370_v0 = vmov 0   ;;  %s8679_s28 = sld [smem:[#allocation11_spill]]  ;;  %v143_v2 = vld [vmem:[#allocation3 + $0x80] sm:$0xff]  ;;  %v144_v3 = vld [vmem:[#allocation3 + $0x88] sm:$0xff] }
  0x48   :  { %7172 = vset.pattern.permute.xlu0 %v7370_v0  ;;  %v127_v4 = vld [vmem:[#allocation3] sm:$0xff]  ;;  %v6571_v5 = vpack.c.bf16 %v144_v3, %v143_v2  ;;  %v128_v6 = vld [vmem:[#allocation3 + $0x8] sm:$0xff]  ;;  %v145_v7 = vld [vmem:[#allocation3 + $0x90] sm:$0xff]  ;;  %s8680_s2 = sld [smem:[#allocation10_spill]]  ;;  %s8681_s27 = sld [smem:[#allocation14_spill]]  ;;  %vm469_vm0 = vcmask 1041408  }
  0x49   :  { %v146_v8 = vld [vmem:[#allocation3 + $0x98] sm:$0xff]  ;;  %v6573_v9 = vpack.c.bf16 %v128_v6, %v127_v4  ;;  %v129_v11 = vld [vmem:[#allocation3 + $0x10] sm:$0xff]  ;;  %v147_v13 = vld [vmem:[#allocation3 + $0xa0] sm:$0xff]  ;;  %s8682_s19 = sld [smem:[#allocation15_spill]]  ;;  %s8683_s9 = sld [smem:[#allocation18_spill]]  ;;  %vm7372_vm1 = vmmov 0  }
  0x4a   :  { %v6575_v10 = vpack.c.bf16 %v146_v8, %v145_v7  ;;  %v130_v12 = vld [vmem:[#allocation3 + $0x18] sm:$0xff]  ;;  %6572 = vmatprep.subr.bf16.mxu0 %v6571_v5  ;;  %v148_v14 = vld [vmem:[#allocation3 + $0xa8] sm:$0xff]  ;;  %v131_v17 = vld [vmem:[#allocation3 + $0x20] sm:$0xff]  ;;  %s8684_s6 = sld [smem:[#allocation13_spill]]  ;;  %s8685_s26 = sld [smem:[#allocation16_spill]]  ;;  %vm801_vm2 = vcmask 261120  }
  0x4b   :  { %6574 = vmatpush3.bf16.msra.mxu0 %v6573_v9  ;;  %v6577_v15 = vpack.c.bf16 %v130_v12, %v129_v11  ;;  %v6579_v16 = vpack.c.bf16 %v148_v14, %v147_v13  ;;  %v132_v18 = vld [vmem:[#allocation3 + $0x28] sm:$0xff]  ;;  %v149_v19 = vld [vmem:[#allocation3 + $0xb0] sm:$0xff]  ;;  %v150_v20 = vld [vmem:[#allocation3 + $0xb8] sm:$0xff]  ;;  %s8686_s8 = sld [smem:[#allocation17_spill]]  ;;  %vm954_vm4 = vcmask 64512   ;;  %s7375_s0 = smov 32  }
  0x4c   :  { %6576 = vmatprep.subr.bf16.mxu0 %v6575_v10  ;;  %v6581_v21 = vpack.c.bf16 %v132_v18, %v131_v17  ;;  %v6583_v22 = vpack.c.bf16 %v150_v20, %v149_v19  ;;  %v133_v23 = vld [vmem:[#allocation3 + $0x30] sm:$0xff]  ;;  %v134_v24 = vld [vmem:[#allocation3 + $0x38] sm:$0xff]  ;;  %v151_v25 = vld [vmem:[#allocation3 + $0xc0] sm:$0xff] }
  0x4d   :  { %v440_v1 = vld [vmem:[%s8679_s28] sm:$0x3]  ;;  %v152_v26 = vld [vmem:[#allocation3 + $0xc8] sm:$0xff]  ;;  %v175_v27 = vld [vmem:[#allocation3 + $0x180] sm:$0xff]  ;;  %v6585_v31 = vpack.c.bf16 %v134_v24, %v133_v23 }
  0x4e   :  { %444 = vperm.xlu0 %7172, %v440_v1   ;;  %v176_v28 = vld [vmem:[#allocation3 + $0x188] sm:$0xff]  ;;  %v159_v29 = vld [vmem:[#allocation3 + $0x100] sm:$0xff]  ;;  %v122_v35 = vld [vmem:[%s8680_s2 + $0x8] sm:$0xff]  ;;  %v6587_v36 = vpack.c.bf16 %v152_v26, %v151_v25 }
  0x4f   :  { %6578 = vmatpush3.bf16.msra.mxu0 %v6577_v15  ;;  %v160_v30 = vld [vmem:[#allocation3 + $0x108] sm:$0xff]  ;;  %v135_v32 = vld [vmem:[#allocation3 + $0x40] sm:$0xff]  ;;  %v6603_v33 = vpack.c.bf16 %v176_v28, %v175_v27  ;;  %v153_v38 = vld [vmem:[#allocation3 + $0xd0] sm:$0xff]  ;;  %294 = vmatprep.mubr.f32.mxu0 %v122_v35 }
  0x50   :  { %6580 = vmatprep.subr.bf16.mxu0 %v6579_v16  ;;  %v6605_v34 = vpack.c.bf16 %v160_v30, %v159_v29  ;;  %v136_v37 = vld [vmem:[#allocation3 + $0x48] sm:$0xff]  ;;  %v154_v39 = vld [vmem:[#allocation3 + $0xd8] sm:$0xff]  ;;  %v177_v40 = vld [vmem:[#allocation3 + $0x190] sm:$0xff] }
  0x51   :  { %6604 = vmatprep.subr.bf16.mxu1 %v6603_v33  ;;  %v178_v41 = vld [vmem:[#allocation3 + $0x198] sm:$0xff]  ;;  %v161_v42 = vld [vmem:[#allocation3 + $0x110] sm:$0xff]  ;;  %v6589_v45 = vpack.c.bf16 %v136_v37, %v135_v32  ;;  %v179_v49 = vld [vmem:[#allocation3 + $0x1a0] sm:$0xff]  ;;  %v6591_v50 = vpack.c.bf16 %v154_v39, %v153_v38 }
  0x52   :  { %6606 = vmatpush3.bf16.msra.mxu1 %v6605_v34  ;;  %v6607_v43 = vpack.c.bf16 %v178_v41, %v177_v40  ;;  %v162_v44 = vld [vmem:[#allocation3 + $0x118] sm:$0xff]  ;;  %v137_v46 = vld [vmem:[#allocation3 + $0x50] sm:$0xff]  ;;  %v180_v51 = vld [vmem:[#allocation3 + $0x1a8] sm:$0xff] }
  0x53   :  { %6582 = vmatpush3.bf16.msra.mxu0 %v6581_v21  ;;  %v138_v47 = vld [vmem:[#allocation3 + $0x58] sm:$0xff]  ;;  %v6609_v48 = vpack.c.bf16 %v162_v44, %v161_v42  ;;  %v163_v52 = vld [vmem:[#allocation3 + $0x120] sm:$0xff]  ;;  %v164_v53 = vld [vmem:[#allocation3 + $0x128] sm:$0xff]  ;;  %v6611_v56 = vpack.c.bf16 %v180_v51, %v179_v49 }
  0x54   :  { %6584 = vmatprep.subr.bf16.mxu0 %v6583_v22  ;;  %6608 = vmatprep.subr.bf16.mxu1 %v6607_v43  ;;  %v155_v54 = vld [vmem:[#allocation3 + $0xe0] sm:$0xff]  ;;  %v156_v55 = vld [vmem:[#allocation3 + $0xe8] sm:$0xff]  ;;  %v6613_v57 = vpack.c.bf16 %v164_v53, %v163_v52  ;;  %v181_v58 = vld [vmem:[#allocation3 + $0x1b0] sm:$0xff]  ;;  %v6593_v60 = vpack.c.bf16 %v138_v47, %v137_v46 }
  0x55   :  { %v182_v59 = vld [vmem:[#allocation3 + $0x1b8] sm:$0xff]  ;;  %v165_v62 = vld [vmem:[#allocation3 + $0x130] sm:$0xff]  ;;  %v6595_v0 = vpack.c.bf16 %v156_v55, %v155_v54  ;;  %v139_v1 = vld [vmem:[#allocation3 + $0x60] sm:$0xff] }
  0x56   :  { %6610 = vmatpush3.bf16.msra.mxu1 %v6609_v48  ;;  %v6615_v61 = vpack.c.bf16 %v182_v59, %v181_v58  ;;  %v166_v63 = vld [vmem:[#allocation3 + $0x138] sm:$0xff]  ;;  %v140_v2 = vld [vmem:[#allocation3 + $0x68] sm:$0xff]  ;;  %v157_v3 = vld [vmem:[#allocation3 + $0xf0] sm:$0xff] }
  0x57   :  { %6586 = vmatpush3.bf16.msra.mxu0 %v6585_v31  ;;  %6612 = vmatprep.subr.bf16.mxu1 %v6611_v56  ;;  %v158_v4 = vld [vmem:[#allocation3 + $0xf8] sm:$0xff]  ;;  %v183_v5 = vld [vmem:[#allocation3 + $0x1c0] sm:$0xff]  ;;  %v184_v6 = vld [vmem:[#allocation3 + $0x1c8] sm:$0xff]  ;;  %v6617_v7 = vpack.c.bf16 %v166_v63, %v165_v62  ;;  %v6597_v8 = vpack.c.bf16 %v140_v2, %v139_v1 }
  0x58   :  { %6588 = vmatprep.subr.bf16.mxu0 %v6587_v36  ;;  %v141_v9 = vld [vmem:[#allocation3 + $0x70] sm:$0xff]  ;;  %v6619_v10 = vpack.c.bf16 %v184_v6, %v183_v5  ;;  %v167_v11 = vld [vmem:[#allocation3 + $0x140] sm:$0xff]  ;;  %v168_v12 = vld [vmem:[#allocation3 + $0x148] sm:$0xff]  ;;  %v6599_v13 = vpack.c.bf16 %v158_v4, %v157_v3 }
  0x59   :  { %v142_v14 = vld [vmem:[#allocation3 + $0x78] sm:$0xff]  ;;  %v185_v15 = vld [vmem:[#allocation3 + $0x1d0] sm:$0xff]  ;;  %v207_v17 = vld [vmem:[#allocation3 + $0x280] sm:$0xff]  ;;  %v6621_v19 = vpack.c.bf16 %v168_v12, %v167_v11 }
  0x5a   :  { %6614 = vmatpush3.bf16.msra.mxu1 %v6613_v57  ;;  %v186_v16 = vld [vmem:[#allocation3 + $0x1d8] sm:$0xff]  ;;  %v208_v18 = vld [vmem:[#allocation3 + $0x288] sm:$0xff]  ;;  %v6601_v20 = vpack.c.bf16 %v142_v14, %v141_v9  ;;  %v191_v21 = vld [vmem:[#allocation3 + $0x200] sm:$0xff] }
  0x5b   :  { %6590 = vmatpush3.bf16.msra.mxu0 %v6589_v45  ;;  %6616 = vmatprep.subr.bf16.mxu1 %v6615_v61  ;;  %v6623_v22 = vpack.c.bf16 %v186_v16, %v185_v15  ;;  %v169_v23 = vld [vmem:[#allocation3 + $0x150] sm:$0xff]  ;;  %v170_v24 = vld [vmem:[#allocation3 + $0x158] sm:$0xff]  ;;  %v6635_v25 = vpack.c.bf16 %v208_v18, %v207_v17  ;;  %v192_v26 = vld [vmem:[#allocation3 + $0x208] sm:$0xff] }
  0x5c   :  { %6592 = vmatprep.subr.bf16.mxu0 %v6591_v50  ;;  %v187_v27 = vld [vmem:[#allocation3 + $0x1e0] sm:$0xff]  ;;  %v188_v28 = vld [vmem:[#allocation3 + $0x1e8] sm:$0xff]  ;;  %v209_v29 = vld [vmem:[#allocation3 + $0x290] sm:$0xff]  ;;  %v6625_v33 = vpack.c.bf16 %v170_v24, %v169_v23  ;;  %v6637_v34 = vpack.c.bf16 %v192_v26, %v191_v21 }
  0x5d   :  { %v210_v30 = vld [vmem:[#allocation3 + $0x298] sm:$0xff]  ;;  %v121_v31 = vld [vmem:[%s8680_s2] sm:$0xff]  ;;  %v6627_v35 = vpack.c.bf16 %v188_v28, %v187_v27  ;;  %v171_v36 = vld [vmem:[#allocation3 + $0x160] sm:$0xff] }
  0x5e   :  { %6618 = vmatpush3.bf16.msra.mxu1 %v6617_v7  ;;  %v193_v32 = vld [vmem:[#allocation3 + $0x210] sm:$0xff]  ;;  %v172_v37 = vld [vmem:[#allocation3 + $0x168] sm:$0xff]  ;;  %v6639_v39 = vpack.c.bf16 %v210_v30, %v209_v29  ;;  %v194_v40 = vld [vmem:[#allocation3 + $0x218] sm:$0xff] }
  0x5f   :  { %6594 = vmatpush3.bf16.msra.mxu0 %v6593_v60  ;;  %6620 = vmatprep.subr.bf16.mxu1 %v6619_v10  ;;  %v124_v38 = vld [vmem:[%s8680_s2 + $0x18] sm:$0xff]  ;;  %v189_v41 = vld [vmem:[#allocation3 + $0x1f0] sm:$0xff]  ;;  %v190_v42 = vld [vmem:[#allocation3 + $0x1f8] sm:$0xff]  ;;  %v6629_v46 = vpack.c.bf16 %v172_v37, %v171_v36  ;;  %v6641_v47 = vpack.c.bf16 %v194_v40, %v193_v32 }
  0x60   :  { %6596 = vmatprep.subr.bf16.mxu0 %v6595_v0  ;;  %364 = vmatprep.mubr.f32.mxu1 %v124_v38  ;;  %v211_v43 = vld [vmem:[#allocation3 + $0x2a0] sm:$0xff]  ;;  %v212_v44 = vld [vmem:[#allocation3 + $0x2a8] sm:$0xff]  ;;  %v126_v45 = vld [vmem:[%s8680_s2 + $0x28] sm:$0xff]  ;;  %v6631_v48 = vpack.c.bf16 %v190_v42, %v189_v41 }
  0x61   :  { %v173_v49 = vld [vmem:[#allocation3 + $0x170] sm:$0xff]  ;;  %v174_v50 = vld [vmem:[#allocation3 + $0x178] sm:$0xff]  ;;  %v6643_v51 = vpack.c.bf16 %v212_v44, %v211_v43  ;;  %v195_v52 = vld [vmem:[#allocation3 + $0x220] sm:$0xff] }
  0x62   :  { %6622 = vmatpush3.bf16.msra.mxu1 %v6621_v19  ;;  %v196_v53 = vld [vmem:[#allocation3 + $0x228] sm:$0xff]  ;;  %v213_v54 = vld [vmem:[#allocation3 + $0x2b0] sm:$0xff]  ;;  %v214_v55 = vld [vmem:[#allocation3 + $0x2b8] sm:$0xff]  ;;  %v6633_v56 = vpack.c.bf16 %v174_v50, %v173_v49 }
  0x63   :  { %6598 = vmatpush3.bf16.msra.mxu0 %v6597_v8  ;;  %6624 = vmatprep.subr.bf16.mxu1 %v6623_v22  ;;  %v6645_v57 = vpack.c.bf16 %v196_v53, %v195_v52  ;;  %v6647_v58 = vpack.c.bf16 %v214_v55, %v213_v54  ;;  %v197_v59 = vld [vmem:[#allocation3 + $0x230] sm:$0xff]  ;;  %v198_v60 = vld [vmem:[#allocation3 + $0x238] sm:$0xff]  ;;  %v215_v61 = vld [vmem:[#allocation3 + $0x2c0] sm:$0xff] }
  0x64   :  { %6600 = vmatprep.subr.bf16.mxu0 %v6599_v13  ;;  %v216_v62 = vld [vmem:[#allocation3 + $0x2c8] sm:$0xff]  ;;  %v123_v63 = vld [vmem:[%s8680_s2 + $0x10] sm:$0xff]  ;;  %v6649_v0 = vpack.c.bf16 %v198_v60, %v197_v59  ;;  %v217_v4 = vld [vmem:[#allocation3 + $0x2d0] sm:$0xff] }
  0x65   :  { %v6651_v1 = vpack.c.bf16 %v216_v62, %v215_v61  ;;  %v199_v2 = vld [vmem:[#allocation3 + $0x240] sm:$0xff]  ;;  %v200_v3 = vld [vmem:[#allocation3 + $0x248] sm:$0xff]  ;;  %v218_v5 = vld [vmem:[#allocation3 + $0x2d8] sm:$0xff] }
  0x66   :  { %6626 = vmatpush3.bf16.msra.mxu1 %v6625_v33  ;;  %v6653_v6 = vpack.c.bf16 %v200_v3, %v199_v2  ;;  %v6655_v7 = vpack.c.bf16 %v218_v5, %v217_v4  ;;  %v201_v8 = vld [vmem:[#allocation3 + $0x250] sm:$0xff]  ;;  %v202_v9 = vld [vmem:[#allocation3 + $0x258] sm:$0xff]  ;;  %v219_v10 = vld [vmem:[#allocation3 + $0x2e0] sm:$0xff] }
  0x67   :  { %6602 = vmatpush3.bf16.msra.mxu0 %v6601_v20  ;;  %6628 = vmatprep.subr.bf16.mxu1 %v6627_v35  ;;  %v220_v11 = vld [vmem:[#allocation3 + $0x2e8] sm:$0xff]  ;;  %v6657_v12 = vpack.c.bf16 %v202_v9, %v201_v8  ;;  %v203_v14 = vld [vmem:[#allocation3 + $0x260] sm:$0xff]  ;;  %v221_v16 = vld [vmem:[#allocation3 + $0x2f0] sm:$0xff] }
  0x68   :  { %6636 = vmatprep.subr.bf16.mxu0 %v6635_v25  ;;  %v6659_v13 = vpack.c.bf16 %v220_v11, %v219_v10  ;;  %v204_v15 = vld [vmem:[#allocation3 + $0x268] sm:$0xff]  ;;  %v222_v17 = vld [vmem:[#allocation3 + $0x2f8] sm:$0xff]  ;;  %v205_v20 = vld [vmem:[#allocation3 + $0x270] sm:$0xff] }
  0x69   :  { %v6661_v18 = vpack.c.bf16 %v204_v15, %v203_v14  ;;  %v6663_v19 = vpack.c.bf16 %v222_v17, %v221_v16  ;;  %v206_v21 = vld [vmem:[#allocation3 + $0x278] sm:$0xff]  ;;  %v125_v23 = vld [vmem:[%s8680_s2 + $0x20] sm:$0xff]  ;;  %v569_v11 = vld [vmem:[#allocation5 + $0x8] sm:$0xff]  ;;  %s7373_s2 = smov 96  }
  0x6a   :  { %295 = vmatmul.mubr.f32.vlgmr.msra.gmra.mrb[0].mxu0 %v121_v31  ;;  %6630 = vmatpush3.bf16.msra.mxu1 %v6629_v46  ;;  %v6665_v22 = vpack.c.bf16 %v206_v21, %v205_v20  ;;  %v5623_v24 = vld [vmem:[%s8681_s27] ss:$0 sm:$0xff]  ;;  %v571_v15 = vld [vmem:[#allocation5 + $0x18] sm:$0xff]  ;;  %v573_v21 = vld [vmem:[#allocation5 + $0x28] sm:$0xff]  ;;  %s8687_s27 = sld [smem:[#allocation19_spill]] }
  0x6b   :  { %6638 = vmatpush3.bf16.msra.mxu0 %v6637_v34  ;;  %434 = vmatprep.mubr.f32.mxu0 %v126_v45  ;;  %v5624_v25 = vld [vmem:[%s8682_s19] ss:$0 sm:$0xff]  ;;  %v575_v16 = vld [vmem:[#allocation5 + $0x38] sm:$0xff] }
  0x6c   :  { %6640 = vmatprep.subr.bf16.mxu0 %v6639_v39  ;;  %6632 = vmatprep.subr.bf16.mxu1 %v6631_v48  ;;  %v498_v35 = vld [vmem:[%s8683_s9] sm:$0xff]  ;;  %s7374_s9 = smov 64  }
  0x6d   :  { %499 = vst [vmem:[#allocation2] sm:$0xff] %v498_v35  ;;  %500 = vst [vmem:[#allocation2 + $0x8] sm:$0xff] %v498_v35  ;;  %v5622_v39 = vld [vmem:[%s8684_s6] ss:$0 sm:$0xff] }
  0x6e   :  { %6634 = vmatpush3.bf16.msra.mxu1 %v6633_v56  ;;  %v578_v17 = vld [vmem:[#allocation5 + $0x50] sm:$0xff] }
  0x6f   :  { %6642 = vmatpush3.bf16.msra.mxu0 %v6641_v47  ;;  %v570_v20 = vld [vmem:[#allocation5 + $0x10] sm:$0xff] }
  0x70   :  { %6644 = vmatprep.subr.bf16.mxu0 %v6643_v51 }
  0x71   :  { %365 = vmatmul.mubr.f32.vlgmr.msra.gmra.mrb[0].mxu1 %v123_v63  ;;  %v5625_v63 = vld [vmem:[%s8685_s26] ss:$0 sm:$0xff] }
  0x73   :  { %6646 = vmatpush3.bf16.msra.mxu0 %v6645_v57 }
  0x74   :  { %6648 = vmatprep.subr.bf16.mxu0 %v6647_v58  ;;  %v504_v53 = vld [vmem:[#allocation2 + $0x1] sm:$0xf]  ;;  %v514_v55 = vld [vmem:[#allocation2 + $0x9] sm:$0xf]  ;;  %v501_v3 = vld [vmem:[#allocation2] sm:$0x1] }
  0x75   :  { %v508_v5 = vld [vmem:[#allocation2 + $0x8] sm:$0x1] }
  0x77   :  { %6650 = vmatpush3.bf16.msra.mxu0 %v6649_v0 }
  0x78   :  { %6652 = vmatprep.subr.bf16.mxu0 %v6651_v1  ;;  %v5626_v1 = vld [vmem:[%s8686_s8] ss:$0 sm:$0xff] }
  0x7b   :  { %6654 = vmatpush3.bf16.msra.mxu0 %v6653_v6 }
  0x7c   :  { %6656 = vmatprep.subr.bf16.mxu0 %v6655_v7 }
  0x7f   :  { %6658 = vmatpush3.bf16.msra.mxu0 %v6657_v12  ;;  %v572_v12 = vld [vmem:[#allocation5 + $0x20] sm:$0xff] }
  0x80   :  { %6660 = vmatprep.subr.bf16.mxu0 %v6659_v13  ;;  %v568_v13 = vld [vmem:[#allocation5] sm:$0xff]  ;;  %v6667_v14 = vpack.c.bf16 %v572_v12, %v569_v11  ;;  %v603_v12 = vld [vmem:[#allocation5 + $0x118] sm:$0xff] }
  0x82   :  { %6668 = vmatprep.subr.bf16.mxu1 %v6667_v14  ;;  %v607_v14 = vld [vmem:[#allocation5 + $0x138] sm:$0xff] }
  0x83   :  { %6662 = vmatpush3.bf16.msra.mxu0 %v6661_v18  ;;  %v6669_v18 = vpack.c.bf16 %v571_v15, %v568_v13  ;;  %v604_v13 = vld [vmem:[#allocation5 + $0x120] sm:$0xff]  ;;  %v7371_v15 = vmov 0.0  }
  0x84   :  { %6664 = vmatprep.subr.bf16.mxu0 %v6663_v19  ;;  %v6671_v19 = vpack.c.bf16 %v578_v17, %v575_v16  ;;  %697 = vmatprep.mubr.f32.mxu1 %v7371_v15  ;;  %v6693_v17 = vpack.c.bf16 %v607_v14, %v604_v13 }
  0x85   :  { %6670 = vmatpush1.bf16.msra.mxu1 %v6669_v18  ;;  %v611_v18 = vld [vmem:[#allocation5 + $0x158] sm:$0xff] }
  0x86   :  { %6672 = vmatprep.subr.bf16.mxu1 %v6671_v19  ;;  %v614_v19 = vld [vmem:[#allocation5 + $0x170] sm:$0xff] }
  0x87   :  { %6666 = vmatpush3.bf16.msra.mxu0 %v6665_v22  ;;  %v574_v22 = vld [vmem:[#allocation5 + $0x30] sm:$0xff] }
  0x8a   :  { %435 = vmatmul.mubr.f32.vlgmr.msra.gmra.mrb[2].mxu0 %v125_v23  ;;  %v6699_v23 = vpack.c.bf16 %v573_v21, %v570_v20  ;;  %v606_v20 = vld [vmem:[#allocation5 + $0x130] sm:$0xff]  ;;  %v6695_v21 = vpack.c.bf16 %v614_v19, %v611_v18 }
  0x8c   :  { %6700 = vmatprep.subr.bf16.mxu0 %v6699_v23 }
  0x8d   :  { %6702 = vmatpush3.bf16.msra.mxu0 %v6699_v23  ;;  %v610_v23 = vld [vmem:[#allocation5 + $0x150] sm:$0xff] }
  0xcd   :  { %v445_v26 = vpop.permute.xlu0 %444 }
  0xce   :  { %v453_v27 = vmul.f32 %v5623_v24, %v445_v26  ;;  %v577_v24 = vld [vmem:[#allocation5 + $0x48] sm:$0xff]  ;;  %v584_v26 = vld [vmem:[#allocation5 + $0x80] sm:$0xff] }
  0xd0   :  { %v461_v28 = vadd.f32 %v5624_v25, %v453_v27  ;;  %v581_v25 = vld [vmem:[#allocation5 + $0x68] sm:$0xff]  ;;  %v6673_v27 = vpack.c.bf16 %v577_v24, %v574_v22 }
  0xd1   :  { %v609_v22 = vld [vmem:[#allocation5 + $0x148] sm:$0xff] }
  0xd2   :  { %v463_v29 = vmul.f32 0.70710677, %v461_v28  ;;  %v462_v31 = vmul.f32 0.5, %v461_v28  ;;  %v576_v28 = vld [vmem:[#allocation5 + $0x40] sm:$0xff]  ;;  %6674 = vmatpush1.bf16.msra.mxu1 %v6673_v27  ;;  %v613_v24 = vld [vmem:[#allocation5 + $0x168] sm:$0xff] }
  0xd3   :  { %v612_v27 = vld [vmem:[#allocation5 + $0x160] sm:$0xff] }
  0xd4   :  { %7173 = verf.f32 %v463_v29  ;;  %v579_v29 = vld [vmem:[#allocation5 + $0x58] sm:$0xff] }
  0xde   :  { %v7174_v30 = vpop.eup %7173 }
  0xdf   :  { %v465_v32 = vadd.f32 1.0, %v7174_v30  ;;  %v6675_v30 = vpack.c.bf16 %v584_v26, %v581_v25  ;;  %v6723_v25 = vpack.c.bf16 %v609_v22, %v606_v20  ;;  %v6697_v26 = vpack.c.bf16 %v613_v24, %v610_v23 }
  0xe1   :  { %v466_v33 = vmul.f32 %v465_v32, %v462_v31  ;;  %v6703_v31 = vpack.c.bf16 %v579_v29, %v576_v28  ;;  %v580_v32 = vld [vmem:[#allocation5 + $0x60] sm:$0xff]  ;;  %6676 = vmatprep.subr.bf16.mxu1 %v6675_v30  ;;  %v615_v28 = vld [vmem:[#allocation5 + $0x178] sm:$0xff] }
  0xe2   :  { %v6727_v29 = vpack.c.bf16 %v615_v28, %v612_v27 }
  0xe3   :  { %v470_v34 = vsel %vm469_vm0, %v466_v33, 0.0  ;;  %6704 = vmatprep.subr.bf16.mxu0 %v6703_v31 }
  0xe4   :  { %471 = vadd.xlane.f32.xlu0 %v470_v34  ;;  %6706 = vmatpush3.bf16.msra.mxu0 %v6703_v31 }
 0x13d   :  { %v5827_v36 = vpop.f32.mrb[0].mxu0 }
 0x13e   :  { %v5828_v37 = vpop.f32.mrb[1].mxu0 }
 0x13f   :  { %v5829_v38 = vadd.f32 %v5828_v37, %v5827_v36 }
 0x141   :  { %v297_v40 = vadd.f32 %v5829_v38, %v5622_v39 }
 0x144   :  { %v5862_v41 = vpop.f32.mrb[0].mxu1 }
 0x145   :  { %v5863_v42 = vpop.f32.mrb[1].mxu1 }
 0x146   :  { %v5864_v43 = vadd.f32 %v5863_v42, %v5862_v41 }
 0x148   :  { %v367_v44 = vadd.f32 %v5864_v43, %v297_v40  ;;  %v587_v43 = vld [vmem:[#allocation5 + $0x98] sm:$0xff] }
 0x15d   :  { %v5897_v50 = vpop.f32.mrb[2].mxu0 }
 0x15e   :  { %v5898_v51 = vpop.f32.mrb[3].mxu0 }
 0x15f   :  { %v5899_v52 = vadd.f32 %v5898_v51, %v5897_v50 }
 0x161   :  { %v437_v54 = vadd.f32 %v5899_v52, %v367_v44  ;;  %v590_v44 = vld [vmem:[#allocation5 + $0xb0] sm:$0xff]  ;;  %v593_v52 = vld [vmem:[#allocation5 + $0xc8] sm:$0xff] }
 0x163   :  { %v505_v56 = vadd.f32 %v504_v53, %v437_v54  ;;  %v516_v57 = vrot.slane %v437_v54, 4  ;;  %v596_v53 = vld [vmem:[#allocation5 + $0xe0] sm:$0xff] }
 0x164   :  { %v588_v54 = vld [vmem:[#allocation5 + $0xa0] sm:$0xff] }
 0x165   :  { %506 = vst [vmem:[#allocation2 + $0x1] sm:$0xf] %v505_v56  ;;  %v518_v58 = vadd.f32 %v516_v57, %v514_v55  ;;  %v6683_v55 = vpack.c.bf16 %v596_v53, %v593_v52  ;;  %v591_v56 = vld [vmem:[#allocation5 + $0xb8] sm:$0xff]  ;;  %v592_v57 = vld [vmem:[#allocation5 + $0xc0] sm:$0xff] }
 0x167   :  { %519 = vst [vmem:[#allocation2 + $0x9] sm:$0xf] %v518_v58  ;;  %v595_v58 = vld [vmem:[#allocation5 + $0xd8] sm:$0xff] }
 0x171   :  { %v472_v45 = vpop.xlane.xlu0 %471 }
 0x172   :  { %v474_v46 = vmul.f32 0.0078125, %v472_v45  ;;  %v582_v45 = vld [vmem:[#allocation5 + $0x70] sm:$0xff] }
 0x174   :  { %v475_v47 = vsub.f32 %v466_v33, %v474_v46  ;;  %v583_v33 = vld [vmem:[#allocation5 + $0x78] sm:$0xff]  ;;  %v6679_v46 = vpack.c.bf16 %v590_v44, %v587_v43 }
 0x175   :  { %v6677_v34 = vpack.c.bf16 %v583_v33, %v580_v32 }
 0x176   :  { %v476_v48 = vmul.f32 %v475_v47, %v475_v47 }
 0x177   :  { %6678 = vmatpush1.bf16.msra.mxu1 %v6677_v34 }
 0x178   :  { %v477_v49 = vsel %vm469_vm0, %v476_v48, 0.0  ;;  %v586_v48 = vld [vmem:[#allocation5 + $0x90] sm:$0xff]  ;;  %6680 = vmatprep.subr.bf16.mxu1 %v6679_v46 }
 0x179   :  { %478 = vadd.xlane.f32.xlu1 %v477_v49  ;;  %v589_v49 = vld [vmem:[#allocation5 + $0xa8] sm:$0xff] }
 0x17a   :  { %v6681_v51 = vpack.c.bf16 %v589_v49, %v586_v48  ;;  %v616_v49 = vld [vmem:[%s8649_s12] sm:$0x7] }
 0x17c   :  { %6682 = vmatpush1.bf16.msra.mxu1 %v6681_v51 }
 0x17d   :  { %6684 = vmatprep.subr.bf16.mxu1 %v6683_v55 }
 0x206   :  { %v479_v59 = vpop.xlane.xlu1 %478 }
 0x207   :  { %v480_v60 = vmul.f32 0.0078125, %v479_v59  ;;  %v6711_v59 = vpack.c.bf16 %v591_v56, %v588_v54 }
 0x209   :  { %v481_v61 = vadd.f32 1e-05, %v480_v60  ;;  %v6685_v60 = vpack.c.bf16 %v595_v58, %v592_v57 }
 0x20b   :  { %7175 = vrsqrt.f32 %v481_v61  ;;  %6686 = vmatpush1.bf16.msra.mxu1 %v6685_v60  ;;  %v599_v61 = vld [vmem:[#allocation5 + $0xf8] sm:$0xff] }
 0x215   :  { %v7176_v62 = vpop.eup %7175 }
 0x216   :  { %v483_v0 = vmul.f32 %v7176_v62, %v475_v47  ;;  %v585_v47 = vld [vmem:[#allocation5 + $0x88] sm:$0xff]  ;;  %v602_v62 = vld [vmem:[#allocation5 + $0x110] sm:$0xff] }
 0x217   :  { %v6707_v50 = vpack.c.bf16 %v585_v47, %v582_v45 }
 0x218   :  { %v490_v2 = vmul.f32 %v5625_v63, %v483_v0  ;;  %v594_v63 = vld [vmem:[#allocation5 + $0xd0] sm:$0xff]  ;;  %v6687_v0 = vpack.c.bf16 %v602_v62, %v599_v61 }
 0x219   :  { %6708 = vmatprep.subr.bf16.mxu0 %v6707_v50 }
 0x21a   :  { %v497_v4 = vadd.f32 %v5626_v1, %v490_v2  ;;  %6710 = vmatpush3.bf16.msra.mxu0 %v6707_v50  ;;  %v597_v1 = vld [vmem:[#allocation5 + $0xe8] sm:$0xff]  ;;  %v598_v2 = vld [vmem:[#allocation5 + $0xf0] sm:$0xff]  ;;  %6688 = vmatprep.subr.bf16.mxu1 %v6687_v0 }
 0x21b   :  { %6712 = vmatprep.subr.bf16.mxu0 %v6711_v59 }
 0x21c   :  { %v502_v6 = vadd.f32 %v501_v3, %v497_v4  ;;  %v510_v7 = vrot.slane %v497_v4, 1  ;;  %v601_v3 = vld [vmem:[#allocation5 + $0x108] sm:$0xff]  ;;  %v6715_v4 = vpack.c.bf16 %v597_v1, %v594_v63 }
 0x21e   :  { %503 = vst [vmem:[#allocation2] sm:$0x1] %v502_v6  ;;  %v512_v8 = vadd.f32 %v510_v7, %v508_v5  ;;  %6714 = vmatpush3.bf16.msra.mxu0 %v6711_v59  ;;  %v6689_v5 = vpack.c.bf16 %v601_v3, %v598_v2  ;;  %v605_v6 = vld [vmem:[#allocation5 + $0x128] sm:$0xff]  ;;  %v608_v7 = vld [vmem:[#allocation5 + $0x140] sm:$0xff] }
 0x21f   :  { %v6691_v11 = vpack.c.bf16 %v608_v7, %v605_v6  ;;  %6716 = vmatprep.subr.bf16.mxu0 %v6715_v4 }
 0x220   :  { %513 = vst [vmem:[#allocation2 + $0x8] sm:$0x1] %v512_v8  ;;  %v600_v8 = vld [vmem:[#allocation5 + $0x100] sm:$0xff]  ;;  %6690 = vmatpush1.bf16.msra.mxu1 %v6689_v5 }
 0x221   :  { %v6719_v16 = vpack.c.bf16 %v603_v12, %v600_v8  ;;  %6692 = vmatprep.subr.bf16.mxu1 %v6691_v11 }
 0x222   :  { %6718 = vmatpush3.bf16.msra.mxu0 %v6715_v4 }
 0x223   :  { %6720 = vmatprep.subr.bf16.mxu0 %v6719_v16 }
 0x224   :  { %6694 = vmatpush1.bf16.msra.mxu1 %v6693_v17 }
 0x225   :  { %v7583_v9 = vld [vmem:[#allocation2] sm:$0xff]  ;;  %6696 = vmatprep.subr.bf16.mxu1 %v6695_v21 }
 0x226   :  { %530 = vadd.xlane.f32.xlu1 %v7583_v9  ;;  %6722 = vmatpush3.bf16.msra.mxu0 %v6719_v16 }
 0x227   :  { %v7586_v10 = vld [vmem:[#allocation2 + $0x8] sm:$0xff]  ;;  %6724 = vmatprep.subr.bf16.mxu0 %v6723_v25 }
 0x228   :  { %6698 = vmatpush1.bf16.msra.mxu1 %v6697_v26 }
 0x229   :  { %6253 = vmatprep.subr.mxu1 %v7371_v15 }
 0x22a   :  { %532 = vadd.xlane.f32.xlu1 %v7586_v10  ;;  %6726 = vmatpush3.bf16.msra.mxu0 %v6723_v25 }
 0x22b   :  { %6728 = vmatprep.subr.bf16.mxu0 %v6727_v29 }
 0x22e   :  { %6730 = vmatpush3.bf16.msra.mxu0 %v6727_v29 }
 0x22f   :  { %6288 = vmatprep.subr.mxu0 %v7371_v15 }
 0x2b3   :  { %v531_v35 = vpop.xlane.xlu1 %530 }
 0x2b4   :  { %v534_v36 = vmul.f32 0.0078125, %v531_v35 }
 0x2b6   :  { %v7590_v37 = vsub.f32 %v7583_v9, %v534_v36 }
 0x2b7   :  { %v533_v38 = vpop.xlane.xlu1 %532 }
 0x2b8   :  { %v535_v39 = vmul.f32 0.0078125, %v533_v38  ;;  %v538_v40 = vmul.f32 %v7590_v37, %v7590_v37  ;;  %v5628_v38 = vld [vmem:[%s8687_s27] ss:$0 sm:$0xff] }
 0x2ba   :  { %v7595_v41 = vsub.f32 %v7586_v10, %v535_v39  ;;  %540 = vadd.xlane.f32.xlu1 %v538_v40  ;;  %v5629_v40 = vld [vmem:[%s8647_s10] ss:$0 sm:$0xff] }
 0x2bc   :  { %v539_v42 = vmul.f32 %v7595_v41, %v7595_v41 }
 0x2be   :  { %542 = vadd.xlane.f32.xlu1 %v539_v42 }
 0x347   :  { %v541_v30 = vpop.xlane.xlu1 %540 }
 0x348   :  { %v544_v31 = vmul.f32 0.0078125, %v541_v30 }
 0x34a   :  { %v546_v32 = vadd.f32 1e-06, %v544_v31 }
 0x34b   :  { %v543_v33 = vpop.xlane.xlu1 %542 }
 0x34c   :  { %7177 = vrsqrt.f32 %v546_v32  ;;  %v545_v34 = vmul.f32 0.0078125, %v543_v33 }
 0x34e   :  { %v547_v35 = vadd.f32 1e-06, %v545_v34 }
 0x350   :  { %7179 = vrsqrt.f32 %v547_v35 }
 0x356   :  { %v7178_v36 = vpop.eup %7177 }
 0x357   :  { %v550_v39 = vmul.f32 %v7178_v36, %v7590_v37  ;;  %v522_v37 = vlaneseq }
 0x359   :  { %v558_v42 = vmul.f32 %v5628_v38, %v550_v39  ;;  %v7615_v48 = vshrl.u32 %v522_v37, 7  ;;  %v523_v3 = vand.u32 127, %v522_v37 }
 0x35a   :  { %v7180_v43 = vpop.eup %7179 }
 0x35b   :  { %v566_v44 = vadd.f32 %v5629_v40, %v558_v42  ;;  %v551_v45 = vmul.f32 %v7180_v43, %v7595_v41  ;;  %v7618_v41 = vsub.s32 1, %v7615_v48  ;;  %v7624_v50 = vsub.s32 0, %v7615_v48 }
 0x35c   :  { %v7627_v51 = vsub.s32 2, %v7615_v48  ;;  %vm524_vm3 = vcmp.ge.s32.totalorder %v523_v3, 5 }
 0x35d   :  { %698 = vmatmul.mubr.f32.vlgmr.msra.gmra.mrb[2].mxu1 %v566_v44  ;;  %6250 = vmatprep.mubr.f32.mxu0 %v566_v44  ;;  %v559_v46 = vmul.f32 %v5628_v38, %v551_v45  ;;  %v625_v52 = vrot.slane %v616_v49, %v7618_v41  ;;  %v621_v54 = vrot.slane %v616_v49, %v7624_v50  ;;  %v5627_v4 = vsel %vm524_vm3, 1.0, %v7371_v15 }
 0x35e   :  { %703 = vmatprep.mubr.f32.mxu1 %v7371_v15  ;;  %v629_v56 = vrot.slane %v616_v49, %v7627_v51  ;;  %v7665_v5 = vmul.f32 -1e+30, %v5627_v4 }
 0x35f   :  { %v567_v47 = vadd.f32 %v5629_v40, %v559_v46 }
 0x361   :  { %704 = vmatmul.mubr.f32.gmra.mrb[4].mxu1 %v567_v47  ;;  %6251 = vmatmul.mubr.f32.vlgmr.msra.gmra.mrb[4].mxu0 %v567_v47 }
 0x362   :  { %6255 = vmatprep.mubr.msk.f32.mxu1 %vm7372_vm1, %v7371_v15  ;;  %6290 = vmatprep.mubr.msk.f32.mxu0 %vm7372_vm1, %v7371_v15 }
 0x430   :  { %v699_v53 = vpop.f32.mrb[2].mxu1 }
 0x431   :  { %v701_v55 = vpop.f32.mrb[3].mxu1  ;;  %v7638_v60 = vadd.f32 %v699_v53, %v621_v54 }
 0x432   :  { %v7632_v57 = vadd.f32 %v701_v55, %v625_v52 }
 0x434   :  { %1125 = vrot.lane.b32.xlu0 %v7632_v57, %s7373_s2  ;;  %v705_v58 = vpop.f32.mrb[4].mxu1  ;;  %v6252_v59 = vpop.f32.mrb[4].mxu0  ;;  %6254 = vmatpush3.xpose.msk.msra.mxu1 %vm801_vm2, %v7632_v57 }
 0x435   :  { %v7640_v61 = vadd.f32 %v705_v58, %v621_v54  ;;  %v7642_v62 = vadd.f32 %v6252_v59, %v629_v56  ;;  %v707_v63 = vpop.f32.mrb[5].mxu1  ;;  %v776_v0 = vpop.f32.mrb[5].mxu0  ;;  %6258 = vmatprep.subr.mxu1 %v7371_v15 }
 0x436   :  { %v7645_v1 = vadd.f32 %v707_v63, %v625_v52  ;;  %v7656_v2 = vadd.f32 %v776_v0, %v629_v56 }
 0x437   :  { %6256 = vmatmul.mubr.msk.f32.vlgmr.msra.gmra.mrb[6].mxu1 %vm801_vm2, %v7638_v60 }
 0x438   :  { %6259 = vmatpush3.xpose.msk.msra.mxu1 %vm801_vm2, %v7645_v1  ;;  %1201 = vrot.lane.b32.xlu0 %v7640_v61, %s7373_s2 }
 0x439   :  { %6260 = vmatprep.mubr.msk.f32.mxu1 %vm7372_vm1, %v7371_v15  ;;  %6263 = vmatprep.subr.mxu1 %v7371_v15 }
 0x43b   :  { %6261 = vmatmul.mubr.msk.f32.vlgmr.msra.gmra.mrb[8].mxu1 %vm801_vm2, %v7640_v61 }
 0x43c   :  { %6264 = vmatpush3.msra.mxu1 %v7656_v2  ;;  %6265 = vmatprep.mubr.msk.f32.mxu1 %vm7372_vm1, %v7371_v15 }
 0x43d   :  { %6268 = vmatprep.subr.mxu1 %v7371_v15 }
 0x4a6   :  { %v1126_v34 = vpop.permute.xlu0 %1125 }
 0x4aa   :  { %v1202_v36 = vpop.permute.xlu0 %1201 }
 0x50a   :  { %v874_v6 = vpop.f32.mrb[6].mxu1 }
 0x50b   :  { %v875_v7 = vadd.f32 %v874_v6, %v7665_v5  ;;  %v6257_v8 = vpop.f32.mrb[7].mxu1  ;;  %v785_v6 = vld [vmem:[%s8650_s13] sm:$0xff] }
 0x50d   :  { %v955_v11 = vsel %vm954_vm4, %v875_v7, -inf }
 0x50e   :  { %956 = vmax.xlane.f32.xlu1 %v955_v11  ;;  %v950_v12 = vpop.f32.mrb[8].mxu1 }
 0x50f   :  { %v951_v13 = vadd.f32 %v950_v12, %v7665_v5  ;;  %v6262_v14 = vpop.f32.mrb[9].mxu1  ;;  %v789_v12 = vld [vmem:[%s8650_s13 + $0x20] sm:$0xff] }
 0x511   :  { %v958_v16 = vsel %vm954_vm4, %v951_v13, -inf }
 0x512   :  { %959 = vmax.xlane.f32.xlu1 %v958_v16 }
 0x523   :  { %1123 = vrot.lane.b32.xlu1 %v7638_v60, %s7373_s2 }
 0x59b   :  { %v957_v17 = vpop.xlane.xlu1 %956 }
 0x59c   :  { %v961_v18 = vsub.f32 %v875_v7, %v957_v17  ;;  %v786_v7 = vld [vmem:[%s8650_s13 + $0x8] sm:$0xff] }
 0x59d   :  { %v6739_v11 = vpack.c.bf16 %v786_v7, %v785_v6 }
 0x59e   :  { %v963_v19 = vmul.f32 1.442695, %v961_v18 }
 0x59f   :  { %v960_v20 = vpop.xlane.xlu1 %959 }
 0x5a0   :  { %7181 = vpow2.f32 %v963_v19  ;;  %v962_v21 = vsub.f32 %v951_v13, %v960_v20  ;;  %v790_v13 = vld [vmem:[%s8650_s13 + $0x28] sm:$0xff]  ;;  %v787_v19 = vld [vmem:[%s8650_s13 + $0x10] sm:$0xff]  ;;  %v788_v20 = vld [vmem:[%s8650_s13 + $0x18] sm:$0xff] }
 0x5a1   :  { %v6731_v17 = vpack.c.bf16 %v790_v13, %v789_v12 }
 0x5a2   :  { %v965_v22 = vmul.f32 1.442695, %v962_v21 }
 0x5a3   :  { %v1124_v27 = vpop.permute.xlu1 %1123 }
 0x5a4   :  { %7183 = vpow2.f32 %v965_v22 }
 0x5aa   :  { %v7182_v23 = vpop.eup %7181 }
 0x5ab   :  { %v967_v24 = vsel %vm954_vm4, %v7182_v23, 0.0 }
 0x5ac   :  { %968 = vadd.xlane.f32.xlu1 %v967_v24  ;;  %v791_v24 = vld [vmem:[%s8650_s13 + $0x30] sm:$0xff] }
 0x5ae   :  { %v7184_v25 = vpop.eup %7183 }
 0x5af   :  { %v970_v26 = vsel %vm954_vm4, %v7184_v25, 0.0 }
 0x5b0   :  { %971 = vadd.xlane.f32.xlu1 %v970_v26 }
 0x5c1   :  { %1203 = vrot.lane.b32.xlu1 %v7645_v1, %s7373_s2 }
 0x639   :  { %v969_v28 = vpop.xlane.xlu1 %968 }
 0x63a   :  { %7185 = vrcp.f32 %v969_v28 }
 0x63d   :  { %v972_v29 = vpop.xlane.xlu1 %971 }
 0x63e   :  { %7187 = vrcp.f32 %v972_v29 }
 0x641   :  { %v1204_v35 = vpop.permute.xlu1 %1203 }
 0x644   :  { %v7186_v30 = vpop.eup %7185 }
 0x645   :  { %v974_v31 = vmul.f32 %v7186_v30, %v7182_v23  ;;  %v6743_v23 = vpack.c.bf16 %v788_v20, %v787_v19  ;;  %v796_v19 = vld [vmem:[%s8650_s13 + $0x58] sm:$0xff] }
 0x647   :  { %6266 = vmatmul.mubr.msk.f32.vlgmr.msra.gmra.mrb[10].mxu1 %vm954_vm4, %v974_v31 }
 0x648   :  { %v7188_v32 = vpop.eup %7187  ;;  %6269 = vmatpush3.msra.mxu1 %v7642_v62  ;;  %6270 = vmatprep.mubr.msk.f32.mxu1 %vm7372_vm1, %v7371_v15 }
 0x649   :  { %v976_v33 = vmul.f32 %v7188_v32, %v7184_v25  ;;  %6273 = vmatprep.subr.mxu1 %v7371_v15  ;;  %v792_v25 = vld [vmem:[%s8650_s13 + $0x38] sm:$0xff] }
 0x64a   :  { %v6735_v28 = vpack.c.bf16 %v792_v25, %v791_v24 }
 0x64b   :  { %6271 = vmatmul.mubr.msk.f32.vlgmr.msra.gmra.mrb[12].mxu1 %vm954_vm4, %v976_v33 }
 0x64c   :  { %6275 = vmatprep.mubr.msk.f32.mxu1 %vm7372_vm1, %v7371_v15 }
 0x64f   :  { %6274 = vmatpush3.xpose.msk.msra.mxu1 %vm801_vm2, %v1126_v34 }
 0x650   :  { %6278 = vmatprep.subr.mxu1 %v7371_v15 }
 0x652   :  { %6276 = vmatmul.mubr.msk.f32.vlgmr.msra.gmra.mrb[14].mxu1 %vm801_vm2, %v1124_v27 }
 0x653   :  { %6279 = vmatpush3.xpose.msk.msra.mxu1 %vm801_vm2, %v1204_v35  ;;  %6280 = vmatprep.mubr.msk.f32.mxu1 %vm7372_vm1, %v7371_v15 }
 0x654   :  { %6283 = vmatprep.subr.mxu1 %v7371_v15 }
 0x656   :  { %6281 = vmatmul.mubr.msk.f32.vlgmr.msra.gmra.mrb[16].mxu1 %vm801_vm2, %v1202_v36 }
 0x657   :  { %6285 = vmatprep.mubr.msk.f32.mxu1 %vm7372_vm1, %v7371_v15 }
 0x71a   :  { %v1046_v38 = vpop.f32.mrb[10].mxu1 }
 0x71b   :  { %v6267_v39 = vpop.f32.mrb[11].mxu1 }
 0x71e   :  { %v7695_v40 = vpop.f32.mrb[12].mxu1 }
 0x71f   :  { %v6272_v42 = vpop.f32.mrb[13].mxu1 }
 0x725   :  { %v1197_v43 = vpop.f32.mrb[14].mxu1 }
 0x726   :  { %v1198_v44 = vadd.f32 %v1197_v43, %v7665_v5  ;;  %v6277_v45 = vpop.f32.mrb[15].mxu1 }
 0x728   :  { %v1279_v46 = vsel %vm954_vm4, %v1198_v44, -inf }
 0x729   :  { %1280 = vmax.xlane.f32.xlu1 %v1279_v46  ;;  %v1275_v47 = vpop.f32.mrb[16].mxu1 }
 0x72a   :  { %v1276_v37 = vadd.f32 %v1275_v47, %v7665_v5  ;;  %v6282_v49 = vpop.f32.mrb[17].mxu1 }
 0x72c   :  { %v1282_v52 = vsel %vm954_vm4, %v1276_v37, -inf }
 0x72d   :  { %1283 = vmax.xlane.f32.xlu0 %v1282_v52 }
 0x7b6   :  { %v1281_v53 = vpop.xlane.xlu1 %1280 }
 0x7b7   :  { %v1285_v54 = vsub.f32 %v1198_v44, %v1281_v53 }
 0x7b9   :  { %v1287_v55 = vmul.f32 1.442695, %v1285_v54 }
 0x7ba   :  { %v1284_v56 = vpop.xlane.xlu0 %1283 }
 0x7bb   :  { %7189 = vpow2.f32 %v1287_v55  ;;  %v1286_v58 = vsub.f32 %v1276_v37, %v1284_v56 }
 0x7bd   :  { %v1289_v59 = vmul.f32 1.442695, %v1286_v58 }
 0x7bf   :  { %7191 = vpow2.f32 %v1289_v59 }
 0x7c5   :  { %v7190_v63 = vpop.eup %7189 }
 0x7c6   :  { %v1291_v0 = vsel %vm954_vm4, %v7190_v63, 0.0 }
 0x7c7   :  { %1292 = vadd.xlane.f32.xlu0 %v1291_v0 }
 0x7c9   :  { %v7192_v3 = vpop.eup %7191 }
 0x7ca   :  { %v1294_v4 = vsel %vm954_vm4, %v7192_v3, 0.0 }
 0x7cb   :  { %1295 = vadd.xlane.f32.xlu1 %v1294_v4 }
 0x7dc   :  { %1379 = vrot.lane.b32.xlu1 %v7642_v62, %s7373_s2 }
 0x7dd   :  { %1302 = vrot.lane.b32.xlu0 %v7656_v2, %s7373_s2 }
 0x7e0   :  { %1619 = vrot.lane.b32.xlu1 %v7632_v57, %s7374_s9 }
 0x7e1   :  { %1617 = vrot.lane.b32.xlu0 %v7638_v60, %s7374_s9 }
 0x7e4   :  { %1697 = vrot.lane.b32.xlu1 %v7645_v1, %s7374_s9 }
 0x7e5   :  { %1695 = vrot.lane.b32.xlu0 %v7640_v61, %s7374_s9 }
 0x854   :  { %v1293_v8 = vpop.xlane.xlu0 %1292 }
 0x855   :  { %7193 = vrcp.f32 %v1293_v8 }
 0x858   :  { %v1296_v14 = vpop.xlane.xlu1 %1295  ;;  %v1303_v16 = vpop.permute.xlu0 %1302 }
 0x859   :  { %7195 = vrcp.f32 %v1296_v14  ;;  %6284 = vmatpush3.msra.mxu1 %v1303_v16 }
 0x85a   :  { %6740 = vmatprep.subr.bf16.mxu1 %v6739_v11 }
 0x85c   :  { %v1380_v18 = vpop.permute.xlu1 %1379  ;;  %v1618_v34 = vpop.permute.xlu0 %1617 }
 0x85d   :  { %6289 = vmatpush3.msra.mxu0 %v1380_v18  ;;  %v795_v18 = vld [vmem:[%s8650_s13 + $0x50] sm:$0xff] }
 0x85e   :  { %6732 = vmatprep.subr.bf16.mxu0 %v6731_v17  ;;  %v6751_v20 = vpack.c.bf16 %v796_v19, %v795_v18  ;;  %v2498_v18 = vld [vmem:[%s8654_s17 + $0x20] sm:$0xff] }
 0x85f   :  { %v7194_v21 = vpop.eup %7193 }
 0x860   :  { %v1298_v22 = vmul.f32 %v7194_v21, %v7190_v63  ;;  %v1620_v31 = vpop.permute.xlu1 %1619  ;;  %v1696_v36 = vpop.permute.xlu0 %1695 }
 0x862   :  { %6286 = vmatmul.mubr.msk.f32.vlgmr.msra.gmra.mrb[18].mxu1 %vm954_vm4, %v1298_v22 }
 0x863   :  { %v7196_v26 = vpop.eup %7195  ;;  %6742 = vmatpush3.bf16.msra.mxu1 %v6739_v11  ;;  %6312 = vmatprep.mubr.msk.f32.mxu1 %vm801_vm2, %v1046_v38 }
 0x864   :  { %v1300_v27 = vmul.f32 %v7196_v26, %v7192_v3  ;;  %6744 = vmatprep.subr.bf16.mxu1 %v6743_v23  ;;  %v1698_v35 = vpop.permute.xlu1 %1697  ;;  %v794_v3 = vld [vmem:[%s8650_s13 + $0x48] sm:$0xff] }
 0x866   :  { %6291 = vmatmul.mubr.msk.f32.vlgmr.msra.gmra.mrb[6].mxu0 %vm954_vm4, %v1300_v27 }
 0x867   :  { %6746 = vmatpush3.bf16.msra.mxu1 %v6743_v23  ;;  %6734 = vmatpush3.bf16.msra.mxu0 %v6731_v17 }
 0x868   :  { %6736 = vmatprep.subr.bf16.mxu0 %v6735_v28 }
 0x86a   :  { %6313 = vmatmul.mubr.msk.f32.vlgmr.msra.gmra.mrb[20].mxu1 %vm801_vm2, %v7695_v40 }
 0x86b   :  { %6738 = vmatpush3.bf16.msra.mxu0 %v6735_v28 }
 0x86c   :  { %6315 = vmatprep.subr.mxu0 %v7371_v15 }
 0x935   :  { %v1374_v29 = vpop.f32.mrb[18].mxu1 }
 0x936   :  { %v6287_v30 = vpop.f32.mrb[19].mxu1  ;;  %6301 = vmatprep.mubr.msk.f32.mxu0 %vm801_vm2, %v1374_v29 }
 0x939   :  { %v1451_v32 = vpop.f32.mrb[6].mxu0 }
 0x93a   :  { %v6292_v33 = vpop.f32.mrb[7].mxu0  ;;  %6302 = vmatmul.mubr.msk.f32.vlgmr.msra.gmra.mrb[8].mxu0 %vm801_vm2, %v1451_v32 }
 0x93b   :  { %6316 = vmatpush3.xpose.msk.msra.mxu0 %vm801_vm2, %v1620_v31  ;;  %6317 = vmatprep.mubr.msk.f32.mxu0 %vm7372_vm1, %v7371_v15 }
 0x93c   :  { %6320 = vmatprep.subr.mxu0 %v7371_v15 }
 0x93e   :  { %6318 = vmatmul.mubr.msk.f32.vlgmr.msra.gmra.mrb[10].mxu0 %vm801_vm2, %v1618_v34 }
 0x93f   :  { %6321 = vmatpush3.xpose.msk.msra.mxu0 %vm801_vm2, %v1698_v35  ;;  %6322 = vmatprep.mubr.msk.f32.mxu0 %vm7372_vm1, %v7371_v15 }
 0x940   :  { %6325 = vmatprep.subr.mxu0 %v7371_v15 }
 0x942   :  { %6323 = vmatmul.mubr.msk.f32.vlgmr.msra.gmra.mrb[12].mxu0 %vm801_vm2, %v1696_v36 }
 0x943   :  { %6327 = vmatprep.mubr.msk.f32.mxu0 %vm7372_vm1, %v7371_v15 }
 0xa0d   :  { %v7759_v38 = vpop.f32.mrb[8].mxu0 }
 0xa0e   :  { %v7761_v39 = vpop.f32.mrb[9].mxu0 }
 0xa11   :  { %v1691_v40 = vpop.f32.mrb[10].mxu0 }
 0xa12   :  { %v1692_v42 = vadd.f32 %v1691_v40, %v7665_v5  ;;  %v6319_v43 = vpop.f32.mrb[11].mxu0 }
 0xa14   :  { %v1773_v44 = vsel %vm954_vm4, %v1692_v42, -inf }
 0xa15   :  { %1774 = vmax.xlane.f32.xlu1 %v1773_v44  ;;  %v1769_v45 = vpop.f32.mrb[12].mxu0 }
 0xa16   :  { %v1770_v46 = vadd.f32 %v1769_v45, %v7665_v5  ;;  %v6324_v47 = vpop.f32.mrb[13].mxu0 }
 0xa17   :  { %v797_v47 = vld [vmem:[%s8650_s13 + $0x60] sm:$0xff] }
 0xa18   :  { %v1776_v37 = vsel %vm954_vm4, %v1770_v46, -inf }
 0xa19   :  { %1777 = vmax.xlane.f32.xlu0 %v1776_v37  ;;  %v798_v37 = vld [vmem:[%s8650_s13 + $0x68] sm:$0xff] }
 0xa26   :  { %1871 = vrot.lane.b32.xlu1 %v7642_v62, %s7374_s9 }
 0xa2a   :  { %2032 = vrot.lane.b32.xlu1 %v7632_v57, %s7375_s0  ;;  %v793_v57 = vld [vmem:[%s8650_s13 + $0x40] sm:$0xff] }
 0xa2b   :  { %v6747_v4 = vpack.c.bf16 %v794_v3, %v793_v57 }
 0xa2d   :  { %6748 = vmatprep.subr.bf16.mxu1 %v6747_v4 }
 0xa2e   :  { %6750 = vmatpush3.bf16.msra.mxu1 %v6747_v4 }
 0xa2f   :  { %6752 = vmatprep.subr.bf16.mxu1 %v6751_v20 }
 0xa32   :  { %6754 = vmatpush3.bf16.msra.mxu1 %v6751_v20 }
 0xa33   :  { %6356 = vmatprep.subr.mxu1 %v7371_v15 }
 0xaa2   :  { %v1775_v49 = vpop.xlane.xlu1 %1774 }
 0xaa3   :  { %v1779_v52 = vsub.f32 %v1692_v42, %v1775_v49 }
 0xaa5   :  { %v1781_v53 = vmul.f32 1.442695, %v1779_v52  ;;  %v6755_v52 = vpack.c.bf16 %v798_v37, %v797_v47  ;;  %v2514_v47 = vld [vmem:[%s8654_s17 + $0xa0] sm:$0xff]  ;;  %v2512_v37 = vld [vmem:[%s8654_s17 + $0x90] sm:$0xff] }
 0xaa6   :  { %v1778_v54 = vpop.xlane.xlu0 %1777 }
 0xaa7   :  { %7197 = vpow2.f32 %v1781_v53  ;;  %v1780_v55 = vsub.f32 %v1770_v46, %v1778_v54 }
 0xaa9   :  { %v1783_v56 = vmul.f32 1.442695, %v1780_v55 }
 0xaab   :  { %7199 = vpow2.f32 %v1783_v56 }
 0xab1   :  { %v7198_v58 = vpop.eup %7197 }
 0xab2   :  { %v1785_v59 = vsel %vm954_vm4, %v7198_v58, 0.0 }
 0xab3   :  { %1786 = vadd.xlane.f32.xlu0 %v1785_v59  ;;  %v799_v59 = vld [vmem:[%s8650_s13 + $0x70] sm:$0xff] }
 0xab5   :  { %v7200_v63 = vpop.eup %7199 }
 0xab6   :  { %v1788_v0 = vsel %vm954_vm4, %v7200_v63, 0.0 }
 0xab7   :  { %1789 = vadd.xlane.f32.xlu1 %v1788_v0 }
 0xac8   :  { %2110 = vrot.lane.b32.xlu1 %v7645_v1, %s7375_s0  ;;  %v1872_v1 = vpop.permute.xlu1 %1871 }
 0xac9   :  { %1795 = vrot.lane.b32.xlu0 %v7656_v2, %s7374_s9 }
 0xacc   :  { %v2033_v6 = vpop.permute.xlu1 %2032 }
 0xacd   :  { %2030 = vrot.lane.b32.xlu0 %v7638_v60, %s7375_s0 }
 0xad1   :  { %2108 = vrot.lane.b32.xlu0 %v7640_v61, %s7375_s0 }
 0xb40   :  { %v1787_v7 = vpop.xlane.xlu0 %1786 }
 0xb41   :  { %7201 = vrcp.f32 %v1787_v7 }
 0xb44   :  { %v1790_v8 = vpop.xlane.xlu1 %1789  ;;  %v1796_v60 = vpop.permute.xlu0 %1795 }
 0xb45   :  { %7203 = vrcp.f32 %v1790_v8  ;;  %6326 = vmatpush3.msra.mxu0 %v1796_v60 }
 0xb46   :  { %6330 = vmatprep.subr.mxu0 %v7371_v15 }
 0xb48   :  { %v2031_v14 = vpop.permute.xlu0 %2030  ;;  %v2111_v16 = vpop.permute.xlu1 %2110 }
 0xb4b   :  { %v7202_v61 = vpop.eup %7201 }
 0xb4c   :  { %v1792_v11 = vmul.f32 %v7202_v61, %v7198_v58  ;;  %v2109_v17 = vpop.permute.xlu0 %2108  ;;  %v5662_v61 = vld [vmem:[%s8651_s14] ss:$0 sm:$0xff] }
 0xb4e   :  { %6328 = vmatmul.mubr.msk.f32.vlgmr.msra.gmra.mrb[14].mxu0 %vm954_vm4, %v1792_v11 }
 0xb4f   :  { %v7204_v12 = vpop.eup %7203  ;;  %6331 = vmatpush3.msra.mxu0 %v1872_v1  ;;  %6332 = vmatprep.mubr.msk.f32.mxu0 %vm7372_vm1, %v7371_v15 }
 0xb50   :  { %v1794_v13 = vmul.f32 %v7204_v12, %v7200_v63  ;;  %6346 = vmatprep.subr.mxu0 %v7371_v15  ;;  %v800_v63 = vld [vmem:[%s8650_s13 + $0x78] sm:$0xff] }
 0xb51   :  { %v6759_v0 = vpack.c.bf16 %v800_v63, %v799_v59 }
 0xb52   :  { %6333 = vmatmul.mubr.msk.f32.vlgmr.msra.gmra.mrb[16].mxu0 %vm954_vm4, %v1794_v13 }
 0xb53   :  { %6348 = vmatprep.mubr.msk.f32.mxu0 %vm7372_vm1, %v7371_v15 }
 0xb56   :  { %6347 = vmatpush3.xpose.msk.msra.mxu0 %vm801_vm2, %v2033_v6 }
 0xb57   :  { %6351 = vmatprep.subr.mxu0 %v7371_v15 }
 0xb59   :  { %6349 = vmatmul.mubr.msk.f32.vlgmr.msra.gmra.mrb[18].mxu0 %vm801_vm2, %v2031_v14 }
 0xb5a   :  { %6352 = vmatpush3.xpose.msk.msra.mxu0 %vm801_vm2, %v2111_v16  ;;  %6353 = vmatprep.mubr.msk.f32.mxu0 %vm7372_vm1, %v7371_v15  ;;  %v2501_v16 = vld [vmem:[%s8654_s17 + $0x38] sm:$0xff] }
 0xb5b   :  { %6361 = vmatprep.subr.mxu0 %v7371_v15 }
 0xb5d   :  { %6354 = vmatmul.mubr.msk.f32.vlgmr.msra.gmra.mrb[20].mxu0 %vm801_vm2, %v2109_v17  ;;  %v2494_v17 = vld [vmem:[%s8654_s17] sm:$0xff] }
 0xb5e   :  { %6363 = vmatprep.mubr.msk.f32.mxu0 %vm7372_vm1, %v7371_v15  ;;  %v6765_v20 = vpack.c.bf16 %v2498_v18, %v2494_v17  ;;  %v2526_v17 = vld [vmem:[%s8654_s17 + $0x100] sm:$0xff] }
 0xb5f   :  { %v2530_v18 = vld [vmem:[%s8654_s17 + $0x120] sm:$0xff] }
 0xc21   :  { %v1867_v21 = vpop.f32.mrb[14].mxu0 }
 0xc22   :  { %v6329_v22 = vpop.f32.mrb[15].mxu0  ;;  %6343 = vmatprep.mubr.msk.f32.mxu1 %vm801_vm2, %v1867_v21  ;;  %v2496_v21 = vld [vmem:[%s8654_s17 + $0x10] sm:$0xff] }
 0xc23   :  { %v2500_v22 = vld [vmem:[%s8654_s17 + $0x30] sm:$0xff] }
 0xc25   :  { %v1943_v23 = vpop.f32.mrb[16].mxu0 }
 0xc26   :  { %v6334_v24 = vpop.f32.mrb[17].mxu0  ;;  %6344 = vmatmul.mubr.msk.f32.vlgmr.msra.gmra.mrb[20].mxu1 %vm801_vm2, %v1943_v23  ;;  %v2503_v23 = vld [vmem:[%s8654_s17 + $0x48] sm:$0xff] }
 0xc27   :  { %6358 = vmatprep.mubr.msk.f32.mxu1 %vm7372_vm1, %v7371_v15  ;;  %v6797_v24 = vpack.c.bf16 %v2500_v22, %v2496_v21  ;;  %v2528_v21 = vld [vmem:[%s8654_s17 + $0x110] sm:$0xff] }
 0xc28   :  { %v2532_v22 = vld [vmem:[%s8654_s17 + $0x130] sm:$0xff] }
 0xc2c   :  { %v2104_v25 = vpop.f32.mrb[18].mxu0 }
 0xc2d   :  { %v2105_v26 = vadd.f32 %v2104_v25, %v7665_v5  ;;  %v6350_v27 = vpop.f32.mrb[19].mxu0  ;;  %v2507_v25 = vld [vmem:[%s8654_s17 + $0x68] sm:$0xff] }
 0xc2e   :  { %v2509_v27 = vld [vmem:[%s8654_s17 + $0x78] sm:$0xff] }
 0xc2f   :  { %v2186_v28 = vsel %vm954_vm4, %v2105_v26, -inf }
 0xc30   :  { %2187 = vmax.xlane.f32.xlu1 %v2186_v28  ;;  %v2182_v29 = vpop.f32.mrb[20].mxu0  ;;  %v6767_v28 = vpack.c.bf16 %v2507_v25, %v2503_v23  ;;  %v2535_v23 = vld [vmem:[%s8654_s17 + $0x148] sm:$0xff] }
 0xc31   :  { %v2183_v30 = vadd.f32 %v2182_v29, %v7665_v5  ;;  %v6355_v31 = vpop.f32.mrb[21].mxu0  ;;  %v2539_v25 = vld [vmem:[%s8654_s17 + $0x168] sm:$0xff] }
 0xc32   :  { %v2506_v31 = vld [vmem:[%s8654_s17 + $0x60] sm:$0xff] }
 0xc33   :  { %v2189_v32 = vsel %vm954_vm4, %v2183_v30, -inf }
 0xc34   :  { %2190 = vmax.xlane.f32.xlu0 %v2189_v32  ;;  %v2504_v32 = vld [vmem:[%s8654_s17 + $0x50] sm:$0xff] }
 0xcbd   :  { %v2188_v33 = vpop.xlane.xlu1 %2187 }
 0xcbe   :  { %v2192_v34 = vsub.f32 %v2105_v26, %v2188_v33  ;;  %v2505_v26 = vld [vmem:[%s8654_s17 + $0x58] sm:$0xff] }
 0xcbf   :  { %v6799_v29 = vpack.c.bf16 %v2509_v27, %v2505_v26  ;;  %v2537_v26 = vld [vmem:[%s8654_s17 + $0x158] sm:$0xff] }
 0xcc0   :  { %v2194_v35 = vmul.f32 1.442695, %v2192_v34  ;;  %v2508_v34 = vld [vmem:[%s8654_s17 + $0x70] sm:$0xff]  ;;  %v2541_v27 = vld [vmem:[%s8654_s17 + $0x178] sm:$0xff] }
 0xcc1   :  { %v2191_v36 = vpop.xlane.xlu0 %2190 }
 0xcc2   :  { %7205 = vpow2.f32 %v2194_v35  ;;  %v2193_v40 = vsub.f32 %v2183_v30, %v2191_v36  ;;  %v2502_v30 = vld [vmem:[%s8654_s17 + $0x40] sm:$0xff]  ;;  %v2511_v35 = vld [vmem:[%s8654_s17 + $0x88] sm:$0xff] }
 0xcc3   :  { %v6769_v33 = vpack.c.bf16 %v2506_v31, %v2502_v30  ;;  %v2515_v36 = vld [vmem:[%s8654_s17 + $0xa8] sm:$0xff]  ;;  %v2534_v30 = vld [vmem:[%s8654_s17 + $0x140] sm:$0xff] }
 0xcc4   :  { %v2196_v42 = vmul.f32 1.442695, %v2193_v40  ;;  %v6801_v40 = vpack.c.bf16 %v2508_v34, %v2504_v32  ;;  %v2538_v31 = vld [vmem:[%s8654_s17 + $0x160] sm:$0xff]  ;;  %v2536_v32 = vld [vmem:[%s8654_s17 + $0x150] sm:$0xff] }
 0xcc5   :  { %v2540_v34 = vld [vmem:[%s8654_s17 + $0x170] sm:$0xff] }
 0xcc6   :  { %7207 = vpow2.f32 %v2196_v42  ;;  %v6771_v42 = vpack.c.bf16 %v2515_v36, %v2511_v35  ;;  %v2543_v35 = vld [vmem:[%s8654_s17 + $0x188] sm:$0xff] }
 0xcc7   :  { %v2547_v36 = vld [vmem:[%s8654_s17 + $0x1a8] sm:$0xff] }
 0xccc   :  { %v7206_v43 = vpop.eup %7205 }
 0xccd   :  { %v2198_v44 = vsel %vm954_vm4, %v7206_v43, 0.0 }
 0xcce   :  { %2199 = vadd.xlane.f32.xlu0 %v2198_v44  ;;  %v2517_v44 = vld [vmem:[%s8654_s17 + $0xb8] sm:$0xff] }
 0xcd0   :  { %v7208_v45 = vpop.eup %7207 }
 0xcd1   :  { %v2201_v46 = vsel %vm954_vm4, %v7208_v45, 0.0 }
 0xcd2   :  { %2202 = vadd.xlane.f32.xlu1 %v2201_v46 }
 0xce3   :  { %2284 = vrot.lane.b32.xlu1 %v7642_v62, %s7375_s0 }
 0xce4   :  { %2208 = vrot.lane.b32.xlu0 %v7656_v2, %s7375_s0 }
 0xd5b   :  { %v2200_v49 = vpop.xlane.xlu0 %2199 }
 0xd5c   :  { %7209 = vrcp.f32 %v2200_v49  ;;  %v2516_v49 = vld [vmem:[%s8654_s17 + $0xb0] sm:$0xff] }
 0xd5f   :  { %v2203_v53 = vpop.xlane.xlu1 %2202  ;;  %v2209_v54 = vpop.permute.xlu0 %2208 }
 0xd60   :  { %7211 = vrcp.f32 %v2203_v53  ;;  %6357 = vmatpush3.msra.mxu1 %v2209_v54  ;;  %v6805_v53 = vpack.c.bf16 %v2516_v49, %v2512_v37  ;;  %v2544_v37 = vld [vmem:[%s8654_s17 + $0x190] sm:$0xff] }
 0xd61   :  { %6756 = vmatprep.subr.bf16.mxu1 %v6755_v52  ;;  %v2548_v49 = vld [vmem:[%s8654_s17 + $0x1b0] sm:$0xff] }
 0xd63   :  { %v2285_v62 = vpop.permute.xlu1 %2284 }
 0xd64   :  { %6362 = vmatpush3.msra.mxu0 %v2285_v62 }
 0xd66   :  { %v7210_v55 = vpop.eup %7209 }
 0xd67   :  { %v2205_v2 = vmul.f32 %v7210_v55, %v7206_v43  ;;  %v2513_v43 = vld [vmem:[%s8654_s17 + $0x98] sm:$0xff] }
 0xd68   :  { %v6803_v46 = vpack.c.bf16 %v2517_v44, %v2513_v43  ;;  %v2545_v43 = vld [vmem:[%s8654_s17 + $0x198] sm:$0xff] }
 0xd69   :  { %6359 = vmatmul.mubr.msk.f32.vlgmr.msra.gmra.mrb[22].mxu1 %vm954_vm4, %v2205_v2  ;;  %v2549_v44 = vld [vmem:[%s8654_s17 + $0x1b8] sm:$0xff] }
 0xd6a   :  { %v7212_v56 = vpop.eup %7211  ;;  %6758 = vmatpush3.bf16.msra.mxu1 %v6755_v52 }
 0xd6b   :  { %v2207_v58 = vmul.f32 %v7212_v56, %v7208_v45  ;;  %6760 = vmatprep.subr.bf16.mxu1 %v6759_v0  ;;  %v2510_v45 = vld [vmem:[%s8654_s17 + $0x80] sm:$0xff] }
 0xd6c   :  { %v6773_v52 = vpack.c.bf16 %v2514_v47, %v2510_v45  ;;  %v2542_v45 = vld [vmem:[%s8654_s17 + $0x180] sm:$0xff] }
 0xd6d   :  { %6364 = vmatmul.mubr.msk.f32.vlgmr.msra.gmra.mrb[22].mxu0 %vm954_vm4, %v2207_v58  ;;  %v2546_v47 = vld [vmem:[%s8654_s17 + $0x1a0] sm:$0xff] }
 0xd6e   :  { %2644 = vmatprep.mubr.f32.mxu0 %v7371_v15  ;;  %6762 = vmatpush3.bf16.msra.mxu1 %v6759_v0  ;;  %v2519_v0 = vld [vmem:[%s8654_s17 + $0xc8] sm:$0xff] }
 0xe3c   :  { %v2280_v57 = vpop.f32.mrb[22].mxu1 }
 0xe3d   :  { %v6360_v3 = vpop.f32.mrb[23].mxu1  ;;  %6374 = vmatprep.mubr.msk.f32.mxu1 %vm801_vm2, %v2280_v57  ;;  %v2523_v57 = vld [vmem:[%s8654_s17 + $0xe8] sm:$0xff] }
 0xe3e   :  { %v2521_v3 = vld [vmem:[%s8654_s17 + $0xd8] sm:$0xff] }
 0xe40   :  { %v2356_v4 = vpop.f32.mrb[22].mxu0 }
 0xe41   :  { %v6365_v1 = vpop.f32.mrb[23].mxu0  ;;  %6375 = vmatmul.mubr.msk.f32.vlgmr.msra.gmra.mrb[20].mxu1 %vm801_vm2, %v2356_v4  ;;  %v6775_v4 = vpack.c.bf16 %v2523_v57, %v2519_v0  ;;  %v2554_v0 = vld [vmem:[%s8654_s17 + $0x1e0] sm:$0xff] }
 0xe42   :  { %2721 = vmatprep.mubr.f32.mxu1 %v7371_v15  ;;  %v2525_v1 = vld [vmem:[%s8654_s17 + $0xf8] sm:$0xff] }
 0xf14   :  { %v6376_v6 = vpop.f32.mrb[20].mxu1 }
 0xf15   :  { %v7147_v7 = vadd.f32 %v6376_v6, %v7759_v38  ;;  %v2432_v8 = vpop.f32.mrb[21].mxu1  ;;  %v2495_v38 = vld [vmem:[%s8654_s17 + $0x8] sm:$0xff]  ;;  %v2518_v6 = vld [vmem:[%s8654_s17 + $0xc0] sm:$0xff] }
 0xf16   :  { %v7148_v60 = vadd.f32 %v2432_v8, %v7761_v39  ;;  %v2499_v39 = vld [vmem:[%s8654_s17 + $0x28] sm:$0xff]  ;;  %v6807_v8 = vpack.c.bf16 %v2525_v1, %v2521_v3  ;;  %v2552_v3 = vld [vmem:[%s8654_s17 + $0x1d0] sm:$0xff] }
 0xf17   :  { %v2444_v11 = vadd.f32 %v7147_v7, %v7586_v10  ;;  %v6763_v10 = vpack.c.bf16 %v2499_v39, %v2495_v38  ;;  %v2522_v7 = vld [vmem:[%s8654_s17 + $0xe0] sm:$0xff]  ;;  %v2527_v38 = vld [vmem:[%s8654_s17 + $0x108] sm:$0xff] }
 0xf18   :  { %v2443_v12 = vadd.f32 %v7148_v60, %v7583_v9  ;;  %v2497_v9 = vld [vmem:[%s8654_s17 + $0x18] sm:$0xff]  ;;  %v6777_v60 = vpack.c.bf16 %v2522_v7, %v2518_v6  ;;  %v2531_v39 = vld [vmem:[%s8654_s17 + $0x128] sm:$0xff]  ;;  %v2790_v7 = vld [vmem:[#allocation7 + $0x80] sm:$0xff] }
 0xf19   :  { %v7851_v13 = vadd.f32 %v5662_v61, %v2444_v11  ;;  %v6795_v19 = vpack.c.bf16 %v2501_v16, %v2497_v9  ;;  %6764 = vmatprep.subr.bf16.mxu0 %v6763_v10  ;;  %v2524_v11 = vld [vmem:[%s8654_s17 + $0xf0] sm:$0xff]  ;;  %v2529_v9 = vld [vmem:[%s8654_s17 + $0x118] sm:$0xff]  ;;  %v6779_v10 = vpack.c.bf16 %v2531_v39, %v2527_v38 }
 0xf1a   :  { %v7853_v14 = vadd.f32 %v5662_v61, %v2443_v12  ;;  %6766 = vmatpush1.bf16.msra.mxu0 %v6765_v20  ;;  %v2520_v61 = vld [vmem:[%s8654_s17 + $0xd0] sm:$0xff]  ;;  %v2533_v16 = vld [vmem:[%s8654_s17 + $0x138] sm:$0xff]  ;;  %v6781_v20 = vpack.c.bf16 %v2530_v18, %v2526_v17 }
 0xf1b   :  { %2458 = vadd.xlane.f32.xlu0 %v7851_v13  ;;  %6796 = vmatprep.subr.bf16.mxu1 %v6795_v19  ;;  %v6809_v12 = vpack.c.bf16 %v2524_v11, %v2520_v61  ;;  %v6811_v19 = vpack.c.bf16 %v2533_v16, %v2529_v9  ;;  %v2823_v11 = vld [vmem:[#allocation7 + $0x188] sm:$0xff] }
 0xf1c   :  { %2456 = vadd.xlane.f32.xlu1 %v7853_v14  ;;  %6798 = vmatpush1.bf16.msra.mxu1 %v6797_v24  ;;  %v6813_v24 = vpack.c.bf16 %v2532_v22, %v2528_v21  ;;  %v5664_v21 = vld [vmem:[%s8653_s16] ss:$0 sm:$0xff] }
 0xf1d   :  { %6768 = vmatprep.subr.bf16.mxu0 %v6767_v28  ;;  %6800 = vmatprep.subr.bf16.mxu1 %v6799_v29  ;;  %v6783_v28 = vpack.c.bf16 %v2539_v25, %v2535_v23  ;;  %v6815_v29 = vpack.c.bf16 %v2541_v27, %v2537_v26  ;;  %v2775_v25 = vld [vmem:[#allocation7 + $0x8] sm:$0xff]  ;;  %v2806_v26 = vld [vmem:[#allocation7 + $0x100] sm:$0xff] }
 0xf1e   :  { %6770 = vmatpush1.bf16.msra.mxu0 %v6769_v33  ;;  %v6785_v33 = vpack.c.bf16 %v2538_v31, %v2534_v30  ;;  %v2807_v27 = vld [vmem:[#allocation7 + $0x108] sm:$0xff]  ;;  %v2793_v30 = vld [vmem:[#allocation7 + $0x98] sm:$0xff]  ;;  %v2824_v31 = vld [vmem:[#allocation7 + $0x190] sm:$0xff] }
 0xf1f   :  { %6772 = vmatprep.subr.bf16.mxu0 %v6771_v42  ;;  %v6787_v42 = vpack.c.bf16 %v2547_v36, %v2543_v35  ;;  %v6861_v36 = vpack.c.bf16 %v2807_v27, %v2806_v26  ;;  %v2800_v26 = vld [vmem:[#allocation7 + $0xd0] sm:$0xff]  ;;  %v2801_v27 = vld [vmem:[#allocation7 + $0xd8] sm:$0xff] }
 0xf20   :  { %6802 = vmatpush1.bf16.msra.mxu1 %v6801_v40  ;;  %v6817_v40 = vpack.c.bf16 %v2540_v34, %v2536_v32  ;;  %v2825_v32 = vld [vmem:[#allocation7 + $0x198] sm:$0xff] }
 0xf21   :  { %6804 = vmatprep.subr.bf16.mxu1 %v6803_v46  ;;  %v6819_v46 = vpack.c.bf16 %v2549_v44, %v2545_v43  ;;  %v6863_v44 = vpack.c.bf16 %v2825_v32, %v2824_v31  ;;  %v2784_v31 = vld [vmem:[#allocation7 + $0x50] sm:$0xff]  ;;  %v2785_v32 = vld [vmem:[#allocation7 + $0x58] sm:$0xff] }
 0xf22   :  { %6774 = vmatpush1.bf16.msra.mxu0 %v6773_v52  ;;  %v6789_v52 = vpack.c.bf16 %v2546_v47, %v2542_v45  ;;  %v2809_v45 = vld [vmem:[#allocation7 + $0x118] sm:$0xff]  ;;  %v2826_v47 = vld [vmem:[#allocation7 + $0x1a0] sm:$0xff] }
 0xf23   :  { %6776 = vmatprep.subr.bf16.mxu0 %v6775_v4  ;;  %v2556_v4 = vld [vmem:[%s8654_s17 + $0x1f0] sm:$0xff] }
 0xf24   :  { %6806 = vmatpush1.bf16.msra.mxu1 %v6805_v53  ;;  %v2551_v53 = vld [vmem:[%s8654_s17 + $0x1c8] sm:$0xff]  ;;  %v6825_v6 = vpack.c.bf16 %v2556_v4, %v2552_v3  ;;  %v2796_v3 = vld [vmem:[#allocation7 + $0xb0] sm:$0xff] }
 0xf25   :  { %6808 = vmatprep.subr.bf16.mxu1 %v6807_v8  ;;  %v2791_v8 = vld [vmem:[#allocation7 + $0x88] sm:$0xff]  ;;  %v2797_v4 = vld [vmem:[#allocation7 + $0xb8] sm:$0xff] }
 0xf26   :  { %6778 = vmatpush1.bf16.msra.mxu0 %v6777_v60  ;;  %v2822_v60 = vld [vmem:[#allocation7 + $0x180] sm:$0xff]  ;;  %v6827_v61 = vpack.c.bf16 %v2791_v8, %v2790_v7  ;;  %v2829_v7 = vld [vmem:[#allocation7 + $0x1b8] sm:$0xff]  ;;  %v2780_v8 = vld [vmem:[#allocation7 + $0x30] sm:$0xff] }
 0xf27   :  { %6780 = vmatprep.subr.bf16.mxu0 %v6779_v10 }
 0xf28   :  { %6810 = vmatpush1.bf16.msra.mxu1 %v6809_v12  ;;  %v6859_v12 = vpack.c.bf16 %v2823_v11, %v2822_v60  ;;  %v2781_v60 = vld [vmem:[#allocation7 + $0x38] sm:$0xff] }
 0xf29   :  { %6812 = vmatprep.subr.bf16.mxu1 %v6811_v19  ;;  %v6841_v11 = vpack.c.bf16 %v2781_v60, %v2780_v8  ;;  %v2574_v8 = vsub.s32 3, %v7615_v48 }
 0xf2a   :  { %6782 = vmatpush1.bf16.msra.mxu0 %v6781_v20  ;;  %v5663_v20 = vld [vmem:[%s8652_s15] ss:$0 sm:$0xff] }
 0xf2b   :  { %6784 = vmatprep.subr.bf16.mxu0 %v6783_v28  ;;  %v2792_v28 = vld [vmem:[#allocation7 + $0x90] sm:$0xff] }
 0xf2c   :  { %6814 = vmatpush1.bf16.msra.mxu1 %v6813_v24  ;;  %v2774_v24 = vld [vmem:[#allocation7] sm:$0xff]  ;;  %v6831_v43 = vpack.c.bf16 %v2793_v30, %v2792_v28  ;;  %v2832_v28 = vld [vmem:[#allocation7 + $0x1d0] sm:$0xff]  ;;  %v2833_v30 = vld [vmem:[#allocation7 + $0x1d8] sm:$0xff] }
 0xf2d   :  { %6816 = vmatprep.subr.bf16.mxu1 %v6815_v29  ;;  %v6829_v35 = vpack.c.bf16 %v2775_v25, %v2774_v24  ;;  %v2815_v24 = vld [vmem:[#allocation7 + $0x148] sm:$0xff] }
 0xf2e   :  { %6786 = vmatpush1.bf16.msra.mxu0 %v6785_v33 }
 0xf2f   :  { %6788 = vmatprep.subr.bf16.mxu0 %v6787_v42  ;;  %v2777_v42 = vld [vmem:[#allocation7 + $0x18] sm:$0xff] }
 0xf30   :  { %6818 = vmatpush1.bf16.msra.mxu1 %v6817_v40  ;;  %v2776_v40 = vld [vmem:[#allocation7 + $0x10] sm:$0xff] }
 0xf31   :  { %6820 = vmatprep.subr.bf16.mxu1 %v6819_v46  ;;  %v2795_v46 = vld [vmem:[#allocation7 + $0xa8] sm:$0xff] }
 0xf32   :  { %6790 = vmatpush1.bf16.msra.mxu0 %v6789_v52  ;;  %v6833_v52 = vpack.c.bf16 %v2777_v42, %v2776_v40  ;;  %v2802_v42 = vld [vmem:[#allocation7 + $0xe0] sm:$0xff] }
 0xfa8   :  { %v2459_v54 = vpop.xlane.xlu0 %2458 }
 0xfa9   :  { %v2461_v62 = vmul.f32 0.0078125, %v2459_v54  ;;  %v2457_v55 = vpop.xlane.xlu1 %2456  ;;  %v2555_v54 = vld [vmem:[%s8654_s17 + $0x1e8] sm:$0xff] }
 0xfaa   :  { %v2460_v2 = vmul.f32 0.0078125, %v2457_v55  ;;  %v6821_v55 = vpack.c.bf16 %v2548_v49, %v2544_v37  ;;  %v2827_v37 = vld [vmem:[#allocation7 + $0x1a8] sm:$0xff] }
 0xfab   :  { %v7930_v56 = vsub.f32 %v7851_v13, %v2461_v62  ;;  %v2553_v62 = vld [vmem:[%s8654_s17 + $0x1d8] sm:$0xff] }
 0xfac   :  { %v7933_v58 = vsub.f32 %v7853_v14, %v2460_v2  ;;  %v6791_v2 = vpack.c.bf16 %v2555_v54, %v2551_v53  ;;  %6822 = vmatpush1.bf16.msra.mxu1 %v6821_v55  ;;  %v2778_v54 = vld [vmem:[#allocation7 + $0x20] sm:$0xff]  ;;  %v6867_v55 = vpack.c.bf16 %v2827_v37, %v2826_v47 }
 0xfad   :  { %v2465_v59 = vmul.f32 %v7930_v56, %v7930_v56 }
 0xfae   :  { %v2464_v63 = vmul.f32 %v7933_v58, %v7933_v58  ;;  %6792 = vmatprep.subr.bf16.mxu0 %v6791_v2  ;;  %v2779_v2 = vld [vmem:[#allocation7 + $0x28] sm:$0xff] }
 0xfaf   :  { %2468 = vadd.xlane.f32.xlu1 %v2465_v59  ;;  %v2557_v59 = vld [vmem:[%s8654_s17 + $0x1f8] sm:$0xff] }
 0xfb0   :  { %2466 = vadd.xlane.f32.xlu0 %v2464_v63  ;;  %v2550_v63 = vld [vmem:[%s8654_s17 + $0x1c0] sm:$0xff]  ;;  %v6823_v57 = vpack.c.bf16 %v2557_v59, %v2553_v62  ;;  %v2810_v59 = vld [vmem:[#allocation7 + $0x120] sm:$0xff] }
 0xfb1   :  { %v6793_v1 = vpack.c.bf16 %v2554_v0, %v2550_v63  ;;  %v2811_v63 = vld [vmem:[#allocation7 + $0x128] sm:$0xff]  ;;  %v6837_v0 = vpack.c.bf16 %v2779_v2, %v2778_v54  ;;  %v2804_v54 = vld [vmem:[#allocation7 + $0xf0] sm:$0xff] }
 0xfb2   :  { %6824 = vmatprep.subr.bf16.mxu1 %v6823_v57  ;;  %v6869_v57 = vpack.c.bf16 %v2811_v63, %v2810_v59  ;;  %v2837_v59 = vld [vmem:[#allocation7 + $0x1f8] sm:$0xff]  ;;  %v2788_v63 = vld [vmem:[#allocation7 + $0x70] sm:$0xff] }
 0xfb3   :  { %6794 = vmatpush1.bf16.msra.mxu0 %v6793_v1  ;;  %6826 = vmatpush1.bf16.msra.mxu1 %v6825_v6  ;;  %v2828_v1 = vld [vmem:[#allocation7 + $0x1b0] sm:$0xff]  ;;  %v6839_v6 = vpack.c.bf16 %v2797_v4, %v2796_v3 }
 0xfb4   :  { %6828 = vmatprep.subr.bf16.mxu0 %v6827_v61  ;;  %6860 = vmatprep.subr.bf16.mxu1 %v6859_v12  ;;  %v6871_v61 = vpack.c.bf16 %v2829_v7, %v2828_v1  ;;  %v2812_v12 = vld [vmem:[#allocation7 + $0x130] sm:$0xff]  ;;  %v2821_v1 = vld [vmem:[#allocation7 + $0x178] sm:$0xff] }
 0xfb5   :  { %v2820_v4 = vld [vmem:[#allocation7 + $0x170] sm:$0xff] }
 0xfb6   :  { %v2558_v7 = vld [vmem:[%s8655_s18] sm:$0xf] }
 0xfb7   :  { %v2563_v60 = vrot.slane %v2558_v7, %v7624_v50 }
0x103c   :  { %v2469_v38 = vpop.xlane.xlu1 %2468 }
0x103d   :  { %v2471_v39 = vmul.f32 0.0078125, %v2469_v38  ;;  %v2467_v9 = vpop.xlane.xlu0 %2466  ;;  %v2813_v38 = vld [vmem:[#allocation7 + $0x138] sm:$0xff] }
0x103e   :  { %v2470_v10 = vmul.f32 0.0078125, %v2467_v9  ;;  %v2798_v9 = vld [vmem:[#allocation7 + $0xc0] sm:$0xff] }
0x103f   :  { %v2473_v16 = vadd.f32 1e-06, %v2471_v39  ;;  %v6873_v39 = vpack.c.bf16 %v2813_v38, %v2812_v12  ;;  %v2575_v12 = vrot.slane %v2558_v7, %v2574_v8 }
0x1040   :  { %v2472_v17 = vadd.f32 1e-06, %v2470_v10  ;;  %v2799_v10 = vld [vmem:[#allocation7 + $0xc8] sm:$0xff] }
0x1041   :  { %7213 = vrsqrt.f32 %v2473_v16  ;;  %v2830_v16 = vld [vmem:[#allocation7 + $0x1c0] sm:$0xff] }
0x1042   :  { %7215 = vrsqrt.f32 %v2472_v17  ;;  %v6843_v17 = vpack.c.bf16 %v2799_v10, %v2798_v9 }
0x104b   :  { %v7214_v18 = vpop.eup %7213 }
0x104c   :  { %v7216_v19 = vpop.eup %7215  ;;  %v2477_v23 = vmul.f32 %v7214_v18, %v7930_v56  ;;  %v2794_v56 = vld [vmem:[#allocation7 + $0xa0] sm:$0xff]  ;;  %v2831_v18 = vld [vmem:[#allocation7 + $0x1c8] sm:$0xff] }
0x104d   :  { %v2476_v22 = vmul.f32 %v7216_v19, %v7933_v58  ;;  %v2808_v58 = vld [vmem:[#allocation7 + $0x110] sm:$0xff]  ;;  %v6835_v62 = vpack.c.bf16 %v2795_v46, %v2794_v56  ;;  %v2782_v19 = vld [vmem:[#allocation7 + $0x40] sm:$0xff]  ;;  %v2787_v46 = vld [vmem:[#allocation7 + $0x68] sm:$0xff] }
0x104e   :  { %v2485_v34 = vmul.f32 %v5663_v20, %v2477_v23  ;;  %v6865_v53 = vpack.c.bf16 %v2809_v45, %v2808_v58  ;;  %v2814_v23 = vld [vmem:[#allocation7 + $0x140] sm:$0xff]  ;;  %v2835_v45 = vld [vmem:[#allocation7 + $0x1e8] sm:$0xff] }
0x104f   :  { %v2484_v29 = vmul.f32 %v5663_v20, %v2476_v22  ;;  %v2783_v20 = vld [vmem:[#allocation7 + $0x48] sm:$0xff]  ;;  %v6877_v25 = vpack.c.bf16 %v2815_v24, %v2814_v23  ;;  %v2786_v56 = vld [vmem:[#allocation7 + $0x60] sm:$0xff] }
0x1050   :  { %v2493_v49 = vadd.f32 %v5664_v21, %v2485_v34  ;;  %v6845_v22 = vpack.c.bf16 %v2783_v20, %v2782_v19  ;;  %v6849_v34 = vpack.c.bf16 %v2785_v32, %v2784_v31  ;;  %v6853_v37 = vpack.c.bf16 %v2787_v46, %v2786_v56 }
0x1051   :  { %v2492_v33 = vadd.f32 %v5664_v21, %v2484_v29  ;;  %v6875_v21 = vpack.c.bf16 %v2831_v18, %v2830_v16  ;;  %v6847_v29 = vpack.c.bf16 %v2801_v27, %v2800_v26 }
0x1053   :  { %2645 = vmatmul.mubr.f32.vlgmr.msra.gmra.mrb[24].mxu0 %v2492_v33  ;;  %2722 = vmatmul.mubr.f32.vlgmr.msra.gmra.mrb[24].mxu1 %v2492_v33  ;;  %v6879_v33 = vpack.c.bf16 %v2833_v30, %v2832_v28 }
0x1054   :  { %2650 = vmatprep.mubr.f32.mxu0 %v7371_v15  ;;  %2727 = vmatprep.mubr.f32.mxu1 %v7371_v15 }
0x1055   :  { %6830 = vmatpush3.bf16.msra.mxu0 %v6829_v35  ;;  %6862 = vmatpush3.bf16.msra.mxu1 %v6861_v36  ;;  %v2816_v35 = vld [vmem:[#allocation7 + $0x150] sm:$0xff]  ;;  %v2817_v36 = vld [vmem:[#allocation7 + $0x158] sm:$0xff] }
0x1056   :  { %6832 = vmatprep.subr.bf16.mxu0 %v6831_v43  ;;  %6864 = vmatprep.subr.bf16.mxu1 %v6863_v44  ;;  %v6881_v40 = vpack.c.bf16 %v2817_v36, %v2816_v35  ;;  %v2803_v43 = vld [vmem:[#allocation7 + $0xe8] sm:$0xff]  ;;  %v2834_v44 = vld [vmem:[#allocation7 + $0x1e0] sm:$0xff] }
0x1057   :  { %2651 = vmatmul.mubr.f32.gmra.mrb[26].mxu0 %v2493_v49  ;;  %2728 = vmatmul.mubr.f32.gmra.mrb[26].mxu1 %v2493_v49  ;;  %v6851_v58 = vpack.c.bf16 %v2803_v43, %v2802_v42  ;;  %v6883_v47 = vpack.c.bf16 %v2835_v45, %v2834_v44  ;;  %v2818_v49 = vld [vmem:[#allocation7 + $0x160] sm:$0xff] }
0x1059   :  { %6834 = vmatpush3.bf16.msra.mxu0 %v6833_v52  ;;  %6866 = vmatpush3.bf16.msra.mxu1 %v6865_v53  ;;  %v2819_v52 = vld [vmem:[#allocation7 + $0x168] sm:$0xff] }
0x105a   :  { %6836 = vmatprep.subr.bf16.mxu0 %v6835_v62  ;;  %6868 = vmatprep.subr.bf16.mxu1 %v6867_v55  ;;  %v6885_v53 = vpack.c.bf16 %v2819_v52, %v2818_v49  ;;  %v2805_v62 = vld [vmem:[#allocation7 + $0xf8] sm:$0xff]  ;;  %v2836_v55 = vld [vmem:[#allocation7 + $0x1f0] sm:$0xff] }
0x105b   :  { %v6855_v2 = vpack.c.bf16 %v2805_v62, %v2804_v54 }
0x105d   :  { %6838 = vmatpush3.bf16.msra.mxu0 %v6837_v0  ;;  %6870 = vmatpush3.bf16.msra.mxu1 %v6869_v57  ;;  %v2789_v0 = vld [vmem:[#allocation7 + $0x78] sm:$0xff]  ;;  %v6887_v57 = vpack.c.bf16 %v2837_v59, %v2836_v55 }
0x105e   :  { %6840 = vmatprep.subr.bf16.mxu0 %v6839_v6  ;;  %6872 = vmatprep.subr.bf16.mxu1 %v6871_v61  ;;  %v6857_v3 = vpack.c.bf16 %v2789_v0, %v2788_v63  ;;  %v6889_v6 = vpack.c.bf16 %v2821_v1, %v2820_v4  ;;  %v2571_v61 = vrot.slane %v2558_v7, %v7627_v51 }
0x1061   :  { %6842 = vmatpush3.bf16.msra.mxu0 %v6841_v11  ;;  %6874 = vmatpush3.bf16.msra.mxu1 %v6873_v39  ;;  %v2567_v11 = vrot.slane %v2558_v7, %v7618_v41 }
0x1062   :  { %6844 = vmatprep.subr.bf16.mxu0 %v6843_v17  ;;  %6876 = vmatprep.subr.bf16.mxu1 %v6875_v21 }
0x1065   :  { %6846 = vmatpush3.bf16.msra.mxu0 %v6845_v22  ;;  %6878 = vmatpush3.bf16.msra.mxu1 %v6877_v25 }
0x1066   :  { %6848 = vmatprep.subr.bf16.mxu0 %v6847_v29  ;;  %6880 = vmatprep.subr.bf16.mxu1 %v6879_v33 }
0x1069   :  { %6850 = vmatpush3.bf16.msra.mxu0 %v6849_v34  ;;  %6882 = vmatpush3.bf16.msra.mxu1 %v6881_v40 }
0x106a   :  { %6852 = vmatprep.subr.bf16.mxu0 %v6851_v58  ;;  %6884 = vmatprep.subr.bf16.mxu1 %v6883_v47 }
0x106d   :  { %6854 = vmatpush3.bf16.msra.mxu0 %v6853_v37  ;;  %6886 = vmatpush3.bf16.msra.mxu1 %v6885_v53 }
0x106e   :  { %6856 = vmatprep.subr.bf16.mxu0 %v6855_v2  ;;  %6888 = vmatprep.subr.bf16.mxu1 %v6887_v57 }
0x1071   :  { %6858 = vmatpush3.bf16.msra.mxu0 %v6857_v3  ;;  %6890 = vmatpush3.bf16.msra.mxu1 %v6889_v6 }
0x1126   :  { %v2646_v38 = vpop.f32.mrb[24].mxu0  ;;  %v2723_v39 = vpop.f32.mrb[24].mxu1 }
0x1127   :  { %v2647_v9 = vadd.f32 %v2646_v38, %v2563_v60  ;;  %v2724_v10 = vadd.f32 %v2723_v39, %v2571_v61  ;;  %v2648_v16 = vpop.f32.mrb[25].mxu0  ;;  %v2725_v17 = vpop.f32.mrb[25].mxu1 }
0x1128   :  { %v2649_v18 = vadd.f32 %v2648_v16, %v2567_v11  ;;  %v2726_v19 = vadd.f32 %v2725_v17, %v2575_v12 }
0x1129   :  { %v2742_v20 = vmul.f32 0.70710677, %v2647_v9  ;;  %v2744_v21 = vmul.f32 0.70710677, %v2724_v10  ;;  %v2734_v46 = vmul.f32 0.5, %v2647_v9  ;;  %v2736_v52 = vmul.f32 0.5, %v2724_v10 }
0x112a   :  { %v2743_v22 = vmul.f32 0.70710677, %v2649_v18  ;;  %v2745_v23 = vmul.f32 0.70710677, %v2726_v19  ;;  %v2652_v24 = vpop.f32.mrb[26].mxu0  ;;  %v2729_v25 = vpop.f32.mrb[26].mxu1 }
0x112b   :  { %7217 = verf.f32 %v2742_v20  ;;  %v2653_v26 = vadd.f32 %v2652_v24, %v2563_v60  ;;  %v2730_v27 = vadd.f32 %v2729_v25, %v2571_v61  ;;  %v2654_v28 = vpop.f32.mrb[27].mxu0  ;;  %v2731_v29 = vpop.f32.mrb[27].mxu1  ;;  %v2735_v45 = vmul.f32 0.5, %v2649_v18  ;;  %v5665_v10 = vld [vmem:[%s8657_s20] ss:$0 sm:$0xff] }
0x112c   :  { %7219 = verf.f32 %v2744_v21  ;;  %v2655_v30 = vadd.f32 %v2654_v28, %v2567_v11  ;;  %v2732_v31 = vadd.f32 %v2731_v29, %v2575_v12  ;;  %v2737_v47 = vmul.f32 0.5, %v2726_v19 }
0x112d   :  { %7221 = verf.f32 %v2743_v22  ;;  %v2746_v32 = vmul.f32 0.70710677, %v2653_v26  ;;  %v2748_v33 = vmul.f32 0.70710677, %v2730_v27  ;;  %v2738_v1 = vmul.f32 0.5, %v2653_v26 }
0x112e   :  { %7223 = verf.f32 %v2745_v23  ;;  %v2747_v34 = vmul.f32 0.70710677, %v2655_v30  ;;  %v2749_v35 = vmul.f32 0.70710677, %v2732_v31  ;;  %v2739_v3 = vmul.f32 0.5, %v2655_v30 }
0x112f   :  { %7225 = verf.f32 %v2746_v32  ;;  %v2741_v6 = vmul.f32 0.5, %v2732_v31  ;;  %v2740_v60 = vmul.f32 0.5, %v2730_v27  ;;  %v3041_v32 = vld [vmem:[#allocation5 + $0x188] sm:$0xff] }
0x1130   :  { %7227 = verf.f32 %v2748_v33  ;;  %v3044_v33 = vld [vmem:[#allocation5 + $0x1a0] sm:$0xff] }
0x1131   :  { %7229 = verf.f32 %v2747_v34  ;;  %v3040_v34 = vld [vmem:[#allocation5 + $0x180] sm:$0xff] }
0x1132   :  { %7231 = verf.f32 %v2749_v35  ;;  %v6891_v35 = vpack.c.bf16 %v3044_v33, %v3041_v32  ;;  %v3070_v32 = vld [vmem:[#allocation5 + $0x270] sm:$0xff]  ;;  %v3073_v33 = vld [vmem:[#allocation5 + $0x288] sm:$0xff] }
0x1134   :  { %6892 = vmatprep.subr.bf16.mxu0 %v6891_v35  ;;  %v6913_v35 = vpack.c.bf16 %v3073_v33, %v3070_v32 }
0x1135   :  { %v7218_v36 = vpop.eup %7217 }
0x1136   :  { %v7220_v40 = vpop.eup %7219  ;;  %v2758_v43 = vadd.f32 1.0, %v7218_v36  ;;  %v3043_v36 = vld [vmem:[#allocation5 + $0x198] sm:$0xff] }
0x1137   :  { %v7222_v42 = vpop.eup %7221  ;;  %v2760_v58 = vadd.f32 1.0, %v7220_v40  ;;  %v3047_v40 = vld [vmem:[#allocation5 + $0x1b8] sm:$0xff] }
0x1138   :  { %v7224_v44 = vpop.eup %7223  ;;  %v2759_v56 = vadd.f32 1.0, %v7222_v42  ;;  %v2766_v62 = vmul.f32 %v2758_v43, %v2734_v46  ;;  %v3050_v42 = vld [vmem:[#allocation5 + $0x1d0] sm:$0xff]  ;;  %v6893_v43 = vpack.c.bf16 %v3043_v36, %v3040_v34  ;;  %v3049_v46 = vld [vmem:[#allocation5 + $0x1c8] sm:$0xff] }
0x1139   :  { %v2761_v37 = vadd.f32 1.0, %v7224_v44  ;;  %v7226_v49 = vpop.eup %7225  ;;  %v2768_v59 = vmul.f32 %v2760_v58, %v2736_v52  ;;  %v6895_v44 = vpack.c.bf16 %v3050_v42, %v3047_v40  ;;  %v3045_v58 = vld [vmem:[#allocation5 + $0x1a8] sm:$0xff]  ;;  %v3051_v52 = vld [vmem:[#allocation5 + $0x1d8] sm:$0xff]  ;;  %v3080_v40 = vld [vmem:[#allocation5 + $0x2c0] sm:$0xff] }
0x113a   :  { %v2767_v53 = vmul.f32 %v2759_v56, %v2735_v45  ;;  %v7228_v54 = vpop.eup %7227  ;;  %v2762_v63 = vadd.f32 1.0, %v7226_v49  ;;  %v3046_v45 = vld [vmem:[#allocation5 + $0x1b0] sm:$0xff]  ;;  %v3048_v49 = vld [vmem:[#allocation5 + $0x1c0] sm:$0xff]  ;;  %v3077_v36 = vld [vmem:[#allocation5 + $0x2a8] sm:$0xff] }
0x113b   :  { %v2769_v55 = vmul.f32 %v2761_v37, %v2737_v47  ;;  %v7230_v2 = vpop.eup %7229  ;;  %v2764_v57 = vadd.f32 1.0, %v7228_v54  ;;  %v3053_v47 = vld [vmem:[#allocation5 + $0x1e8] sm:$0xff]  ;;  %v6897_v37 = vpack.c.bf16 %v3049_v46, %v3046_v45  ;;  %v6927_v54 = vpack.c.bf16 %v3051_v52, %v3048_v49  ;;  %v3072_v42 = vld [vmem:[#allocation5 + $0x280] sm:$0xff]  ;;  %v3083_v46 = vld [vmem:[#allocation5 + $0x2d8] sm:$0xff] }
0x113c   :  { %2909 = vmatprep.mubr.f32.mxu0 %v2767_v53  ;;  %v7232_v0 = vpop.eup %7231  ;;  %v2763_v4 = vadd.f32 1.0, %v7230_v2  ;;  %v2770_v12 = vmul.f32 %v2762_v63, %v2738_v1  ;;  %v3081_v49 = vld [vmem:[#allocation5 + $0x2c8] sm:$0xff]  ;;  %v3082_v52 = vld [vmem:[#allocation5 + $0x2d0] sm:$0xff] }
0x113d   :  { %2984 = vmatprep.mubr.f32.mxu1 %v2769_v55  ;;  %2910 = vmatmul.mubr.f32.vlgmr.msra.gmra.mrb[28].mxu0 %v2766_v62  ;;  %v2765_v7 = vadd.f32 1.0, %v7232_v0  ;;  %v2772_v38 = vmul.f32 %v2764_v57, %v2740_v60  ;;  %v3052_v62 = vld [vmem:[#allocation5 + $0x1e0] sm:$0xff]  ;;  %v3055_v55 = vld [vmem:[#allocation5 + $0x1f8] sm:$0xff]  ;;  %v3062_v60 = vld [vmem:[#allocation5 + $0x230] sm:$0xff] }
0x113e   :  { %2985 = vmatmul.mubr.f32.vlgmr.msra.gmra.mrb[28].mxu1 %v2768_v59  ;;  %v2771_v61 = vmul.f32 %v2763_v4, %v2739_v3  ;;  %6894 = vmatpush1.bf16.msra.mxu0 %v6893_v43  ;;  %v6901_v2 = vpack.c.bf16 %v3055_v55, %v3052_v62  ;;  %v6915_v43 = vpack.c.bf16 %v3080_v40, %v3077_v36  ;;  %v3084_v55 = vld [vmem:[#allocation5 + $0x2e0] sm:$0xff] }
0x113f   :  { %v2773_v11 = vmul.f32 %v2765_v7, %v2741_v6  ;;  %6896 = vmatprep.subr.bf16.mxu0 %v6895_v44  ;;  %v3059_v7 = vld [vmem:[#allocation5 + $0x218] sm:$0xff] }
0x1140   :  { %2914 = vmatprep.mubr.f32.mxu0 %v2771_v61  ;;  %v3054_v61 = vld [vmem:[#allocation5 + $0x1f0] sm:$0xff]  ;;  %v3075_v44 = vld [vmem:[#allocation5 + $0x298] sm:$0xff] }
0x1141   :  { %2989 = vmatprep.mubr.f32.mxu1 %v2773_v11  ;;  %2915 = vmatmul.mubr.f32.gmra.mrb[30].mxu0 %v2770_v12  ;;  %v6903_v11 = vpack.c.bf16 %v3062_v60, %v3059_v7  ;;  %v3057_v12 = vld [vmem:[#allocation5 + $0x208] sm:$0xff]  ;;  %v6943_v45 = vpack.c.bf16 %v3075_v44, %v3072_v42 }
0x1142   :  { %2990 = vmatmul.mubr.f32.gmra.mrb[30].mxu1 %v2772_v38  ;;  %3170 = vmatprep.mubr.f32.mxu0 %v7371_v15  ;;  %v3058_v38 = vld [vmem:[#allocation5 + $0x210] sm:$0xff] }
0x1143   :  { %6898 = vmatpush1.bf16.msra.mxu0 %v6897_v37 }
0x1210   :  { %v6006_v39 = vpop.f32.mrb[28].mxu0 }
0x1211   :  { %v6044_v9 = vpop.f32.mrb[28].mxu1  ;;  %v6007_v16 = vpop.f32.mrb[29].mxu0 }
0x1212   :  { %v6008_v17 = vadd.f32 %v6007_v16, %v6006_v39  ;;  %v6045_v18 = vpop.f32.mrb[29].mxu1  ;;  %v3061_v39 = vld [vmem:[#allocation5 + $0x228] sm:$0xff] }
0x1213   :  { %v6046_v19 = vadd.f32 %v6045_v18, %v6044_v9  ;;  %v6931_v9 = vpack.c.bf16 %v3057_v12, %v3054_v61  ;;  %v3065_v16 = vld [vmem:[#allocation5 + $0x248] sm:$0xff]  ;;  %v3060_v18 = vld [vmem:[#allocation5 + $0x220] sm:$0xff]  ;;  %v5668_v61 = vld [vmem:[%s8687_s27 + $0x1] ss:$0 sm:$0xff] }
0x1214   :  { %v2912_v20 = vadd.f32 %v6008_v17, %v5665_v10  ;;  %v6009_v21 = vpop.f32.mrb[30].mxu0  ;;  %v3068_v17 = vld [vmem:[#allocation5 + $0x260] sm:$0xff]  ;;  %v5669_v12 = vld [vmem:[%s8647_s10 + $0x1] ss:$0 sm:$0xff] }
0x1215   :  { %v6047_v23 = vpop.f32.mrb[30].mxu1  ;;  %v6010_v24 = vpop.f32.mrb[31].mxu0 }
0x1216   :  { %v2987_v22 = vadd.f32 %v6046_v19, %v2912_v20  ;;  %v6011_v25 = vadd.f32 %v6010_v24, %v6009_v21  ;;  %v6048_v26 = vpop.f32.mrb[31].mxu1  ;;  %v6907_v19 = vpack.c.bf16 %v3068_v17, %v3065_v16  ;;  %v3063_v20 = vld [vmem:[#allocation5 + $0x238] sm:$0xff]  ;;  %v3064_v21 = vld [vmem:[#allocation5 + $0x240] sm:$0xff] }
0x1217   :  { %v6049_v27 = vadd.f32 %v6048_v26, %v6047_v23  ;;  %v6935_v23 = vpack.c.bf16 %v3063_v20, %v3060_v18  ;;  %v3074_v26 = vld [vmem:[#allocation5 + $0x290] sm:$0xff] }
0x1218   :  { %v8083_v28 = vadd.f32 %v2987_v22, %v7853_v14  ;;  %v2917_v29 = vadd.f32 %v6011_v25, %v5665_v10  ;;  %v3042_v14 = vld [vmem:[#allocation5 + $0x190] sm:$0xff]  ;;  %v6905_v10 = vpack.c.bf16 %v3061_v39, %v3058_v38  ;;  %v3067_v22 = vld [vmem:[#allocation5 + $0x258] sm:$0xff] }
0x1219   :  { %v6923_v56 = vpack.c.bf16 %v3045_v58, %v3042_v14  ;;  %v6909_v24 = vpack.c.bf16 %v3067_v22, %v3064_v21  ;;  %v3071_v25 = vld [vmem:[#allocation5 + $0x278] sm:$0xff]  ;;  %v3076_v14 = vld [vmem:[#allocation5 + $0x2a0] sm:$0xff] }
0x121a   :  { %3001 = vadd.xlane.f32.xlu0 %v8083_v28  ;;  %v2992_v30 = vadd.f32 %v6049_v27, %v2917_v29  ;;  %v3066_v27 = vld [vmem:[#allocation5 + $0x250] sm:$0xff]  ;;  %v6911_v29 = vpack.c.bf16 %v3074_v26, %v3071_v25  ;;  %v3079_v58 = vld [vmem:[#allocation5 + $0x2b8] sm:$0xff] }
0x121b   :  { %6924 = vmatprep.subr.bf16.mxu1 %v6923_v56 }
0x121c   :  { %v8087_v31 = vadd.f32 %v2992_v30, %v7851_v13  ;;  %v3056_v13 = vld [vmem:[#allocation5 + $0x200] sm:$0xff]  ;;  %6926 = vmatpush3.bf16.msra.mxu1 %v6923_v56  ;;  %v3069_v30 = vld [vmem:[#allocation5 + $0x268] sm:$0xff]  ;;  %v6917_v56 = vpack.c.bf16 %v3079_v58, %v3076_v14 }
0x121d   :  { %v6899_v53 = vpack.c.bf16 %v3056_v13, %v3053_v47  ;;  %6928 = vmatprep.subr.bf16.mxu1 %v6927_v54  ;;  %v6939_v34 = vpack.c.bf16 %v3069_v30, %v3066_v27  ;;  %v3086_v47 = vld [vmem:[#allocation5 + $0x2f0] sm:$0xff] }
0x121e   :  { %3003 = vadd.xlane.f32.xlu1 %v8087_v31  ;;  %v3078_v13 = vld [vmem:[#allocation5 + $0x2b0] sm:$0xff]  ;;  %v6919_v37 = vpack.c.bf16 %v3086_v47, %v3083_v46 }
0x121f   :  { %6900 = vmatprep.subr.bf16.mxu0 %v6899_v53  ;;  %v3085_v53 = vld [vmem:[#allocation5 + $0x2e8] sm:$0xff] }
0x1220   :  { %6930 = vmatpush3.bf16.msra.mxu1 %v6927_v54  ;;  %6902 = vmatpush1.bf16.msra.mxu0 %v6901_v2  ;;  %v6947_v54 = vpack.c.bf16 %v3081_v49, %v3078_v13  ;;  %v6921_v62 = vpack.c.bf16 %v3085_v53, %v3082_v52  ;;  %v3087_v2 = vld [vmem:[#allocation5 + $0x2f8] sm:$0xff] }
0x1221   :  { %6904 = vmatprep.subr.bf16.mxu0 %v6903_v11  ;;  %6932 = vmatprep.subr.bf16.mxu1 %v6931_v9 }
0x1224   :  { %6906 = vmatpush1.bf16.msra.mxu0 %v6905_v10  ;;  %6934 = vmatpush3.bf16.msra.mxu1 %v6931_v9 }
0x1225   :  { %6908 = vmatprep.subr.bf16.mxu0 %v6907_v19  ;;  %6936 = vmatprep.subr.bf16.mxu1 %v6935_v23 }
0x1228   :  { %6910 = vmatpush1.bf16.msra.mxu0 %v6909_v24  ;;  %6938 = vmatpush3.bf16.msra.mxu1 %v6935_v23 }
0x1229   :  { %6912 = vmatprep.subr.bf16.mxu0 %v6911_v29  ;;  %6940 = vmatprep.subr.bf16.mxu1 %v6939_v34 }
0x122c   :  { %6914 = vmatpush1.bf16.msra.mxu0 %v6913_v35  ;;  %6942 = vmatpush3.bf16.msra.mxu1 %v6939_v34 }
0x122d   :  { %6916 = vmatprep.subr.bf16.mxu0 %v6915_v43  ;;  %6944 = vmatprep.subr.bf16.mxu1 %v6943_v45 }
0x1230   :  { %6918 = vmatpush1.bf16.msra.mxu0 %v6917_v56  ;;  %6946 = vmatpush3.bf16.msra.mxu1 %v6943_v45 }
0x1231   :  { %6920 = vmatprep.subr.bf16.mxu0 %v6919_v37  ;;  %6948 = vmatprep.subr.bf16.mxu1 %v6947_v54 }
0x1234   :  { %6922 = vmatpush1.bf16.msra.mxu0 %v6921_v62  ;;  %6950 = vmatpush3.bf16.msra.mxu1 %v6947_v54 }
0x1235   :  { %6412 = vmatprep.subr.mxu0 %v7371_v15 }
0x12a7   :  { %v3002_v59 = vpop.xlane.xlu0 %3001 }
0x12a8   :  { %v3005_v63 = vmul.f32 0.0078125, %v3002_v59  ;;  %v6951_v59 = vpack.c.bf16 %v3087_v2, %v3084_v55 }
0x12aa   :  { %v8091_v0 = vsub.f32 %v8083_v28, %v3005_v63  ;;  %6952 = vmatprep.subr.bf16.mxu1 %v6951_v59 }
0x12ab   :  { %v3004_v57 = vpop.xlane.xlu1 %3003  ;;  %6954 = vmatpush3.bf16.msra.mxu1 %v6951_v59 }
0x12ac   :  { %v3009_v3 = vmul.f32 %v8091_v0, %v8091_v0  ;;  %v3006_v4 = vmul.f32 0.0078125, %v3004_v57  ;;  %6417 = vmatprep.subr.mxu1 %v7371_v15 }
0x12ae   :  { %3011 = vadd.xlane.f32.xlu0 %v3009_v3  ;;  %v8096_v1 = vsub.f32 %v8087_v31, %v3006_v4 }
0x12b0   :  { %v3010_v6 = vmul.f32 %v8096_v1, %v8096_v1 }
0x12b2   :  { %3013 = vadd.xlane.f32.xlu1 %v3010_v6 }
0x133b   :  { %v3012_v63 = vpop.xlane.xlu0 %3011 }
0x133c   :  { %v3015_v57 = vmul.f32 0.0078125, %v3012_v63 }
0x133e   :  { %v3017_v3 = vadd.f32 1e-06, %v3015_v57 }
0x133f   :  { %v3014_v4 = vpop.xlane.xlu1 %3013 }
0x1340   :  { %7233 = vrsqrt.f32 %v3017_v3  ;;  %v3016_v6 = vmul.f32 0.0078125, %v3014_v4 }
0x1342   :  { %v3018_v7 = vadd.f32 1e-06, %v3016_v6 }
0x1344   :  { %7235 = vrsqrt.f32 %v3018_v7 }
0x134a   :  { %v7234_v60 = vpop.eup %7233 }
0x134b   :  { %v3021_v11 = vmul.f32 %v7234_v60, %v8091_v0  ;;  %v5670_v0 = vld [vmem:[%s8649_s12 + $0x3] sm:$0x7] }
0x134c   :  { %v3094_v19 = vrot.slane %v5670_v0, %v7624_v50  ;;  %v3102_v22 = vrot.slane %v5670_v0, %v7627_v51 }
0x134d   :  { %v3029_v38 = vmul.f32 %v5668_v61, %v3021_v11 }
0x134e   :  { %v7236_v39 = vpop.eup %7235 }
0x134f   :  { %v3037_v9 = vadd.f32 %v5669_v12, %v3029_v38  ;;  %v3022_v10 = vmul.f32 %v7236_v39, %v8096_v1  ;;  %v3098_v1 = vrot.slane %v5670_v0, %v7618_v41 }
0x1351   :  { %3171 = vmatmul.mubr.f32.vlgmr.msra.gmra.mrb[32].mxu0 %v3037_v9  ;;  %6409 = vmatprep.mubr.f32.mxu1 %v3037_v9  ;;  %v3030_v16 = vmul.f32 %v5668_v61, %v3022_v10 }
0x1352   :  { %3176 = vmatprep.mubr.f32.mxu0 %v7371_v15 }
0x1353   :  { %v3038_v17 = vadd.f32 %v5669_v12, %v3030_v16 }
0x1355   :  { %3177 = vmatmul.mubr.f32.gmra.mrb[34].mxu0 %v3038_v17  ;;  %6410 = vmatmul.mubr.f32.vlgmr.msra.gmra.mrb[32].mxu1 %v3038_v17 }
0x1356   :  { %6414 = vmatprep.mubr.msk.f32.mxu0 %vm7372_vm1, %v7371_v15  ;;  %6419 = vmatprep.mubr.msk.f32.mxu1 %vm7372_vm1, %v7371_v15 }
0x1424   :  { %v3172_v18 = vpop.f32.mrb[32].mxu0 }
0x1425   :  { %v3174_v20 = vpop.f32.mrb[33].mxu0  ;;  %v8125_v23 = vadd.f32 %v3172_v18, %v3094_v19 }
0x1426   :  { %v8120_v21 = vadd.f32 %v3174_v20, %v3098_v1 }
0x1428   :  { %6413 = vmatpush3.xpose.msk.msra.mxu0 %vm801_vm2, %v8120_v21  ;;  %v3178_v24 = vpop.f32.mrb[34].mxu0  ;;  %v6411_v25 = vpop.f32.mrb[32].mxu1 }
0x1429   :  { %6422 = vmatprep.subr.mxu0 %v7371_v15  ;;  %v3180_v26 = vpop.f32.mrb[35].mxu0  ;;  %v3249_v27 = vpop.f32.mrb[33].mxu1  ;;  %v8139_v32 = vadd.f32 %v3178_v24, %v3094_v19  ;;  %v8143_v33 = vadd.f32 %v6411_v25, %v3102_v22 }
0x142a   :  { %v8128_v29 = vadd.f32 %v3180_v26, %v3098_v1  ;;  %v8130_v30 = vadd.f32 %v3249_v27, %v3102_v22 }
0x142b   :  { %6415 = vmatmul.mubr.msk.f32.vlgmr.msra.gmra.mrb[36].mxu0 %vm801_vm2, %v8125_v23 }
0x142c   :  { %6424 = vmatprep.mubr.msk.f32.mxu0 %vm7372_vm1, %v7371_v15  ;;  %6418 = vmatpush3.xpose.msk.msra.mxu1 %vm801_vm2, %v8128_v29 }
0x142d   :  { %6423 = vmatpush3.msra.mxu0 %v8130_v30  ;;  %6427 = vmatprep.subr.mxu1 %v7371_v15 }
0x142e   :  { %6432 = vmatprep.subr.mxu0 %v7371_v15 }
0x142f   :  { %6420 = vmatmul.mubr.msk.f32.vlgmr.msra.gmra.mrb[34].mxu1 %vm801_vm2, %v8139_v32 }
0x1430   :  { %6428 = vmatpush3.msra.mxu1 %v8143_v33  ;;  %6429 = vmatprep.mubr.msk.f32.mxu1 %vm7372_vm1, %v7371_v15 }
0x1431   :  { %6437 = vmatprep.subr.mxu1 %v7371_v15 }
0x14fe   :  { %v3347_v34 = vpop.f32.mrb[36].mxu0 }
0x14ff   :  { %v6416_v35 = vpop.f32.mrb[37].mxu0  ;;  %v3348_v6 = vadd.f32 %v3347_v34, %v7665_v5 }
0x1501   :  { %v3427_v7 = vsel %vm954_vm4, %v3348_v6, -inf }
0x1502   :  { %v3423_v36 = vpop.f32.mrb[34].mxu1 }
0x1503   :  { %v3424_v40 = vadd.f32 %v3423_v36, %v7665_v5  ;;  %v6421_v42 = vpop.f32.mrb[35].mxu1 }
0x1505   :  { %v3430_v43 = vsel %vm954_vm4, %v3424_v40, -inf }
0x1506   :  { %3431 = vmax.xlane.f32.xlu0 %v3430_v43 }
0x151c   :  { %3675 = vrot.lane.b32.xlu0 %v8128_v29, %s7373_s2 }
0x1593   :  { %v3432_v44 = vpop.xlane.xlu0 %3431 }
0x1594   :  { %v3434_v14 = vsub.f32 %v3424_v40, %v3432_v44 }
0x1596   :  { %v3437_v58 = vmul.f32 1.442695, %v3434_v14 }
0x1597   :  { %v3676_v37 = vpop.permute.xlu0 %3675 }
0x1598   :  { %7237 = vpow2.f32 %v3437_v58 }
0x15a2   :  { %v7238_v45 = vpop.eup %7237 }
0x15a3   :  { %v3442_v56 = vsel %vm954_vm4, %v7238_v45, 0.0 }
0x15a4   :  { %3443 = vadd.xlane.f32.xlu1 %v3442_v56 }
0x15b5   :  { %3673 = vrot.lane.b32.xlu1 %v8139_v32, %s7373_s2 }
0x1631   :  { %v3444_v46 = vpop.xlane.xlu1 %3443 }
0x1632   :  { %7239 = vrcp.f32 %v3444_v46 }
0x1635   :  { %v3674_v49 = vpop.permute.xlu1 %3673 }
0x163c   :  { %v7240_v47 = vpop.eup %7239 }
0x163d   :  { %v3448_v13 = vmul.f32 %v7240_v47, %v7238_v45 }
0x163f   :  { %6430 = vmatmul.mubr.msk.f32.vlgmr.msra.gmra.mrb[36].mxu1 %vm954_vm4, %v3448_v13 }
0x1640   :  { %6438 = vmatpush3.xpose.msk.msra.mxu1 %vm801_vm2, %v3676_v37  ;;  %6439 = vmatprep.mubr.msk.f32.mxu1 %vm7372_vm1, %v7371_v15 }
0x1641   :  { %6447 = vmatprep.subr.mxu1 %v7371_v15 }
0x1643   :  { %6440 = vmatmul.mubr.msk.f32.vlgmr.msra.gmra.mrb[38].mxu1 %vm801_vm2, %v3674_v49 }
0x1644   :  { %6449 = vmatprep.mubr.msk.f32.mxu1 %vm7372_vm1, %v7371_v15 }
0x1712   :  { %v8166_v52 = vpop.f32.mrb[36].mxu1 }
0x1713   :  { %v6431_v53 = vpop.f32.mrb[37].mxu1 }
0x1716   :  { %v3747_v54 = vpop.f32.mrb[38].mxu1 }
0x1717   :  { %v3748_v62 = vadd.f32 %v3747_v54, %v7665_v5  ;;  %v6441_v55 = vpop.f32.mrb[39].mxu1 }
0x1719   :  { %v3754_v2 = vsel %vm954_vm4, %v3748_v62, -inf }
0x171a   :  { %3755 = vmax.xlane.f32.xlu1 %v3754_v2 }
0x172b   :  { %4091 = vrot.lane.b32.xlu1 %v8120_v21, %s7374_s9 }
0x172f   :  { %4089 = vrot.lane.b32.xlu1 %v8125_v23, %s7374_s9 }
0x1733   :  { %4167 = vrot.lane.b32.xlu1 %v8139_v32, %s7374_s9 }
0x17a7   :  { %v3756_v59 = vpop.xlane.xlu1 %3755 }
0x17a8   :  { %v3758_v63 = vsub.f32 %v3748_v62, %v3756_v59 }
0x17aa   :  { %v3761_v57 = vmul.f32 1.442695, %v3758_v63 }
0x17ab   :  { %v4092_v11 = vpop.permute.xlu1 %4091 }
0x17ac   :  { %7241 = vpow2.f32 %v3761_v57 }
0x17af   :  { %v4090_v39 = vpop.permute.xlu1 %4089 }
0x17b3   :  { %v4168_v10 = vpop.permute.xlu1 %4167 }
0x17b6   :  { %v7242_v3 = vpop.eup %7241 }
0x17b7   :  { %v3766_v4 = vsel %vm954_vm4, %v7242_v3, 0.0 }
0x17b8   :  { %3767 = vadd.xlane.f32.xlu0 %v3766_v4 }
0x17ce   :  { %3851 = vrot.lane.b32.xlu0 %v8143_v33, %s7373_s2 }
0x17d2   :  { %4169 = vrot.lane.b32.xlu0 %v8128_v29, %s7374_s9 }
0x17f1   :  { %3428 = vmax.xlane.f32.xlu0 %v3427_v7 }
0x1807   :  { %3597 = vrot.lane.b32.xlu0 %v8120_v21, %s7373_s2 }
0x1845   :  { %v3768_v60 = vpop.xlane.xlu0 %3767 }
0x1846   :  { %7243 = vrcp.f32 %v3768_v60 }
0x1849   :  { %v3852_v61 = vpop.permute.xlu0 %3851 }
0x184a   :  { %6448 = vmatpush3.msra.mxu1 %v3852_v61 }
0x184b   :  { %6474 = vmatprep.subr.mxu1 %v7371_v15 }
0x184d   :  { %v4170_v9 = vpop.permute.xlu0 %4169 }
0x1850   :  { %v7244_v12 = vpop.eup %7243 }
0x1851   :  { %v3772_v38 = vmul.f32 %v7244_v12, %v7242_v3 }
0x1853   :  { %6450 = vmatmul.mubr.msk.f32.vlgmr.msra.gmra.mrb[40].mxu1 %vm954_vm4, %v3772_v38 }
0x1854   :  { %6475 = vmatpush3.xpose.msk.msra.mxu1 %vm801_vm2, %v4092_v11  ;;  %6476 = vmatprep.mubr.msk.f32.mxu1 %vm7372_vm1, %v7371_v15 }
0x1855   :  { %6479 = vmatprep.subr.mxu1 %v7371_v15 }
0x1857   :  { %6477 = vmatmul.mubr.msk.f32.vlgmr.msra.gmra.mrb[42].mxu1 %vm801_vm2, %v4090_v39 }
0x1858   :  { %6480 = vmatpush3.xpose.msk.msra.mxu1 %vm801_vm2, %v4170_v9  ;;  %6481 = vmatprep.mubr.msk.f32.mxu1 %vm7372_vm1, %v7371_v15 }
0x1859   :  { %6484 = vmatprep.subr.mxu1 %v7371_v15 }
0x185b   :  { %6482 = vmatmul.mubr.msk.f32.vlgmr.msra.gmra.mrb[44].mxu1 %vm801_vm2, %v4168_v10 }
0x185c   :  { %6486 = vmatprep.mubr.msk.f32.mxu1 %vm7372_vm1, %v7371_v15 }
0x187e   :  { %v3429_v16 = vpop.xlane.xlu0 %3428 }
0x187f   :  { %v3433_v17 = vsub.f32 %v3348_v6, %v3429_v16 }
0x1881   :  { %v3435_v0 = vmul.f32 1.442695, %v3433_v17 }
0x1882   :  { %v3598_v26 = vpop.permute.xlu0 %3597 }
0x1883   :  { %7245 = vpow2.f32 %v3435_v0 }
0x188d   :  { %v7246_v1 = vpop.eup %7245 }
0x188e   :  { %v3439_v18 = vsel %vm954_vm4, %v7246_v1, 0.0 }
0x188f   :  { %3440 = vadd.xlane.f32.xlu1 %v3439_v18 }
0x18a0   :  { %3595 = vrot.lane.b32.xlu1 %v8125_v23, %s7373_s2 }
0x191c   :  { %v3441_v19 = vpop.xlane.xlu1 %3440 }
0x191d   :  { %7247 = vrcp.f32 %v3441_v19 }
0x1920   :  { %v3596_v36 = vpop.permute.xlu1 %3595 }
0x1926   :  { %v8202_v20 = vpop.f32.mrb[40].mxu1 }
0x1927   :  { %v7248_v22 = vpop.eup %7247  ;;  %v6451_v24 = vpop.f32.mrb[41].mxu1 }
0x1928   :  { %v3446_v25 = vmul.f32 %v7248_v22, %v7246_v1 }
0x192a   :  { %6425 = vmatmul.mubr.msk.f32.vlgmr.msra.gmra.mrb[38].mxu0 %vm954_vm4, %v3446_v25  ;;  %v4163_v27 = vpop.f32.mrb[42].mxu1 }
0x192b   :  { %6433 = vmatpush3.xpose.msk.msra.mxu0 %vm801_vm2, %v3598_v26  ;;  %v4164_v34 = vadd.f32 %v4163_v27, %v7665_v5  ;;  %v6478_v35 = vpop.f32.mrb[43].mxu1  ;;  %6434 = vmatprep.mubr.msk.f32.mxu0 %vm7372_vm1, %v7371_v15 }
0x192c   :  { %6442 = vmatprep.subr.mxu0 %v7371_v15 }
0x192d   :  { %v4245_v40 = vsel %vm954_vm4, %v4164_v34, -inf }
0x192e   :  { %6435 = vmatmul.mubr.msk.f32.vlgmr.msra.gmra.mrb[40].mxu0 %vm801_vm2, %v3596_v36  ;;  %4246 = vmax.xlane.f32.xlu0 %v4245_v40  ;;  %v4241_v42 = vpop.f32.mrb[44].mxu1 }
0x192f   :  { %v4242_v43 = vadd.f32 %v4241_v42, %v7665_v5  ;;  %v6483_v44 = vpop.f32.mrb[45].mxu1  ;;  %6444 = vmatprep.mubr.msk.f32.mxu0 %vm7372_vm1, %v7371_v15 }
0x1930   :  { %v5675_v44 = vld [vmem:[%s8650_s13 + $0xa0] sm:$0xff] }
0x1931   :  { %v4248_v14 = vsel %vm954_vm4, %v4242_v43, -inf }
0x1932   :  { %4249 = vmax.xlane.f32.xlu1 %v4248_v14  ;;  %v5676_v14 = vld [vmem:[%s8650_s13 + $0xa8] sm:$0xff] }
0x1943   :  { %4267 = vrot.lane.b32.xlu1 %v8130_v30, %s7374_s9 }
0x1947   :  { %4504 = vrot.lane.b32.xlu1 %v8120_v21, %s7375_s0 }
0x194b   :  { %4502 = vrot.lane.b32.xlu1 %v8125_v23, %s7375_s0 }
0x194f   :  { %4580 = vrot.lane.b32.xlu1 %v8139_v32, %s7375_s0 }
0x19bb   :  { %v4247_v58 = vpop.xlane.xlu0 %4246 }
0x19bc   :  { %v4251_v45 = vsub.f32 %v4164_v34, %v4247_v58  ;;  %v5677_v58 = vld [vmem:[%s8650_s13 + $0xb0] sm:$0xff] }
0x19be   :  { %v4253_v56 = vmul.f32 1.442695, %v4251_v45  ;;  %v6955_v45 = vpack.c.bf16 %v5676_v14, %v5675_v44  ;;  %v5732_v44 = vld [vmem:[%s8654_s17 + $0x238] sm:$0xff]  ;;  %v5725_v14 = vld [vmem:[%s8654_s17 + $0x200] sm:$0xff] }
0x19bf   :  { %v4250_v46 = vpop.xlane.xlu1 %4249 }
0x19c0   :  { %7249 = vpow2.f32 %v4253_v56  ;;  %v4252_v47 = vsub.f32 %v4242_v43, %v4250_v46  ;;  %v5671_v46 = vld [vmem:[%s8650_s13 + $0x80] sm:$0xff] }
0x19c2   :  { %v4255_v13 = vmul.f32 1.442695, %v4252_v47  ;;  %v5672_v47 = vld [vmem:[%s8650_s13 + $0x88] sm:$0xff] }
0x19c3   :  { %v4268_v37 = vpop.permute.xlu1 %4267 }
0x19c4   :  { %7251 = vpow2.f32 %v4255_v13  ;;  %6485 = vmatpush3.msra.mxu1 %v4268_v37  ;;  %v6963_v13 = vpack.c.bf16 %v5672_v47, %v5671_v46  ;;  %v5731_v46 = vld [vmem:[%s8654_s17 + $0x230] sm:$0xff]  ;;  %v5734_v47 = vld [vmem:[%s8654_s17 + $0x248] sm:$0xff] }
0x19c5   :  { %6489 = vmatprep.subr.mxu1 %v7371_v15 }
0x19c7   :  { %v4505_v7 = vpop.permute.xlu1 %4504 }
0x19ca   :  { %v7250_v49 = vpop.eup %7249 }
0x19cb   :  { %v4257_v21 = vsel %vm954_vm4, %v7250_v49, 0.0 }
0x19cc   :  { %4258 = vadd.xlane.f32.xlu0 %v4257_v21 }
0x19ce   :  { %v7252_v23 = vpop.eup %7251 }
0x19cf   :  { %v4260_v53 = vsel %vm954_vm4, %v7252_v23, 0.0 }
0x19d0   :  { %4261 = vadd.xlane.f32.xlu0 %v4260_v53 }
0x19e6   :  { %4343 = vrot.lane.b32.xlu0 %v8143_v33, %s7374_s9  ;;  %s8688_s9 = sld [smem:[#allocation20_spill]] }
0x19ea   :  { %4582 = vrot.lane.b32.xlu0 %v8128_v29, %s7375_s0 }
0x19fd   :  { %v8231_v32 = vpop.f32.mrb[38].mxu0 }
0x19fe   :  { %v6426_v54 = vpop.f32.mrb[39].mxu0 }
0x1a01   :  { %v3669_v62 = vpop.f32.mrb[40].mxu0 }
0x1a02   :  { %v6436_v55 = vpop.f32.mrb[41].mxu0  ;;  %v3670_v2 = vadd.f32 %v3669_v62, %v7665_v5 }
0x1a04   :  { %v3751_v59 = vsel %vm954_vm4, %v3670_v2, -inf }
0x1a09   :  { %3752 = vmax.xlane.f32.xlu0 %v3751_v59 }
0x1a1f   :  { %3774 = vrot.lane.b32.xlu0 %v8130_v30, %s7373_s2 }
0x1a23   :  { %4756 = vrot.lane.b32.xlu0 %v8143_v33, %s7375_s0  ;;  %v4503_v33 = vpop.permute.xlu1 %4502 }
0x1a27   :  { %v4581_v11 = vpop.permute.xlu1 %4580 }
0x1a59   :  { %v4259_v63 = vpop.xlane.xlu0 %4258 }
0x1a5a   :  { %7253 = vrcp.f32 %v4259_v63  ;;  %v5673_v63 = vld [vmem:[%s8650_s13 + $0x90] sm:$0xff] }
0x1a5d   :  { %v4262_v57 = vpop.xlane.xlu0 %4261 }
0x1a5e   :  { %7255 = vrcp.f32 %v4262_v57  ;;  %v5674_v57 = vld [vmem:[%s8650_s13 + $0x98] sm:$0xff] }
0x1a61   :  { %v4344_v4 = vpop.permute.xlu0 %4343 }
0x1a64   :  { %v7254_v29 = vpop.eup %7253 }
0x1a65   :  { %v4264_v3 = vmul.f32 %v7254_v29, %v7250_v49  ;;  %v4583_v61 = vpop.permute.xlu0 %4582 }
0x1a67   :  { %6487 = vmatmul.mubr.msk.f32.vlgmr.msra.gmra.mrb[46].mxu1 %vm954_vm4, %v4264_v3  ;;  %v6967_v3 = vpack.c.bf16 %v5674_v57, %v5673_v63  ;;  %v5742_v63 = vld [vmem:[%s8654_s17 + $0x288] sm:$0xff] }
0x1a68   :  { %v7256_v6 = vpop.eup %7255  ;;  %6490 = vmatpush3.msra.mxu1 %v4344_v4  ;;  %6491 = vmatprep.mubr.msk.f32.mxu1 %vm7372_vm1, %v7371_v15  ;;  %v5746_v57 = vld [vmem:[%s8654_s17 + $0x2a8] sm:$0xff] }
0x1a69   :  { %v4266_v60 = vmul.f32 %v7256_v6, %v7252_v23  ;;  %6505 = vmatprep.subr.mxu1 %v7371_v15  ;;  %v5679_v6 = vld [vmem:[%s8650_s13 + $0xc0] sm:$0xff] }
0x1a6b   :  { %6492 = vmatmul.mubr.msk.f32.vlgmr.msra.gmra.mrb[48].mxu1 %vm954_vm4, %v4266_v60  ;;  %v5681_v60 = vld [vmem:[%s8650_s13 + $0xd0] sm:$0xff] }
0x1a6c   :  { %6507 = vmatprep.mubr.msk.f32.mxu1 %vm7372_vm1, %v7371_v15 }
0x1a6f   :  { %6506 = vmatpush3.xpose.msk.msra.mxu1 %vm801_vm2, %v4505_v7 }
0x1a70   :  { %6510 = vmatprep.subr.mxu1 %v7371_v15 }
0x1a72   :  { %6508 = vmatmul.mubr.msk.f32.vlgmr.msra.gmra.mrb[50].mxu1 %vm801_vm2, %v4503_v33  ;;  %v5682_v33 = vld [vmem:[%s8650_s13 + $0xd8] sm:$0xff] }
0x1a73   :  { %6511 = vmatpush3.xpose.msk.msra.mxu1 %vm801_vm2, %v4583_v61  ;;  %6512 = vmatprep.mubr.msk.f32.mxu1 %vm7372_vm1, %v7371_v15  ;;  %v6975_v61 = vpack.c.bf16 %v5682_v33, %v5681_v60  ;;  %v5745_v60 = vld [vmem:[%s8654_s17 + $0x2a0] sm:$0xff]  ;;  %v5743_v33 = vld [vmem:[%s8654_s17 + $0x290] sm:$0xff] }
0x1a74   :  { %6520 = vmatprep.subr.mxu1 %v7371_v15 }
0x1a76   :  { %6513 = vmatmul.mubr.msk.f32.vlgmr.msra.gmra.mrb[52].mxu1 %vm801_vm2, %v4581_v11 }
0x1a77   :  { %6522 = vmatprep.mubr.msk.f32.mxu1 %vm7372_vm1, %v7371_v15 }
0x1a96   :  { %v3753_v12 = vpop.xlane.xlu0 %3752 }
0x1a97   :  { %v3757_v38 = vsub.f32 %v3670_v2, %v3753_v12 }
0x1a99   :  { %v3759_v39 = vmul.f32 1.442695, %v3757_v38 }
0x1a9a   :  { %v3775_v9 = vpop.permute.xlu0 %3774 }
0x1a9b   :  { %7257 = vpow2.f32 %v3759_v39  ;;  %6443 = vmatpush3.msra.mxu0 %v3775_v9 }
0x1a9c   :  { %6956 = vmatprep.subr.bf16.mxu0 %v6955_v45 }
0x1a9e   :  { %v4757_v10 = vpop.permute.xlu0 %4756 }
0x1a9f   :  { %6521 = vmatpush3.msra.mxu1 %v4757_v10 }
0x1aa5   :  { %v7258_v16 = vpop.eup %7257 }
0x1aa6   :  { %v3763_v17 = vsel %vm954_vm4, %v7258_v16, 0.0 }
0x1aa7   :  { %3764 = vadd.xlane.f32.xlu1 %v3763_v17  ;;  %v5685_v17 = vld [vmem:[%s8650_s13 + $0xf0] sm:$0xff] }
0x1b34   :  { %v3765_v0 = vpop.xlane.xlu1 %3764 }
0x1b35   :  { %7259 = vrcp.f32 %v3765_v0  ;;  %v5686_v0 = vld [vmem:[%s8650_s13 + $0xf8] sm:$0xff] }
0x1b3a   :  { %v8257_v1 = vpop.f32.mrb[46].mxu1 }
0x1b3b   :  { %v6488_v18 = vpop.f32.mrb[47].mxu1 }
0x1b3e   :  { %v8259_v19 = vpop.f32.mrb[48].mxu1 }
0x1b3f   :  { %v7260_v22 = vpop.eup %7259  ;;  %v6493_v24 = vpop.f32.mrb[49].mxu1 }
0x1b40   :  { %v3770_v25 = vmul.f32 %v7260_v22, %v7258_v16 }
0x1b42   :  { %6445 = vmatmul.mubr.msk.f32.vlgmr.msra.gmra.mrb[42].mxu0 %vm954_vm4, %v3770_v25 }
0x1b43   :  { %6958 = vmatpush3.bf16.msra.mxu0 %v6955_v45 }
0x1b45   :  { %v4576_v26 = vpop.f32.mrb[50].mxu1 }
0x1b46   :  { %v4577_v27 = vadd.f32 %v4576_v26, %v7665_v5  ;;  %v6509_v34 = vpop.f32.mrb[51].mxu1  ;;  %v5720_v26 = vld [vmem:[%s8651_s14 + $0x1] ss:$0 sm:$0xff] }
0x1b48   :  { %v4658_v35 = vsel %vm954_vm4, %v4577_v27, -inf }
0x1b49   :  { %4659 = vmax.xlane.f32.xlu1 %v4658_v35  ;;  %v4654_v36 = vpop.f32.mrb[52].mxu1 }
0x1b4a   :  { %v4655_v40 = vadd.f32 %v4654_v36, %v7665_v5  ;;  %v6514_v42 = vpop.f32.mrb[53].mxu1  ;;  %v5678_v5 = vld [vmem:[%s8650_s13 + $0xb8] sm:$0xff] }
0x1b4b   :  { %v6959_v56 = vpack.c.bf16 %v5678_v5, %v5677_v58  ;;  %v5726_v42 = vld [vmem:[%s8654_s17 + $0x208] sm:$0xff]  ;;  %v5729_v58 = vld [vmem:[%s8654_s17 + $0x220] sm:$0xff] }
0x1b4c   :  { %v4661_v43 = vsel %vm954_vm4, %v4655_v40, -inf  ;;  %v6989_v5 = vpack.c.bf16 %v5729_v58, %v5725_v14  ;;  %v5757_v14 = vld [vmem:[%s8654_s17 + $0x300] sm:$0xff] }
0x1b4d   :  { %4662 = vmax.xlane.f32.xlu1 %v4661_v43  ;;  %6960 = vmatprep.subr.bf16.mxu0 %v6959_v56  ;;  %v5730_v43 = vld [vmem:[%s8654_s17 + $0x228] sm:$0xff]  ;;  %v5761_v58 = vld [vmem:[%s8654_s17 + $0x320] sm:$0xff] }
0x1b4e   :  { %6962 = vmatpush3.bf16.msra.mxu0 %v6959_v56  ;;  %v5727_v56 = vld [vmem:[%s8654_s17 + $0x210] sm:$0xff] }
0x1b4f   :  { %6964 = vmatprep.subr.bf16.mxu0 %v6963_v13 }
0x1bd6   :  { %v4660_v37 = vpop.xlane.xlu1 %4659 }
0x1bd7   :  { %v4664_v49 = vsub.f32 %v4577_v27, %v4660_v37  ;;  %v5738_v37 = vld [vmem:[%s8654_s17 + $0x268] sm:$0xff] }
0x1bd9   :  { %v4666_v21 = vmul.f32 1.442695, %v4664_v49  ;;  %v5736_v49 = vld [vmem:[%s8654_s17 + $0x258] sm:$0xff] }
0x1bda   :  { %v4663_v23 = vpop.xlane.xlu1 %4662 }
0x1bdb   :  { %7261 = vpow2.f32 %v4666_v21  ;;  %v4665_v53 = vsub.f32 %v4655_v40, %v4663_v23  ;;  %v5740_v21 = vld [vmem:[%s8654_s17 + $0x278] sm:$0xff]  ;;  %v6991_v23 = vpack.c.bf16 %v5738_v37, %v5734_v47  ;;  %v5770_v37 = vld [vmem:[%s8654_s17 + $0x368] sm:$0xff] }
0x1bdd   :  { %v4668_v54 = vmul.f32 1.442695, %v4665_v53  ;;  %v7023_v53 = vpack.c.bf16 %v5740_v21, %v5736_v49  ;;  %v5768_v49 = vld [vmem:[%s8654_s17 + $0x358] sm:$0xff] }
0x1bdf   :  { %7263 = vpow2.f32 %v4668_v54  ;;  %v5733_v54 = vld [vmem:[%s8654_s17 + $0x240] sm:$0xff] }
0x1be5   :  { %v7262_v62 = vpop.eup %7261 }
0x1be6   :  { %v4670_v55 = vsel %vm954_vm4, %v7262_v62, 0.0 }
0x1be7   :  { %4671 = vadd.xlane.f32.xlu1 %v4670_v55  ;;  %v5735_v55 = vld [vmem:[%s8654_s17 + $0x250] sm:$0xff] }
0x1be9   :  { %v7264_v2 = vpop.eup %7263 }
0x1bea   :  { %v4673_v59 = vsel %vm954_vm4, %v7264_v2, 0.0 }
0x1beb   :  { %4674 = vadd.xlane.f32.xlu1 %v4673_v59  ;;  %v5739_v59 = vld [vmem:[%s8654_s17 + $0x270] sm:$0xff] }
0x1bfc   :  { %4680 = vrot.lane.b32.xlu1 %v8130_v30, %s7375_s0  ;;  %v5680_v30 = vld [vmem:[%s8650_s13 + $0xc8] sm:$0xff] }
0x1bfd   :  { %v6971_v7 = vpack.c.bf16 %v5680_v30, %v5679_v6  ;;  %v5748_v6 = vld [vmem:[%s8654_s17 + $0x2b8] sm:$0xff]  ;;  %v5741_v30 = vld [vmem:[%s8654_s17 + $0x280] sm:$0xff] }
0x1c15   :  { %v3846_v29 = vpop.f32.mrb[42].mxu0 }
0x1c16   :  { %v6446_v4 = vpop.f32.mrb[43].mxu0  ;;  %6460 = vmatprep.mubr.msk.f32.mxu0 %vm801_vm2, %v3846_v29  ;;  %v7025_v29 = vpack.c.bf16 %v5739_v59, %v5735_v55  ;;  %v5771_v59 = vld [vmem:[%s8654_s17 + $0x370] sm:$0xff] }
0x1c17   :  { %6461 = vmatmul.mubr.msk.f32.vlgmr.msra.gmra.mrb[44].mxu0 %vm801_vm2, %v8202_v20  ;;  %v5744_v4 = vld [vmem:[%s8654_s17 + $0x298] sm:$0xff] }
0x1c18   :  { %6966 = vmatpush3.bf16.msra.mxu0 %v6963_v13  ;;  %6471 = vmatprep.mubr.msk.f32.mxu0 %vm801_vm2, %v8231_v32  ;;  %v5684_v32 = vld [vmem:[%s8650_s13 + $0xe8] sm:$0xff]  ;;  %v7021_v13 = vpack.c.bf16 %v5731_v46, %v5727_v56  ;;  %v5759_v56 = vld [vmem:[%s8654_s17 + $0x310] sm:$0xff] }
0x1c19   :  { %6968 = vmatprep.subr.bf16.mxu0 %v6967_v3  ;;  %v5763_v46 = vld [vmem:[%s8654_s17 + $0x330] sm:$0xff] }
0x1c1a   :  { %v7037_v47 = vpack.c.bf16 %v5763_v46, %v5759_v56  ;;  %v5252_v46 = vld [vmem:[#allocation7 + $0x200] sm:$0xff] }
0x1c1c   :  { %6970 = vmatpush3.bf16.msra.mxu0 %v6967_v3  ;;  %v6995_v3 = vpack.c.bf16 %v5746_v57, %v5742_v63  ;;  %v5774_v63 = vld [vmem:[%s8654_s17 + $0x388] sm:$0xff] }
0x1c1d   :  { %6972 = vmatprep.subr.bf16.mxu0 %v6971_v7 }
0x1c1f   :  { %6472 = vmatmul.mubr.msk.f32.vlgmr.msra.gmra.mrb[44].mxu0 %vm801_vm2, %v8166_v52  ;;  %v5683_v52 = vld [vmem:[%s8650_s13 + $0xe0] sm:$0xff] }
0x1c20   :  { %6974 = vmatpush3.bf16.msra.mxu0 %v6971_v7  ;;  %6502 = vmatprep.mubr.msk.f32.mxu0 %vm801_vm2, %v8257_v1  ;;  %v6979_v12 = vpack.c.bf16 %v5684_v32, %v5683_v52  ;;  %v6983_v1 = vpack.c.bf16 %v5686_v0, %v5685_v17  ;;  %v7027_v7 = vpack.c.bf16 %v5748_v6, %v5744_v4  ;;  %v5750_v17 = vld [vmem:[%s8654_s17 + $0x2c8] sm:$0xff]  ;;  %v5780_v4 = vld [vmem:[%s8654_s17 + $0x3b8] sm:$0xff] }
0x1c21   :  { %6976 = vmatprep.subr.bf16.mxu0 %v6975_v61  ;;  %v5754_v0 = vld [vmem:[%s8654_s17 + $0x2e8] sm:$0xff] }
0x1c24   :  { %6978 = vmatpush3.bf16.msra.mxu0 %v6975_v61  ;;  %v5747_v61 = vld [vmem:[%s8654_s17 + $0x2b0] sm:$0xff] }
0x1c25   :  { %6515 = vmatprep.subr.mxu0 %v7371_v15  ;;  %v7029_v52 = vpack.c.bf16 %v5747_v61, %v5743_v33  ;;  %v5775_v33 = vld [vmem:[%s8654_s17 + $0x390] sm:$0xff] }
0x1c27   :  { %6503 = vmatmul.mubr.msk.f32.vlgmr.msra.gmra.mrb[44].mxu0 %vm801_vm2, %v8259_v19 }
0x1c28   :  { %6517 = vmatprep.mubr.msk.f32.mxu0 %vm7372_vm1, %v7371_v15 }
0x1c74   :  { %v4672_v20 = vpop.xlane.xlu1 %4671 }
0x1c75   :  { %7265 = vrcp.f32 %v4672_v20  ;;  %v6997_v20 = vpack.c.bf16 %v5745_v60, %v5741_v30  ;;  %v5777_v60 = vld [vmem:[%s8654_s17 + $0x3a0] sm:$0xff] }
0x1c78   :  { %v4675_v11 = vpop.xlane.xlu1 %4674 }
0x1c79   :  { %7267 = vrcp.f32 %v4675_v11 }
0x1c7c   :  { %v4681_v38 = vpop.permute.xlu1 %4680 }
0x1c7d   :  { %6516 = vmatpush3.msra.mxu0 %v4681_v38 }
0x1c7e   :  { %6980 = vmatprep.subr.bf16.mxu0 %v6979_v12 }
0x1c7f   :  { %v7266_v39 = vpop.eup %7265 }
0x1c80   :  { %v4677_v9 = vmul.f32 %v7266_v39, %v7262_v62  ;;  %v5737_v62 = vld [vmem:[%s8654_s17 + $0x260] sm:$0xff] }
0x1c82   :  { %6518 = vmatmul.mubr.msk.f32.vlgmr.msra.gmra.mrb[46].mxu0 %vm954_vm4, %v4677_v9 }
0x1c83   :  { %v7268_v10 = vpop.eup %7267  ;;  %6982 = vmatpush3.bf16.msra.mxu0 %v6979_v12 }
0x1c84   :  { %v4679_v16 = vmul.f32 %v7268_v10, %v7264_v2  ;;  %6984 = vmatprep.subr.bf16.mxu0 %v6983_v1  ;;  %v6993_v2 = vpack.c.bf16 %v5737_v62, %v5733_v54  ;;  %v5769_v54 = vld [vmem:[%s8654_s17 + $0x360] sm:$0xff] }
0x1c86   :  { %6523 = vmatmul.mubr.msk.f32.vlgmr.msra.gmra.mrb[54].mxu1 %vm954_vm4, %v4679_v16 }
0x1c87   :  { %5121 = vmatprep.mubr.f32.mxu1 %v7371_v15  ;;  %6986 = vmatpush3.bf16.msra.mxu0 %v6983_v1  ;;  %v5752_v1 = vld [vmem:[%s8654_s17 + $0x2d8] sm:$0xff] }
0x1d55   :  { %v4752_v18 = vpop.f32.mrb[46].mxu0 }
0x1d56   :  { %v6519_v19 = vpop.f32.mrb[47].mxu0  ;;  %6533 = vmatprep.mubr.msk.f32.mxu0 %vm801_vm2, %v4752_v18  ;;  %v6999_v18 = vpack.c.bf16 %v5754_v0, %v5750_v17  ;;  %v5785_v0 = vld [vmem:[%s8654_s17 + $0x3e0] sm:$0xff] }
0x1d57   :  { %v5756_v19 = vld [vmem:[%s8654_s17 + $0x2f8] sm:$0xff] }
0x1d59   :  { %v4828_v22 = vpop.f32.mrb[54].mxu1 }
0x1d5a   :  { %v6524_v24 = vpop.f32.mrb[55].mxu1  ;;  %6534 = vmatmul.mubr.msk.f32.vlgmr.msra.gmra.mrb[44].mxu0 %vm801_vm2, %v4828_v22  ;;  %v5749_v22 = vld [vmem:[%s8654_s17 + $0x2c0] sm:$0xff] }
0x1d5b   :  { %5198 = vmatprep.mubr.f32.mxu0 %v7371_v15  ;;  %v5753_v24 = vld [vmem:[%s8654_s17 + $0x2e0] sm:$0xff] }
0x1e2d   :  { %v6535_v25 = vpop.f32.mrb[44].mxu0 }
0x1e2e   :  { %v4916_v27 = vadd.f32 %v6535_v25, %v8087_v31  ;;  %v4904_v34 = vpop.f32.mrb[45].mxu0  ;;  %v6987_v31 = vpack.c.bf16 %v5730_v43, %v5726_v42  ;;  %v7031_v25 = vpack.c.bf16 %v5756_v19, %v5752_v1  ;;  %v5758_v42 = vld [vmem:[%s8654_s17 + $0x308] sm:$0xff]  ;;  %v5783_v1 = vld [vmem:[%s8654_s17 + $0x3d0] sm:$0xff] }
0x1e2f   :  { %v4915_v35 = vadd.f32 %v4904_v34, %v8083_v28  ;;  %v5728_v28 = vld [vmem:[%s8654_s17 + $0x218] sm:$0xff]  ;;  %v5755_v34 = vld [vmem:[%s8654_s17 + $0x2f0] sm:$0xff]  ;;  %v5762_v43 = vld [vmem:[%s8654_s17 + $0x328] sm:$0xff] }
0x1e30   :  { %v8343_v36 = vadd.f32 %v5720_v26, %v4916_v27  ;;  %v7019_v45 = vpack.c.bf16 %v5732_v44, %v5728_v28  ;;  %6988 = vmatprep.subr.bf16.mxu1 %v6987_v31  ;;  %v5751_v27 = vld [vmem:[%s8654_s17 + $0x2d0] sm:$0xff]  ;;  %v5760_v28 = vld [vmem:[%s8654_s17 + $0x318] sm:$0xff]  ;;  %v7003_v31 = vpack.c.bf16 %v5762_v43, %v5758_v42 }
0x1e31   :  { %v8345_v40 = vadd.f32 %v5720_v26, %v4915_v35  ;;  %6990 = vmatpush1.bf16.msra.mxu1 %v6989_v5  ;;  %v7001_v26 = vpack.c.bf16 %v5753_v24, %v5749_v22  ;;  %v7033_v35 = vpack.c.bf16 %v5755_v34, %v5751_v27  ;;  %v5764_v44 = vld [vmem:[%s8654_s17 + $0x338] sm:$0xff]  ;;  %v7005_v5 = vpack.c.bf16 %v5761_v58, %v5757_v14  ;;  %v5268_v24 = vld [vmem:[#allocation7 + $0x280] sm:$0xff] }
0x1e32   :  { %4933 = vadd.xlane.f32.xlu1 %v8343_v36  ;;  %7020 = vmatprep.subr.bf16.mxu0 %v7019_v45  ;;  %v7035_v45 = vpack.c.bf16 %v5764_v44, %v5760_v28  ;;  %v5301_v34 = vld [vmem:[#allocation7 + $0x388] sm:$0xff] }
0x1e33   :  { %4931 = vadd.xlane.f32.xlu0 %v8345_v40  ;;  %7022 = vmatpush1.bf16.msra.mxu0 %v7021_v13  ;;  %v5766_v13 = vld [vmem:[%s8654_s17 + $0x348] sm:$0xff] }
0x1e34   :  { %6992 = vmatprep.subr.bf16.mxu1 %v6991_v23  ;;  %7024 = vmatprep.subr.bf16.mxu0 %v7023_v53  ;;  %v7007_v21 = vpack.c.bf16 %v5770_v37, %v5766_v13  ;;  %v5772_v23 = vld [vmem:[%s8654_s17 + $0x378] sm:$0xff]  ;;  %v5765_v53 = vld [vmem:[%s8654_s17 + $0x340] sm:$0xff]  ;;  %v5284_v13 = vld [vmem:[#allocation7 + $0x300] sm:$0xff] }
0x1e35   :  { %6994 = vmatpush1.bf16.msra.mxu1 %v6993_v2  ;;  %v7039_v62 = vpack.c.bf16 %v5772_v23, %v5768_v49  ;;  %v7009_v55 = vpack.c.bf16 %v5769_v54, %v5765_v53  ;;  %v5767_v2 = vld [vmem:[%s8654_s17 + $0x350] sm:$0xff]  ;;  %v5285_v37 = vld [vmem:[#allocation7 + $0x308] sm:$0xff]  ;;  %v5270_v49 = vld [vmem:[#allocation7 + $0x290] sm:$0xff] }
0x1e36   :  { %6996 = vmatprep.subr.bf16.mxu1 %v6995_v3  ;;  %v7041_v57 = vpack.c.bf16 %v5771_v59, %v5767_v2  ;;  %v5776_v3 = vld [vmem:[%s8654_s17 + $0x398] sm:$0xff]  ;;  %v5271_v23 = vld [vmem:[#allocation7 + $0x298] sm:$0xff]  ;;  %v5302_v53 = vld [vmem:[#allocation7 + $0x390] sm:$0xff] }
0x1e37   :  { %7026 = vmatpush1.bf16.msra.mxu0 %v7025_v29  ;;  %v5778_v29 = vld [vmem:[%s8654_s17 + $0x3a8] sm:$0xff]  ;;  %v7043_v30 = vpack.c.bf16 %v5780_v4, %v5776_v3  ;;  %v7055_v3 = vpack.c.bf16 %v5271_v23, %v5270_v49 }
0x1e38   :  { %7028 = vmatprep.subr.bf16.mxu0 %v7027_v7  ;;  %v7011_v6 = vpack.c.bf16 %v5778_v29, %v5774_v63  ;;  %v5773_v7 = vld [vmem:[%s8654_s17 + $0x380] sm:$0xff]  ;;  %v5303_v54 = vld [vmem:[#allocation7 + $0x398] sm:$0xff]  ;;  %v7085_v63 = vpack.c.bf16 %v5285_v37, %v5284_v13 }
0x1e39   :  { %6998 = vmatpush1.bf16.msra.mxu1 %v6997_v20  ;;  %v7013_v61 = vpack.c.bf16 %v5777_v60, %v5773_v7  ;;  %v5779_v20 = vld [vmem:[%s8654_s17 + $0x3b0] sm:$0xff]  ;;  %v5255_v29 = vld [vmem:[#allocation7 + $0x218] sm:$0xff]  ;;  %v7087_v4 = vpack.c.bf16 %v5303_v54, %v5302_v53  ;;  %v5273_v60 = vld [vmem:[#allocation7 + $0x2a8] sm:$0xff] }
0x1e3a   :  { %7000 = vmatprep.subr.bf16.mxu1 %v6999_v18  ;;  %v5787_v18 = vld [vmem:[%s8654_s17 + $0x3f0] sm:$0xff]  ;;  %v5278_v37 = vld [vmem:[#allocation7 + $0x2d0] sm:$0xff]  ;;  %v5279_v49 = vld [vmem:[#allocation7 + $0x2d8] sm:$0xff] }
0x1e3b   :  { %7030 = vmatpush1.bf16.msra.mxu0 %v7029_v52  ;;  %v5782_v52 = vld [vmem:[%s8654_s17 + $0x3c8] sm:$0xff]  ;;  %v7049_v22 = vpack.c.bf16 %v5787_v18, %v5783_v1  ;;  %v5306_v18 = vld [vmem:[#allocation7 + $0x3b0] sm:$0xff]  ;;  %v7071_v23 = vpack.c.bf16 %v5279_v49, %v5278_v37 }
0x1e3c   :  { %7032 = vmatprep.subr.bf16.mxu0 %v7031_v25  ;;  %v5269_v25 = vld [vmem:[#allocation7 + $0x288] sm:$0xff]  ;;  %v5275_v1 = vld [vmem:[#allocation7 + $0x2b8] sm:$0xff]  ;;  %v5262_v54 = vld [vmem:[#allocation7 + $0x250] sm:$0xff] }
0x1e3d   :  { %7002 = vmatpush1.bf16.msra.mxu1 %v7001_v26  ;;  %v5300_v26 = vld [vmem:[#allocation7 + $0x380] sm:$0xff]  ;;  %v7051_v27 = vpack.c.bf16 %v5269_v25, %v5268_v24  ;;  %v5258_v24 = vld [vmem:[#allocation7 + $0x230] sm:$0xff]  ;;  %v5259_v25 = vld [vmem:[#allocation7 + $0x238] sm:$0xff] }
0x1e3e   :  { %7004 = vmatprep.subr.bf16.mxu1 %v7003_v31  ;;  %v5311_v53 = vld [vmem:[#allocation7 + $0x3d8] sm:$0xff] }
0x1e3f   :  { %7034 = vmatpush1.bf16.msra.mxu0 %v7033_v35  ;;  %v7083_v35 = vpack.c.bf16 %v5301_v34, %v5300_v26  ;;  %v5290_v34 = vld [vmem:[#allocation7 + $0x330] sm:$0xff] }
0x1e40   :  { %7036 = vmatprep.subr.bf16.mxu0 %v7035_v45  ;;  %v5723_v45 = vld [vmem:[%s8652_s15 + $0x1] ss:$0 sm:$0xff] }
0x1e41   :  { %7006 = vmatpush1.bf16.msra.mxu1 %v7005_v5  ;;  %v5724_v5 = vld [vmem:[%s8653_s16 + $0x1] ss:$0 sm:$0xff] }
0x1e42   :  { %7008 = vmatprep.subr.bf16.mxu1 %v7007_v21 }
0x1e43   :  { %7038 = vmatpush1.bf16.msra.mxu0 %v7037_v47  ;;  %v5253_v47 = vld [vmem:[#allocation7 + $0x208] sm:$0xff] }
0x1e44   :  { %7040 = vmatprep.subr.bf16.mxu0 %v7039_v62  ;;  %v7053_v59 = vpack.c.bf16 %v5253_v47, %v5252_v46  ;;  %v5292_v46 = vld [vmem:[#allocation7 + $0x340] sm:$0xff]  ;;  %v5293_v47 = vld [vmem:[#allocation7 + $0x348] sm:$0xff] }
0x1e45   :  { %7010 = vmatpush1.bf16.msra.mxu1 %v7009_v55  ;;  %v7101_v13 = vpack.c.bf16 %v5293_v47, %v5292_v46 }
0x1e46   :  { %7012 = vmatprep.subr.bf16.mxu1 %v7011_v6  ;;  %v5287_v6 = vld [vmem:[#allocation7 + $0x318] sm:$0xff] }
0x1e47   :  { %7042 = vmatpush1.bf16.msra.mxu0 %v7041_v57  ;;  %v5254_v57 = vld [vmem:[#allocation7 + $0x210] sm:$0xff] }
0x1e48   :  { %7044 = vmatprep.subr.bf16.mxu0 %v7043_v30  ;;  %v5272_v30 = vld [vmem:[#allocation7 + $0x2a0] sm:$0xff] }
0x1e49   :  { %7014 = vmatpush1.bf16.msra.mxu1 %v7013_v61  ;;  %v5305_v61 = vld [vmem:[#allocation7 + $0x3a8] sm:$0xff] }
0x1ebf   :  { %v4934_v32 = vpop.xlane.xlu1 %4933 }
0x1ec0   :  { %v4932_v11 = vpop.xlane.xlu0 %4931  ;;  %v4936_v12 = vmul.f32 0.0078125, %v4934_v32  ;;  %v5786_v32 = vld [vmem:[%s8654_s17 + $0x3e8] sm:$0xff] }
0x1ec1   :  { %v4935_v38 = vmul.f32 0.0078125, %v4932_v11  ;;  %v7045_v11 = vpack.c.bf16 %v5779_v20, %v5775_v33  ;;  %v5304_v33 = vld [vmem:[#allocation7 + $0x3a0] sm:$0xff]  ;;  %v7057_v20 = vpack.c.bf16 %v5255_v29, %v5254_v57 }
0x1ec2   :  { %v8425_v9 = vsub.f32 %v8343_v36, %v4936_v12  ;;  %v7015_v12 = vpack.c.bf16 %v5786_v32, %v5782_v52  ;;  %v5256_v32 = vld [vmem:[#allocation7 + $0x220] sm:$0xff] }
0x1ec3   :  { %v8422_v39 = vsub.f32 %v8345_v40, %v4935_v38  ;;  %v5784_v38 = vld [vmem:[%s8654_s17 + $0x3d8] sm:$0xff]  ;;  %7046 = vmatpush1.bf16.msra.mxu0 %v7045_v11  ;;  %v7059_v11 = vpack.c.bf16 %v5273_v60, %v5272_v30  ;;  %v5280_v29 = vld [vmem:[#allocation7 + $0x2e0] sm:$0xff] }
0x1ec4   :  { %v4940_v16 = vmul.f32 %v8425_v9, %v8425_v9  ;;  %7016 = vmatprep.subr.bf16.mxu1 %v7015_v12  ;;  %v7091_v12 = vpack.c.bf16 %v5305_v61, %v5304_v33  ;;  %v5264_v30 = vld [vmem:[#allocation7 + $0x260] sm:$0xff] }
0x1ec5   :  { %v4939_v10 = vmul.f32 %v8422_v39, %v8422_v39  ;;  %v5296_v61 = vld [vmem:[#allocation7 + $0x360] sm:$0xff] }
0x1ec7   :  { %4941 = vadd.xlane.f32.xlu0 %v4939_v10  ;;  %v5788_v10 = vld [vmem:[%s8654_s17 + $0x3f8] sm:$0xff] }
0x1ec8   :  { %v7047_v17 = vpack.c.bf16 %v5788_v10, %v5784_v38  ;;  %v5257_v38 = vld [vmem:[#allocation7 + $0x228] sm:$0xff]  ;;  %v5288_v10 = vld [vmem:[#allocation7 + $0x320] sm:$0xff] }
0x1eca   :  { %7048 = vmatprep.subr.bf16.mxu0 %v7047_v17  ;;  %v7061_v17 = vpack.c.bf16 %v5257_v38, %v5256_v32  ;;  %v5283_v32 = vld [vmem:[#allocation7 + $0x2f8] sm:$0xff] }
0x1ecb   :  { %4943 = vadd.xlane.f32.xlu0 %v4940_v16  ;;  %v5781_v16 = vld [vmem:[%s8654_s17 + $0x3c0] sm:$0xff]  ;;  %7050 = vmatpush1.bf16.msra.mxu0 %v7049_v22  ;;  %v5307_v22 = vld [vmem:[#allocation7 + $0x3b8] sm:$0xff] }
0x1ecc   :  { %v7017_v19 = vpack.c.bf16 %v5785_v0, %v5781_v16  ;;  %7084 = vmatprep.subr.bf16.mxu0 %v7083_v35  ;;  %v5289_v16 = vld [vmem:[#allocation7 + $0x328] sm:$0xff]  ;;  %v7095_v26 = vpack.c.bf16 %v5307_v22, %v5306_v18  ;;  %v5291_v35 = vld [vmem:[#allocation7 + $0x338] sm:$0xff] }
0x1ecd   :  { %v7093_v0 = vpack.c.bf16 %v5289_v16, %v5288_v10  ;;  %v5315_v38 = vld [vmem:[#allocation7 + $0x3f8] sm:$0xff]  ;;  %v5266_v10 = vld [vmem:[#allocation7 + $0x270] sm:$0xff] }
0x1ece   :  { %7018 = vmatpush1.bf16.msra.mxu1 %v7017_v19  ;;  %v5267_v16 = vld [vmem:[#allocation7 + $0x278] sm:$0xff] }
0x1ecf   :  { %7052 = vmatprep.subr.bf16.mxu1 %v7051_v27  ;;  %v7065_v27 = vpack.c.bf16 %v5259_v25, %v5258_v24 }
0x1f54   :  { %v4942_v42 = vpop.xlane.xlu0 %4941 }
0x1f55   :  { %v4945_v43 = vmul.f32 0.0078125, %v4942_v42  ;;  %v7097_v42 = vpack.c.bf16 %v5291_v35, %v5290_v34 }
0x1f57   :  { %v4947_v28 = vadd.f32 1e-06, %v4945_v43  ;;  %v5276_v43 = vld [vmem:[#allocation7 + $0x2c0] sm:$0xff] }
0x1f58   :  { %v4944_v31 = vpop.xlane.xlu0 %4943 }
0x1f59   :  { %7269 = vrsqrt.f32 %v4947_v28  ;;  %v4946_v44 = vmul.f32 0.0078125, %v4944_v31  ;;  %v5277_v28 = vld [vmem:[#allocation7 + $0x2c8] sm:$0xff]  ;;  %v5308_v31 = vld [vmem:[#allocation7 + $0x3c0] sm:$0xff] }
0x1f5b   :  { %v4948_v14 = vadd.f32 1e-06, %v4946_v44  ;;  %v7067_v44 = vpack.c.bf16 %v5277_v28, %v5276_v43 }
0x1f5d   :  { %7271 = vrsqrt.f32 %v4948_v14  ;;  %v5309_v14 = vld [vmem:[#allocation7 + $0x3c8] sm:$0xff] }
0x1f63   :  { %v7270_v58 = vpop.eup %7269 }
0x1f64   :  { %v4951_v56 = vmul.f32 %v7270_v58, %v8422_v39  ;;  %v5286_v39 = vld [vmem:[#allocation7 + $0x310] sm:$0xff]  ;;  %v5260_v58 = vld [vmem:[#allocation7 + $0x240] sm:$0xff] }
0x1f65   :  { %v7089_v52 = vpack.c.bf16 %v5287_v6, %v5286_v39  ;;  %v5313_v6 = vld [vmem:[#allocation7 + $0x3e8] sm:$0xff] }
0x1f66   :  { %v4959_v21 = vmul.f32 %v5723_v45, %v4951_v56 }
0x1f67   :  { %v7272_v62 = vpop.eup %7271 }
0x1f68   :  { %v4967_v55 = vadd.f32 %v5724_v5, %v4959_v21  ;;  %v4952_v2 = vmul.f32 %v7272_v62, %v8425_v9  ;;  %v5310_v21 = vld [vmem:[#allocation7 + $0x3d0] sm:$0xff]  ;;  %v5263_v62 = vld [vmem:[#allocation7 + $0x258] sm:$0xff] }
0x1f6a   :  { %5122 = vmatmul.mubr.f32.vlgmr.msra.gmra.mrb[56].mxu1 %v4967_v55  ;;  %5199 = vmatmul.mubr.f32.vlgmr.msra.gmra.mrb[48].mxu0 %v4967_v55  ;;  %v4960_v7 = vmul.f32 %v5723_v45, %v4952_v2  ;;  %v5261_v45 = vld [vmem:[#allocation7 + $0x248] sm:$0xff]  ;;  %v7103_v55 = vpack.c.bf16 %v5311_v53, %v5310_v21  ;;  %v7073_v2 = vpack.c.bf16 %v5263_v62, %v5262_v54 }
0x1f6b   :  { %5127 = vmatprep.mubr.f32.mxu1 %v7371_v15  ;;  %5204 = vmatprep.mubr.f32.mxu0 %v7371_v15  ;;  %v5274_v15 = vld [vmem:[#allocation7 + $0x2b0] sm:$0xff]  ;;  %v7069_v56 = vpack.c.bf16 %v5261_v45, %v5260_v58 }
0x1f6c   :  { %v4968_v9 = vadd.f32 %v5724_v5, %v4960_v7  ;;  %7054 = vmatpush3.bf16.msra.mxu1 %v7053_v59  ;;  %7086 = vmatpush3.bf16.msra.mxu0 %v7085_v63  ;;  %v7063_v19 = vpack.c.bf16 %v5275_v1, %v5274_v15  ;;  %v7099_v5 = vpack.c.bf16 %v5309_v14, %v5308_v31  ;;  %v5294_v59 = vld [vmem:[#allocation7 + $0x350] sm:$0xff]  ;;  %v5295_v63 = vld [vmem:[#allocation7 + $0x358] sm:$0xff]  ;;  %v5265_v7 = vld [vmem:[#allocation7 + $0x268] sm:$0xff] }
0x1f6d   :  { %7056 = vmatprep.subr.bf16.mxu1 %v7055_v3  ;;  %7088 = vmatprep.subr.bf16.mxu0 %v7087_v4  ;;  %v7105_v57 = vpack.c.bf16 %v5295_v63, %v5294_v59  ;;  %v5281_v3 = vld [vmem:[#allocation7 + $0x2e8] sm:$0xff]  ;;  %v5312_v4 = vld [vmem:[#allocation7 + $0x3e0] sm:$0xff]  ;;  %v7077_v33 = vpack.c.bf16 %v5265_v7, %v5264_v30  ;;  %v5298_v15 = vld [vmem:[#allocation7 + $0x370] sm:$0xff] }
0x1f6e   :  { %5128 = vmatmul.mubr.f32.gmra.mrb[58].mxu1 %v4968_v9  ;;  %5205 = vmatmul.mubr.f32.gmra.mrb[50].mxu0 %v4968_v9  ;;  %v7075_v39 = vpack.c.bf16 %v5281_v3, %v5280_v29  ;;  %v7107_v60 = vpack.c.bf16 %v5313_v6, %v5312_v4  ;;  %v5297_v9 = vld [vmem:[#allocation7 + $0x368] sm:$0xff]  ;;  %v5299_v1 = vld [vmem:[#allocation7 + $0x378] sm:$0xff] }
0x1f6f   :  { %v7113_v18 = vpack.c.bf16 %v5299_v1, %v5298_v15 }
0x1f70   :  { %7058 = vmatpush3.bf16.msra.mxu1 %v7057_v20  ;;  %7090 = vmatpush3.bf16.msra.mxu0 %v7089_v52  ;;  %v7109_v20 = vpack.c.bf16 %v5297_v9, %v5296_v61  ;;  %v5282_v52 = vld [vmem:[#allocation7 + $0x2f0] sm:$0xff] }
0x1f71   :  { %7060 = vmatprep.subr.bf16.mxu1 %v7059_v11  ;;  %7092 = vmatprep.subr.bf16.mxu0 %v7091_v12  ;;  %v5314_v11 = vld [vmem:[#allocation7 + $0x3f0] sm:$0xff]  ;;  %v7079_v12 = vpack.c.bf16 %v5283_v32, %v5282_v52 }
0x1f74   :  { %7062 = vmatpush3.bf16.msra.mxu1 %v7061_v17  ;;  %7094 = vmatpush3.bf16.msra.mxu0 %v7093_v0  ;;  %v7111_v17 = vpack.c.bf16 %v5315_v38, %v5314_v11  ;;  %v7081_v0 = vpack.c.bf16 %v5267_v16, %v5266_v10 }
0x1f75   :  { %7064 = vmatprep.subr.bf16.mxu1 %v7063_v19  ;;  %7096 = vmatprep.subr.bf16.mxu0 %v7095_v26  ;;  %v5789_v19 = vld [vmem:[%s8655_s18 + $0x4] sm:$0xf] }
0x1f76   :  { %v5040_v22 = vrot.slane %v5789_v19, %v7624_v50  ;;  %v5048_v24 = vrot.slane %v5789_v19, %v7627_v51  ;;  %v5044_v25 = vrot.slane %v5789_v19, %v7618_v41  ;;  %v5052_v26 = vrot.slane %v5789_v19, %v2574_v8 }
0x1f78   :  { %7066 = vmatpush3.bf16.msra.mxu1 %v7065_v27  ;;  %7098 = vmatpush3.bf16.msra.mxu0 %v7097_v42 }
0x1f79   :  { %7068 = vmatprep.subr.bf16.mxu1 %v7067_v44  ;;  %7100 = vmatprep.subr.bf16.mxu0 %v7099_v5 }
0x1f7c   :  { %7070 = vmatpush3.bf16.msra.mxu1 %v7069_v56  ;;  %7102 = vmatpush3.bf16.msra.mxu0 %v7101_v13 }
0x1f7d   :  { %7072 = vmatprep.subr.bf16.mxu1 %v7071_v23  ;;  %7104 = vmatprep.subr.bf16.mxu0 %v7103_v55 }
0x1f80   :  { %7074 = vmatpush3.bf16.msra.mxu1 %v7073_v2  ;;  %7106 = vmatpush3.bf16.msra.mxu0 %v7105_v57 }
0x1f81   :  { %7076 = vmatprep.subr.bf16.mxu1 %v7075_v39  ;;  %7108 = vmatprep.subr.bf16.mxu0 %v7107_v60 }
0x1f84   :  { %7078 = vmatpush3.bf16.msra.mxu1 %v7077_v33  ;;  %7110 = vmatpush3.bf16.msra.mxu0 %v7109_v20 }
0x1f85   :  { %7080 = vmatprep.subr.bf16.mxu1 %v7079_v12  ;;  %7112 = vmatprep.subr.bf16.mxu0 %v7111_v17 }
0x1f88   :  { %7082 = vmatpush3.bf16.msra.mxu1 %v7081_v0  ;;  %7114 = vmatpush3.bf16.msra.mxu0 %v7113_v18 }
0x203d   :  { %v5123_v27 = vpop.f32.mrb[56].mxu1  ;;  %v5200_v34 = vpop.f32.mrb[48].mxu0 }
0x203e   :  { %v5124_v35 = vadd.f32 %v5123_v27, %v5040_v22  ;;  %v5201_v42 = vadd.f32 %v5200_v34, %v5048_v24  ;;  %v5125_v43 = vpop.f32.mrb[57].mxu1  ;;  %v5202_v28 = vpop.f32.mrb[49].mxu0 }
0x203f   :  { %v5126_v31 = vadd.f32 %v5125_v43, %v5044_v25  ;;  %v5203_v44 = vadd.f32 %v5202_v28, %v5052_v26 }
0x2040   :  { %v5219_v14 = vmul.f32 0.70710677, %v5124_v35  ;;  %v5221_v58 = vmul.f32 0.70710677, %v5201_v42  ;;  %v5211_v57 = vmul.f32 0.5, %v5124_v35  ;;  %v5213_v39 = vmul.f32 0.5, %v5201_v42 }
0x2041   :  { %v5220_v45 = vmul.f32 0.70710677, %v5126_v31  ;;  %v5222_v5 = vmul.f32 0.70710677, %v5203_v44  ;;  %v5129_v50 = vpop.f32.mrb[58].mxu1  ;;  %v5206_v51 = vpop.f32.mrb[50].mxu0 }
0x2042   :  { %7273 = verf.f32 %v5219_v14  ;;  %v5130_v41 = vadd.f32 %v5129_v50, %v5040_v22  ;;  %v5207_v56 = vadd.f32 %v5206_v51, %v5048_v24  ;;  %v5131_v48 = vpop.f32.mrb[59].mxu1  ;;  %v5208_v8 = vpop.f32.mrb[51].mxu0  ;;  %v5212_v59 = vmul.f32 0.5, %v5126_v31  ;;  %v5791_v22 = vld [vmem:[%s8657_s20 + $0x1] ss:$0 sm:$0xff] }
0x2043   :  { %7275 = verf.f32 %v5221_v58  ;;  %v5132_v46 = vadd.f32 %v5131_v48, %v5044_v25  ;;  %v5209_v47 = vadd.f32 %v5208_v8, %v5052_v26  ;;  %v5214_v29 = vmul.f32 0.5, %v5203_v44  ;;  %v5516_v51 = vld [vmem:[%s8660_s23] sm:$0xff] }
0x2044   :  { %7277 = verf.f32 %v5220_v45  ;;  %v5223_v13 = vmul.f32 0.70710677, %v5130_v41  ;;  %v5225_v37 = vmul.f32 0.70710677, %v5207_v56  ;;  %v5215_v12 = vmul.f32 0.5, %v5130_v41  ;;  %v5517_v41 = vld [vmem:[%s8660_s23 + $0x8] sm:$0xff] }
0x2045   :  { %7279 = verf.f32 %v5222_v5  ;;  %v5224_v49 = vmul.f32 0.70710677, %v5132_v46  ;;  %v5226_v21 = vmul.f32 0.70710677, %v5209_v47  ;;  %v5216_v32 = vmul.f32 0.5, %v5132_v46 }
0x2046   :  { %7281 = verf.f32 %v5223_v13  ;;  %v5218_v38 = vmul.f32 0.5, %v5209_v47  ;;  %v5217_v16 = vmul.f32 0.5, %v5207_v56  ;;  %v5518_v56 = vld [vmem:[%s8660_s23 + $0x10] sm:$0xff]  ;;  %v7115_v48 = vpack.c.bf16 %v5517_v41, %v5516_v51 }
0x2047   :  { %7283 = verf.f32 %v5225_v37 }
0x2048   :  { %7285 = verf.f32 %v5224_v49  ;;  %7116 = vmatprep.subr.bf16.mxu1 %v7115_v48 }
0x2049   :  { %7287 = verf.f32 %v5226_v21 }
0x204c   :  { %v7274_v23 = vpop.eup %7273 }
0x204d   :  { %v7276_v53 = vpop.eup %7275  ;;  %v5235_v62 = vadd.f32 1.0, %v7274_v23 }
0x204e   :  { %v7278_v54 = vpop.eup %7277  ;;  %v5237_v2 = vadd.f32 1.0, %v7276_v53  ;;  %v5520_v53 = vld [vmem:[%s8660_s23 + $0x20] sm:$0xff] }
0x204f   :  { %v7280_v55 = vpop.eup %7279  ;;  %v5236_v63 = vadd.f32 1.0, %v7278_v54  ;;  %v5243_v7 = vmul.f32 %v5235_v62, %v5211_v57  ;;  %v5521_v54 = vld [vmem:[%s8660_s23 + $0x28] sm:$0xff] }
0x2050   :  { %v5238_v3 = vadd.f32 1.0, %v7280_v55  ;;  %v7282_v4 = vpop.eup %7281  ;;  %v5245_v61 = vmul.f32 %v5237_v2, %v5213_v39  ;;  %v7123_v62 = vpack.c.bf16 %v5521_v54, %v5520_v53  ;;  %v5522_v55 = vld [vmem:[%s8660_s23 + $0x30] sm:$0xff]  ;;  %v5523_v2 = vld [vmem:[%s8660_s23 + $0x38] sm:$0xff]  ;;  %v5525_v57 = vld [vmem:[%s8660_s23 + $0x48] sm:$0xff] }
0x2051   :  { %v5244_v6 = vmul.f32 %v5236_v63, %v5212_v59  ;;  %v7284_v30 = vpop.eup %7283  ;;  %v5239_v9 = vadd.f32 1.0, %v7282_v4  ;;  %v7127_v59 = vpack.c.bf16 %v5523_v2, %v5522_v55  ;;  %v5524_v63 = vld [vmem:[%s8660_s23 + $0x40] sm:$0xff]  ;;  %v5527_v4 = vld [vmem:[%s8660_s23 + $0x58] sm:$0xff] }
0x2052   :  { %v5246_v60 = vmul.f32 %v5238_v3, %v5214_v29  ;;  %v7286_v33 = vpop.eup %7285  ;;  %v5241_v52 = vadd.f32 1.0, %v7284_v30  ;;  %v7131_v29 = vpack.c.bf16 %v5525_v57, %v5524_v63  ;;  %v5526_v3 = vld [vmem:[%s8660_s23 + $0x50] sm:$0xff]  ;;  %v5529_v30 = vld [vmem:[%s8660_s23 + $0x68] sm:$0xff] }
0x2053   :  { %5388 = vmatprep.mubr.f32.mxu1 %v5244_v6  ;;  %v7288_v20 = vpop.eup %7287  ;;  %v5240_v11 = vadd.f32 1.0, %v7286_v33  ;;  %v5247_v15 = vmul.f32 %v5239_v9, %v5215_v12  ;;  %v7135_v39 = vpack.c.bf16 %v5527_v4, %v5526_v3  ;;  %v5528_v6 = vld [vmem:[%s8660_s23 + $0x60] sm:$0xff]  ;;  %v5531_v33 = vld [vmem:[%s8660_s23 + $0x78] sm:$0xff] }
0x2054   :  { %5463 = vmatprep.mubr.f32.mxu0 %v5246_v60  ;;  %5389 = vmatmul.mubr.f32.vlgmr.msra.gmra.mrb[60].mxu1 %v5243_v7  ;;  %v5242_v10 = vadd.f32 1.0, %v7288_v20  ;;  %v5249_v1 = vmul.f32 %v5241_v52, %v5217_v16  ;;  %v7139_v7 = vpack.c.bf16 %v5529_v30, %v5528_v6  ;;  %v5530_v60 = vld [vmem:[%s8660_s23 + $0x70] sm:$0xff] }
0x2055   :  { %5464 = vmatmul.mubr.f32.vlgmr.msra.gmra.mrb[52].mxu0 %v5245_v61  ;;  %v5248_v17 = vmul.f32 %v5240_v11, %v5216_v32  ;;  %7118 = vmatpush3.bf16.msra.mxu1 %v7115_v48  ;;  %v7143_v61 = vpack.c.bf16 %v5531_v33, %v5530_v60 }
0x2056   :  { %v5250_v0 = vmul.f32 %v5242_v10, %v5218_v38  ;;  %v5792_v10 = vld [vmem:[%s8658_s21] ss:$0 sm:$0xff] }
0x2057   :  { %5393 = vmatprep.mubr.f32.mxu1 %v5248_v17  ;;  %v5793_v17 = vld [vmem:[%s8659_s22] ss:$0 sm:$0xff] }
0x2058   :  { %5468 = vmatprep.mubr.f32.mxu0 %v5250_v0  ;;  %5394 = vmatmul.mubr.f32.gmra.mrb[62].mxu1 %v5247_v15 }
0x2059   :  { %5469 = vmatmul.mubr.f32.gmra.mrb[54].mxu0 %v5249_v1 }
0x2127   :  { %v6156_v18 = vpop.f32.mrb[60].mxu1 }
0x2128   :  { %v6194_v19 = vpop.f32.mrb[52].mxu0  ;;  %v6157_v24 = vpop.f32.mrb[61].mxu1 }
0x2129   :  { %v6158_v25 = vadd.f32 %v6157_v24, %v6156_v18  ;;  %v6195_v26 = vpop.f32.mrb[53].mxu0  ;;  %v5794_v24 = vld [vmem:[%s8661_s24] ss:$0 sm:$0xff] }
0x212a   :  { %v6196_v27 = vadd.f32 %v6195_v26, %v6194_v19 }
0x212b   :  { %v5391_v34 = vadd.f32 %v6158_v25, %v5791_v22  ;;  %v6159_v35 = vpop.f32.mrb[62].mxu1 }
0x212c   :  { %v6197_v43 = vpop.f32.mrb[54].mxu0  ;;  %v6160_v28 = vpop.f32.mrb[63].mxu1 }
0x212d   :  { %v5466_v42 = vadd.f32 %v6196_v27, %v5391_v34  ;;  %v6161_v31 = vadd.f32 %v6160_v28, %v6159_v35  ;;  %v6198_v44 = vpop.f32.mrb[55].mxu0 }
0x212e   :  { %v6199_v14 = vadd.f32 %v6198_v44, %v6197_v43 }
0x212f   :  { %v5474_v58 = vadd.f32 %v5466_v42, %v8345_v40  ;;  %v5396_v45 = vadd.f32 %v6161_v31, %v5791_v22  ;;  %v5519_v40 = vld [vmem:[%s8660_s23 + $0x18] sm:$0xff] }
0x2130   :  { %v7119_v8 = vpack.c.bf16 %v5519_v40, %v5518_v56 }
0x2131   :  { %5478 = vadd.xlane.f32.xlu0 %v5474_v58  ;;  %v5471_v5 = vadd.f32 %v6199_v14, %v5396_v45 }
0x2132   :  { %7120 = vmatprep.subr.bf16.mxu1 %v7119_v8 }
0x2133   :  { %v5475_v50 = vadd.f32 %v5471_v5, %v8343_v36  ;;  %7122 = vmatpush3.bf16.msra.mxu1 %v7119_v8 }
0x2134   :  { %7124 = vmatprep.subr.bf16.mxu1 %v7123_v62 }
0x2135   :  { %5480 = vadd.xlane.f32.xlu0 %v5475_v50 }
0x2137   :  { %7126 = vmatpush3.bf16.msra.mxu1 %v7123_v62 }
0x2138   :  { %7128 = vmatprep.subr.bf16.mxu1 %v7127_v59 }
0x213b   :  { %7130 = vmatpush3.bf16.msra.mxu1 %v7127_v59 }
0x213c   :  { %7132 = vmatprep.subr.bf16.mxu1 %v7131_v29 }
0x213f   :  { %7134 = vmatpush3.bf16.msra.mxu1 %v7131_v29 }
0x2140   :  { %7136 = vmatprep.subr.bf16.mxu1 %v7135_v39 }
0x2143   :  { %7138 = vmatpush3.bf16.msra.mxu1 %v7135_v39 }
0x2144   :  { %7140 = vmatprep.subr.bf16.mxu1 %v7139_v7 }
0x2147   :  { %7142 = vmatpush3.bf16.msra.mxu1 %v7139_v7 }
0x2148   :  { %7144 = vmatprep.subr.bf16.mxu1 %v7143_v61 }
0x214b   :  { %7146 = vmatpush3.bf16.msra.mxu1 %v7143_v61 }
0x21be   :  { %v5479_v36 = vpop.xlane.xlu0 %5478 }
0x21bf   :  { %v5482_v46 = vmul.f32 0.0078125, %v5479_v36 }
0x21c1   :  { %v5484_v47 = vsub.f32 %v5474_v58, %v5482_v46 }
0x21c2   :  { %v5481_v13 = vpop.xlane.xlu0 %5480 }
0x21c3   :  { %v5486_v37 = vmul.f32 %v5484_v47, %v5484_v47  ;;  %v5483_v49 = vmul.f32 0.0078125, %v5481_v13 }
0x21c5   :  { %5488 = vadd.xlane.f32.xlu0 %v5486_v37  ;;  %v5485_v21 = vsub.f32 %v5475_v50, %v5483_v49 }
0x21c7   :  { %v5487_v23 = vmul.f32 %v5485_v21, %v5485_v21 }
0x21c9   :  { %5490 = vadd.xlane.f32.xlu1 %v5487_v23 }
0x2252   :  { %v5489_v9 = vpop.xlane.xlu0 %5488 }
0x2253   :  { %v5492_v20 = vmul.f32 0.0078125, %v5489_v9 }
0x2255   :  { %v5494_v52 = vadd.f32 1e-06, %v5492_v20 }
0x2256   :  { %v5491_v32 = vpop.xlane.xlu1 %5490 }
0x2257   :  { %7289 = vrsqrt.f32 %v5494_v52  ;;  %v5493_v11 = vmul.f32 0.0078125, %v5491_v32 }
0x2259   :  { %v5495_v12 = vadd.f32 1e-06, %v5493_v11 }
0x225b   :  { %7291 = vrsqrt.f32 %v5495_v12 }
0x2261   :  { %v7290_v38 = vpop.eup %7289 }
0x2262   :  { %v5498_v16 = vmul.f32 %v7290_v38, %v5484_v47 }
0x2264   :  { %v5506_v0 = vmul.f32 %v5792_v10, %v5498_v16 }
0x2265   :  { %v7292_v15 = vpop.eup %7291 }
0x2266   :  { %v5514_v1 = vadd.f32 %v5793_v17, %v5506_v0  ;;  %v5499_v18 = vmul.f32 %v7292_v15, %v5485_v21 }
0x2268   :  { %6568 = vmatprep.mubr.f32.mxu1 %v5514_v1  ;;  %v5507_v19 = vmul.f32 %v5792_v10, %v5499_v18 }
0x226a   :  { %v5515_v22 = vadd.f32 %v5793_v17, %v5507_v19 }
0x226c   :  { %6569 = vmatmul.mubr.f32.vlgmr.msra.gmra.mrb[64].mxu1 %v5515_v22 }
0x233f   :  { %v6570_v25 = vpop.f32.mrb[64].mxu1 }
0x2340   :  { %v5611_v26 = vadd.f32 %v6570_v25, %v5794_v24  ;;  %v5605_v27 = vpop.f32.mrb[65].mxu1 }
0x2341   :  { %v5606_v34 = vadd.f32 %v5794_v24, %v5605_v27 }
0x2342   :  { %5615 = vst [vmem:[%s8688_s9 + $0x8] sm:$0xff] %v5611_v26 }
0x2343   :  { %5614 = vst [vmem:[%s8688_s9] sm:$0xff] %v5606_v34 }
0x2344   :  { %5620 = vsyncpa [#allocation4], 1 }
0x2345   :  { %5621 = vsyncpa [#allocation6], 1 }

</bundles_post_ra>
